<compile_context>
chip_gen: v7x
topology: tpu7x:2x2x1
jax: 0.10.0
libtpu: 0.0.40
codegen_flags: <defaults>
</compile_context>

<pallas_src>
import functools

import jax
import jax.numpy as jnp
from jax.experimental import pallas as pl
from jax.experimental.pallas import tpu as pltpu

# ----------------------- model hyper-params (small, synthetic) ------------------
VOCAB = 64          # vocab size
H = 32              # hidden size
N_HEADS = 4
D_HEAD = H // N_HEADS
FFN = 4 * H         # 128 -> lane-dense FFN intermediate
N_LAYERS = 2
MAX_POS = 32
LN_EPS = 1e-12      # BERT layer-norm eps


# ----------------------------- fused tower kernel -------------------------------

def _qtower_kernel(x_ref, embg_ref, embb_ref,
                   wqkv_ref, bqkv_ref, wo_ref, bo_ref,
                   ln1g_ref, ln1b_ref, w1_ref, b1_ref, w2_ref, b2_ref,
                   ln2g_ref, ln2b_ref,
                   poolw_ref, poolb_ref, clsw_ref, clsb_ref,
                   out_ref, *, B, S):
    """One full BERT tower for one Q-network (grid axis selects the tower)."""
    scale = 1.0 / (D_HEAD ** 0.5)

    def layernorm(x, g, b):
        mu = jnp.mean(x, axis=-1, keepdims=True)
        xc = x - mu
        var = jnp.mean(xc * xc, axis=-1, keepdims=True)
        return xc * jax.lax.rsqrt(var + LN_EPS) * g + b

    # Embedding LayerNorm (no zero residual).
    x = layernorm(x_ref[...], embg_ref[...], embb_ref[...])          # (B*S, H)

    for l in range(N_LAYERS):
        # Fused QKV projection: (B*S, H) @ (H, 3H).
        qkv = jnp.dot(x, wqkv_ref[l],
                      preferred_element_type=jnp.float32) + bqkv_ref[l]
        wo_l = wo_ref[l]                                             # (H, H)

        # Attention, statically unrolled over (batch, head); the per-head
        # output projection is folded in so no lane-axis concat is needed.
        attn_rows = []
        for bi in range(B):
            r0, r1 = bi * S, (bi + 1) * S
            acc = jnp.zeros((S, H), jnp.float32)
            for hi in range(N_HEADS):
                c0 = hi * D_HEAD
                qs = qkv[r0:r1, c0:c0 + D_HEAD]                      # (S, dh)
                ks = qkv[r0:r1, H + c0:H + c0 + D_HEAD]              # (S, dh)
                vs = qkv[r0:r1, 2 * H + c0:2 * H + c0 + D_HEAD]      # (S, dh)
                s = jax.lax.dot_general(
                    qs, ks, (((1,), (1,)), ((), ())),
                    preferred_element_type=jnp.float32) * scale      # (S, S)
                s = s - jnp.max(s, axis=-1, keepdims=True)
                e = jnp.exp(s)
                p = e * pl.reciprocal(jnp.sum(e, axis=-1, keepdims=True),
                                      approx=True)
                ctx = jnp.dot(p, vs, preferred_element_type=jnp.float32)
                acc = acc + jnp.dot(ctx, wo_l[c0:c0 + D_HEAD, :],
                                    preferred_element_type=jnp.float32)
            attn_rows.append(acc)
        attn_out = jnp.concatenate(attn_rows, axis=0) + bo_ref[l]    # (B*S, H)
        x = layernorm(attn_out + x, ln1g_ref[l], ln1b_ref[l])

        # FFN.
        ff = jnp.dot(x, w1_ref[l], preferred_element_type=jnp.float32) + b1_ref[l]
        # TODO(synk): HF BERT uses exact (erf) GELU; tanh approximation kept
        # here for robust Mosaic lowering (weights are synthetic anyway).
        ff = jax.nn.gelu(ff)
        ff = jnp.dot(ff, w2_ref[l], preferred_element_type=jnp.float32) + b2_ref[l]
        x = layernorm(ff + x, ln2g_ref[l], ln2b_ref[l])

    # Pooler on [CLS] (first token of each sequence) + 1-logit classifier.
    cls = jnp.concatenate([x[bi * S:bi * S + 1, :] for bi in range(B)], axis=0)
    pooled = jnp.tanh(
        jnp.dot(cls, poolw_ref[...], preferred_element_type=jnp.float32)
        + poolb_ref[...])                                            # (B, H)
    logits = (jnp.dot(pooled, clsw_ref[...], preferred_element_type=jnp.float32)
              + clsb_ref[...])                                       # (B, 1)
    out_ref[...] = logits


def qnetwork_fused_call(x_emb, pk, B, S):
    """x_emb: (2, B*S, H) stacked per-tower embeddings; pk: stacked params."""
    BS = B * S

    def spec(shape):
        n = len(shape)
        return pl.BlockSpec((None,) + shape, lambda t: (t,) + (0,) * n)

    in_specs = [
        spec((BS, H)),
        spec((1, H)), spec((1, H)),
        spec((N_LAYERS, H, 3 * H)), spec((N_LAYERS, 1, 3 * H)),
        spec((N_LAYERS, H, H)), spec((N_LAYERS, 1, H)),
        spec((N_LAYERS, 1, H)), spec((N_LAYERS, 1, H)),
        spec((N_LAYERS, H, FFN)), spec((N_LAYERS, 1, FFN)),
        spec((N_LAYERS, FFN, H)), spec((N_LAYERS, 1, H)),
        spec((N_LAYERS, 1, H)), spec((N_LAYERS, 1, H)),
        spec((H, H)), spec((1, H)),
        spec((H, 1)), spec((1, 1)),
    ]
    out = pl.pallas_call(
        functools.partial(_qtower_kernel, B=B, S=S),
        grid=(2,),                                   # tower axis (q1, q2)
        in_specs=in_specs,
        out_specs=spec((B, 1)),
        out_shape=jax.ShapeDtypeStruct((2, B, 1), jnp.float32),
        compiler_params=pltpu.CompilerParams(
            dimension_semantics=("parallel",),       # 2 TCs on v7x run towers concurrently
            vmem_limit_bytes=32 * 1024 * 1024),
    )(x_emb,
      pk["emb_ln_g"], pk["emb_ln_b"],
      pk["wqkv"], pk["bqkv"], pk["wo"], pk["bo"],
      pk["ln1_g"], pk["ln1_b"], pk["w1"], pk["b1"], pk["w2"], pk["b2"],
      pk["ln2_g"], pk["ln2_b"],
      pk["pool_w"], pk["pool_b"], pk["cls_w"], pk["cls_b"])
    return out


# ----------------------------- parameters ---------------------------------------

def init_bert_params(key):
    ks = jax.random.split(key, 8 + 12 * N_LAYERS)
    s = 0.02
    p = {
        "word_emb": s * jax.random.normal(ks[0], (VOCAB, H), jnp.float32),
        "pos_emb": s * jax.random.normal(ks[1], (MAX_POS, H), jnp.float32),
        "type_emb": s * jax.random.normal(ks[2], (2, H), jnp.float32),
        "emb_ln_g": jnp.ones((H,), jnp.float32),
        "emb_ln_b": jnp.zeros((H,), jnp.float32),
        "pool_w": s * jax.random.normal(ks[3], (H, H), jnp.float32),
        "pool_b": jnp.zeros((H,), jnp.float32),
        "cls_w": s * jax.random.normal(ks[4], (H, 1), jnp.float32),
        "cls_b": jnp.zeros((1,), jnp.float32),
        "layers": [],
    }
    base = 8
    for l in range(N_LAYERS):
        k = ks[base + 12 * l: base + 12 * (l + 1)]
        p["layers"].append({
            "wq": s * jax.random.normal(k[0], (H, H), jnp.float32),
            "bq": jnp.zeros((H,), jnp.float32),
            "wk": s * jax.random.normal(k[1], (H, H), jnp.float32),
            "bk": jnp.zeros((H,), jnp.float32),
            "wv": s * jax.random.normal(k[2], (H, H), jnp.float32),
            "bv": jnp.zeros((H,), jnp.float32),
            "wo": s * jax.random.normal(k[3], (H, H), jnp.float32),
            "bo": jnp.zeros((H,), jnp.float32),
            "ln1_g": jnp.ones((H,), jnp.float32),
            "ln1_b": jnp.zeros((H,), jnp.float32),
            "w1": s * jax.random.normal(k[4], (H, FFN), jnp.float32),
            "b1": jnp.zeros((FFN,), jnp.float32),
            "w2": s * jax.random.normal(k[5], (FFN, H), jnp.float32),
            "b2": jnp.zeros((H,), jnp.float32),
            "ln2_g": jnp.ones((H,), jnp.float32),
            "ln2_b": jnp.zeros((H,), jnp.float32),
        })
    return p


def pack_qnetwork_params(p1, p2):
    """Stack both towers' weights (fusing QKV per layer) -> leading tower dim 2."""
    def stack(fn):
        return jnp.stack([fn(p1), fn(p2)], axis=0)

    def layer_stack(fn):
        return jnp.stack(
            [jnp.stack([fn(layer) for layer in p["layers"]], axis=0)
             for p in (p1, p2)], axis=0)

    return {
        "emb_ln_g": stack(lambda p: p["emb_ln_g"].reshape(1, H)),
        "emb_ln_b": stack(lambda p: p["emb_ln_b"].reshape(1, H)),
        "wqkv": layer_stack(
            lambda l: jnp.concatenate([l["wq"], l["wk"], l["wv"]], axis=1)),
        "bqkv": layer_stack(
            lambda l: jnp.concatenate([l["bq"], l["bk"], l["bv"]]).reshape(1, 3 * H)),
        "wo": layer_stack(lambda l: l["wo"]),
        "bo": layer_stack(lambda l: l["bo"].reshape(1, H)),
        "ln1_g": layer_stack(lambda l: l["ln1_g"].reshape(1, H)),
        "ln1_b": layer_stack(lambda l: l["ln1_b"].reshape(1, H)),
        "w1": layer_stack(lambda l: l["w1"]),
        "b1": layer_stack(lambda l: l["b1"].reshape(1, FFN)),
        "w2": layer_stack(lambda l: l["w2"]),
        "b2": layer_stack(lambda l: l["b2"].reshape(1, H)),
        "ln2_g": layer_stack(lambda l: l["ln2_g"].reshape(1, H)),
        "ln2_b": layer_stack(lambda l: l["ln2_b"].reshape(1, H)),
        "pool_w": stack(lambda p: p["pool_w"]),
        "pool_b": stack(lambda p: p["pool_b"].reshape(1, H)),
        "cls_w": stack(lambda p: p["cls_w"]),
        "cls_b": stack(lambda p: p["cls_b"].reshape(1, 1)),
    }


def embed_tokens(token_ids, p):
    """token_ids: (B, S) -> (B*S, H). Embedding gather is plain-JAX glue."""
    B, S = token_ids.shape
    x = (jnp.take(p["word_emb"], token_ids, axis=0)
         + p["pos_emb"][:S][None, :, :]
         + p["type_emb"][0][None, None, :])
    return x.reshape(B * S, H)


# ------------------------------- QNetwork ---------------------------------------

def qnetwork_forward(actions, states, params_q1, params_q2):
    # torch.cat([states, actions], 1) on token-id sequences.
    state_actions = jnp.concatenate([states, actions], axis=1)      # (B, S)
    B, S = state_actions.shape
    # TODO(synk): no padding/attention mask is applied (all tokens attend to all).
    x_emb = jnp.stack([embed_tokens(state_actions, params_q1),
                       embed_tokens(state_actions, params_q2)], axis=0)
    packed = pack_qnetwork_params(params_q1, params_q2)
    out = qnetwork_fused_call(x_emb, packed, B, S)                  # (2, B, 1)
    return out[0], out[1]


if __name__ == "__main__":
    key = jax.random.PRNGKey(0)
    k_p1, k_p2, k_s, k_a = jax.random.split(key, 4)

    params_q1 = init_bert_params(k_p1)
    params_q2 = init_bert_params(k_p2)

    B, S_STATE, S_ACTION = 2, 8, 8
    states = jax.random.randint(k_s, (B, S_STATE), 0, VOCAB, dtype=jnp.int32)
    actions = jax.random.randint(k_a, (B, S_ACTION), 0, VOCAB, dtype=jnp.int32)

    q1, q2 = jax.jit(qnetwork_forward)(actions, states, params_q1, params_q2)
    jax.block_until_ready((q1, q2))
    assert q1.shape == (B, 1) and q2.shape == (B, 1)
    print("KERNEL_OK")
</pallas_src>

<mosaic_0001>
module attributes {stable_mosaic.version = 11 : i64} {
  func.func @_qtower_kernel(%arg0: i32, %arg1: memref<1x32x32xf32, #tpu.memory_space<vmem>>, %arg2: memref<1x1x32xf32, #tpu.memory_space<vmem>>, %arg3: memref<1x1x32xf32, #tpu.memory_space<vmem>>, %arg4: memref<1x2x32x96xf32, #tpu.memory_space<vmem>>, %arg5: memref<1x2x1x96xf32, #tpu.memory_space<vmem>>, %arg6: memref<1x2x32x32xf32, #tpu.memory_space<vmem>>, %arg7: memref<1x2x1x32xf32, #tpu.memory_space<vmem>>, %arg8: memref<1x2x1x32xf32, #tpu.memory_space<vmem>>, %arg9: memref<1x2x1x32xf32, #tpu.memory_space<vmem>>, %arg10: memref<1x2x32x128xf32, #tpu.memory_space<vmem>>, %arg11: memref<1x2x1x128xf32, #tpu.memory_space<vmem>>, %arg12: memref<1x2x128x32xf32, #tpu.memory_space<vmem>>, %arg13: memref<1x2x1x32xf32, #tpu.memory_space<vmem>>, %arg14: memref<1x2x1x32xf32, #tpu.memory_space<vmem>>, %arg15: memref<1x2x1x32xf32, #tpu.memory_space<vmem>>, %arg16: memref<1x32x32xf32, #tpu.memory_space<vmem>>, %arg17: memref<1x1x32xf32, #tpu.memory_space<vmem>>, %arg18: memref<1x32x1xf32, #tpu.memory_space<vmem>>, %arg19: memref<1x1x1xf32, #tpu.memory_space<vmem>>, %arg20: memref<1x2x1xf32, #tpu.memory_space<vmem>>) attributes {dimension_semantics = [#tpu.dimension_semantics<parallel>], iteration_bounds = array<i64: 2>, scalar_prefetch = 0 : i64, scratch_operands = 0 : i64, tpu.core_type = #tpu.core_type<tc>, window_params = [{transform_indices = @transform_0, window_bounds = array<i64: 1, 32, 32>}, {transform_indices = @transform_1, window_bounds = array<i64: 1, 1, 32>}, {transform_indices = @transform_2, window_bounds = array<i64: 1, 1, 32>}, {transform_indices = @transform_3, window_bounds = array<i64: 1, 2, 32, 96>}, {transform_indices = @transform_4, window_bounds = array<i64: 1, 2, 1, 96>}, {transform_indices = @transform_5, window_bounds = array<i64: 1, 2, 32, 32>}, {transform_indices = @transform_6, window_bounds = array<i64: 1, 2, 1, 32>}, {transform_indices = @transform_7, window_bounds = array<i64: 1, 2, 1, 32>}, {transform_indices = @transform_8, window_bounds = array<i64: 1, 2, 1, 32>}, {transform_indices = @transform_9, window_bounds = array<i64: 1, 2, 32, 128>}, {transform_indices = @transform_10, window_bounds = array<i64: 1, 2, 1, 128>}, {transform_indices = @transform_11, window_bounds = array<i64: 1, 2, 128, 32>}, {transform_indices = @transform_12, window_bounds = array<i64: 1, 2, 1, 32>}, {transform_indices = @transform_13, window_bounds = array<i64: 1, 2, 1, 32>}, {transform_indices = @transform_14, window_bounds = array<i64: 1, 2, 1, 32>}, {transform_indices = @transform_15, window_bounds = array<i64: 1, 32, 32>}, {transform_indices = @transform_16, window_bounds = array<i64: 1, 1, 32>}, {transform_indices = @transform_17, window_bounds = array<i64: 1, 32, 1>}, {transform_indices = @transform_18, window_bounds = array<i64: 1, 1, 1>}, {transform_indices = @transform_19, window_bounds = array<i64: 1, 2, 1>}]} {
    %c0 = arith.constant 0 : index
    %c0_0 = arith.constant 0 : index
    %c0_1 = arith.constant 0 : index
    %0 = vector.load %arg1[%c0, %c0_0, %c0_1] : memref<1x32x32xf32, #tpu.memory_space<vmem>>, vector<1x32x32xf32>
    %1 = vector.shape_cast %0 : vector<1x32x32xf32> to vector<32x32xf32>
    %c0_2 = arith.constant 0 : index
    %c0_3 = arith.constant 0 : index
    %c0_4 = arith.constant 0 : index
    %2 = vector.load %arg2[%c0_2, %c0_3, %c0_4] : memref<1x1x32xf32, #tpu.memory_space<vmem>>, vector<1x1x32xf32>
    %3 = vector.shape_cast %2 : vector<1x1x32xf32> to vector<1x32xf32>
    %c0_5 = arith.constant 0 : index
    %c0_6 = arith.constant 0 : index
    %c0_7 = arith.constant 0 : index
    %4 = vector.load %arg3[%c0_5, %c0_6, %c0_7] : memref<1x1x32xf32, #tpu.memory_space<vmem>>, vector<1x1x32xf32>
    %5 = vector.shape_cast %4 : vector<1x1x32xf32> to vector<1x32xf32>
    %cst = arith.constant dense<0.000000e+00> : vector<32xf32>
    %6 = vector.multi_reduction <add>, %1, %cst [1] : vector<32x32xf32> to vector<32xf32>
    %7 = vector.shape_cast %6 : vector<32xf32> to vector<32x1xf32>
    %cst_8 = arith.constant 3.200000e+01 : f32
    %8 = vector.broadcast %cst_8 : f32 to vector<32x1xf32>
    %9 = arith.divf %7, %8 : vector<32x1xf32>
    %10 = vector.broadcast %9 : vector<32x1xf32> to vector<32x32xf32>
    %11 = arith.subf %1, %10 : vector<32x32xf32>
    %12 = arith.mulf %11, %11 : vector<32x32xf32>
    %cst_9 = arith.constant dense<0.000000e+00> : vector<32xf32>
    %13 = vector.multi_reduction <add>, %12, %cst_9 [1] : vector<32x32xf32> to vector<32xf32>
    %14 = vector.shape_cast %13 : vector<32xf32> to vector<32x1xf32>
    %cst_10 = arith.constant 3.200000e+01 : f32
    %15 = vector.broadcast %cst_10 : f32 to vector<32x1xf32>
    %16 = arith.divf %14, %15 : vector<32x1xf32>
    %cst_11 = arith.constant 9.99999996E-13 : f32
    %17 = vector.broadcast %cst_11 : f32 to vector<32x1xf32>
    %18 = arith.addf %16, %17 : vector<32x1xf32>
    %19 = math.rsqrt %18 : vector<32x1xf32>
    %20 = vector.broadcast %19 : vector<32x1xf32> to vector<32x32xf32>
    %21 = arith.mulf %11, %20 : vector<32x32xf32>
    %22 = vector.broadcast %3 : vector<1x32xf32> to vector<32x32xf32>
    %23 = arith.mulf %21, %22 : vector<32x32xf32>
    %24 = vector.broadcast %5 : vector<1x32xf32> to vector<32x32xf32>
    %25 = arith.addf %23, %24 : vector<32x32xf32>
    %c0_12 = arith.constant 0 : index
    %c0_13 = arith.constant 0 : index
    %c0_14 = arith.constant 0 : index
    %c0_15 = arith.constant 0 : index
    %26 = vector.load %arg4[%c0_12, %c0_13, %c0_14, %c0_15] : memref<1x2x32x96xf32, #tpu.memory_space<vmem>>, vector<1x1x32x96xf32>
    %27 = vector.shape_cast %26 : vector<1x1x32x96xf32> to vector<32x96xf32>
    %cst_16 = arith.constant dense<0.000000e+00> : vector<32x96xf32>
    %28 = tpu.matmul %25, %27, %cst_16 {dimension_numbers = #tpu.dot_dimension_numbers<[1], [0], [0], [1], [0, 0, 1, 1], [], []>} : vector<32x32xf32>, vector<32x96xf32>, vector<32x96xf32> -> vector<32x96xf32>
    %c0_17 = arith.constant 0 : index
    %c0_18 = arith.constant 0 : index
    %c0_19 = arith.constant 0 : index
    %c0_20 = arith.constant 0 : index
    %29 = vector.load %arg5[%c0_17, %c0_18, %c0_19, %c0_20] : memref<1x2x1x96xf32, #tpu.memory_space<vmem>>, vector<1x1x1x96xf32>
    %30 = vector.shape_cast %29 : vector<1x1x1x96xf32> to vector<1x96xf32>
    %31 = vector.broadcast %30 : vector<1x96xf32> to vector<32x96xf32>
    %32 = arith.addf %28, %31 : vector<32x96xf32>
    %c0_21 = arith.constant 0 : index
    %c0_22 = arith.constant 0 : index
    %c0_23 = arith.constant 0 : index
    %c0_24 = arith.constant 0 : index
    %33 = vector.load %arg6[%c0_21, %c0_22, %c0_23, %c0_24] : memref<1x2x32x32xf32, #tpu.memory_space<vmem>>, vector<1x1x32x32xf32>
    %34 = vector.shape_cast %33 : vector<1x1x32x32xf32> to vector<32x32xf32>
    %cst_25 = arith.constant 0.000000e+00 : f32
    %35 = vector.broadcast %cst_25 : f32 to vector<16x32xf32>
    %36 = vector.extract_strided_slice %32 {offsets = [0, 0], sizes = [16, 8], strides = [1, 1]} : vector<32x96xf32> to vector<16x8xf32>
    %37 = vector.extract_strided_slice %32 {offsets = [0, 32], sizes = [16, 8], strides = [1, 1]} : vector<32x96xf32> to vector<16x8xf32>
    %38 = vector.extract_strided_slice %32 {offsets = [0, 64], sizes = [16, 8], strides = [1, 1]} : vector<32x96xf32> to vector<16x8xf32>
    %cst_26 = arith.constant dense<0.000000e+00> : vector<16x16xf32>
    %39 = tpu.matmul %36, %37, %cst_26 {dimension_numbers = #tpu.dot_dimension_numbers<[1], [1], [0], [0], [0, 0, 1, 0], [], []>} : vector<16x8xf32>, vector<16x8xf32>, vector<16x16xf32> -> vector<16x16xf32>
    %cst_27 = arith.constant 0.353553385 : f32
    %40 = vector.broadcast %cst_27 : f32 to vector<16x16xf32>
    %41 = arith.mulf %39, %40 : vector<16x16xf32>
    %cst_28 = arith.constant dense<0xFF800000> : vector<16xf32>
    %42 = vector.multi_reduction <maximumf>, %41, %cst_28 [1] : vector<16x16xf32> to vector<16xf32>
    %43 = vector.shape_cast %42 : vector<16xf32> to vector<16x1xf32>
    %44 = vector.broadcast %43 : vector<16x1xf32> to vector<16x16xf32>
    %45 = arith.subf %41, %44 : vector<16x16xf32>
    %46 = math.exp %45 : vector<16x16xf32>
    %cst_29 = arith.constant dense<0.000000e+00> : vector<16xf32>
    %47 = vector.multi_reduction <add>, %46, %cst_29 [1] : vector<16x16xf32> to vector<16xf32>
    %48 = vector.shape_cast %47 : vector<16xf32> to vector<16x1xf32>
    %49 = tpu.reciprocal %48 {approx = true} : vector<16x1xf32> -> vector<16x1xf32>
    %50 = vector.broadcast %49 : vector<16x1xf32> to vector<16x16xf32>
    %51 = arith.mulf %46, %50 : vector<16x16xf32>
    %cst_30 = arith.constant dense<0.000000e+00> : vector<16x8xf32>
    %52 = tpu.matmul %51, %38, %cst_30 {dimension_numbers = #tpu.dot_dimension_numbers<[1], [0], [0], [1], [0, 0, 1, 1], [], []>} : vector<16x16xf32>, vector<16x8xf32>, vector<16x8xf32> -> vector<16x8xf32>
    %53 = vector.extract_strided_slice %34 {offsets = [0, 0], sizes = [8, 32], strides = [1, 1]} : vector<32x32xf32> to vector<8x32xf32>
    %cst_31 = arith.constant dense<0.000000e+00> : vector<16x32xf32>
    %54 = tpu.matmul %52, %53, %cst_31 {dimension_numbers = #tpu.dot_dimension_numbers<[1], [0], [0], [1], [0, 0, 1, 1], [], []>} : vector<16x8xf32>, vector<8x32xf32>, vector<16x32xf32> -> vector<16x32xf32>
    %55 = arith.addf %35, %54 : vector<16x32xf32>
    %56 = vector.extract_strided_slice %32 {offsets = [0, 8], sizes = [16, 8], strides = [1, 1]} : vector<32x96xf32> to vector<16x8xf32>
    %57 = vector.extract_strided_slice %32 {offsets = [0, 40], sizes = [16, 8], strides = [1, 1]} : vector<32x96xf32> to vector<16x8xf32>
    %58 = vector.extract_strided_slice %32 {offsets = [0, 72], sizes = [16, 8], strides = [1, 1]} : vector<32x96xf32> to vector<16x8xf32>
    %cst_32 = arith.constant dense<0.000000e+00> : vector<16x16xf32>
    %59 = tpu.matmul %56, %57, %cst_32 {dimension_numbers = #tpu.dot_dimension_numbers<[1], [1], [0], [0], [0, 0, 1, 0], [], []>} : vector<16x8xf32>, vector<16x8xf32>, vector<16x16xf32> -> vector<16x16xf32>
    %cst_33 = arith.constant 0.353553385 : f32
    %60 = vector.broadcast %cst_33 : f32 to vector<16x16xf32>
    %61 = arith.mulf %59, %60 : vector<16x16xf32>
    %cst_34 = arith.constant dense<0xFF800000> : vector<16xf32>
    %62 = vector.multi_reduction <maximumf>, %61, %cst_34 [1] : vector<16x16xf32> to vector<16xf32>
    %63 = vector.shape_cast %62 : vector<16xf32> to vector<16x1xf32>
    %64 = vector.broadcast %63 : vector<16x1xf32> to vector<16x16xf32>
    %65 = arith.subf %61, %64 : vector<16x16xf32>
    %66 = math.exp %65 : vector<16x16xf32>
    %cst_35 = arith.constant dense<0.000000e+00> : vector<16xf32>
    %67 = vector.multi_reduction <add>, %66, %cst_35 [1] : vector<16x16xf32> to vector<16xf32>
    %68 = vector.shape_cast %67 : vector<16xf32> to vector<16x1xf32>
    %69 = tpu.reciprocal %68 {approx = true} : vector<16x1xf32> -> vector<16x1xf32>
    %70 = vector.broadcast %69 : vector<16x1xf32> to vector<16x16xf32>
    %71 = arith.mulf %66, %70 : vector<16x16xf32>
    %cst_36 = arith.constant dense<0.000000e+00> : vector<16x8xf32>
    %72 = tpu.matmul %71, %58, %cst_36 {dimension_numbers = #tpu.dot_dimension_numbers<[1], [0], [0], [1], [0, 0, 1, 1], [], []>} : vector<16x16xf32>, vector<16x8xf32>, vector<16x8xf32> -> vector<16x8xf32>
    %73 = vector.extract_strided_slice %34 {offsets = [8, 0], sizes = [8, 32], strides = [1, 1]} : vector<32x32xf32> to vector<8x32xf32>
    %cst_37 = arith.constant dense<0.000000e+00> : vector<16x32xf32>
    %74 = tpu.matmul %72, %73, %cst_37 {dimension_numbers = #tpu.dot_dimension_numbers<[1], [0], [0], [1], [0, 0, 1, 1], [], []>} : vector<16x8xf32>, vector<8x32xf32>, vector<16x32xf32> -> vector<16x32xf32>
    %75 = arith.addf %55, %74 : vector<16x32xf32>
    %76 = vector.extract_strided_slice %32 {offsets = [0, 16], sizes = [16, 8], strides = [1, 1]} : vector<32x96xf32> to vector<16x8xf32>
    %77 = vector.extract_strided_slice %32 {offsets = [0, 48], sizes = [16, 8], strides = [1, 1]} : vector<32x96xf32> to vector<16x8xf32>
    %78 = vector.extract_strided_slice %32 {offsets = [0, 80], sizes = [16, 8], strides = [1, 1]} : vector<32x96xf32> to vector<16x8xf32>
    %cst_38 = arith.constant dense<0.000000e+00> : vector<16x16xf32>
    %79 = tpu.matmul %76, %77, %cst_38 {dimension_numbers = #tpu.dot_dimension_numbers<[1], [1], [0], [0], [0, 0, 1, 0], [], []>} : vector<16x8xf32>, vector<16x8xf32>, vector<16x16xf32> -> vector<16x16xf32>
    %cst_39 = arith.constant 0.353553385 : f32
    %80 = vector.broadcast %cst_39 : f32 to vector<16x16xf32>
    %81 = arith.mulf %79, %80 : vector<16x16xf32>
    %cst_40 = arith.constant dense<0xFF800000> : vector<16xf32>
    %82 = vector.multi_reduction <maximumf>, %81, %cst_40 [1] : vector<16x16xf32> to vector<16xf32>
    %83 = vector.shape_cast %82 : vector<16xf32> to vector<16x1xf32>
    %84 = vector.broadcast %83 : vector<16x1xf32> to vector<16x16xf32>
    %85 = arith.subf %81, %84 : vector<16x16xf32>
    %86 = math.exp %85 : vector<16x16xf32>
    %cst_41 = arith.constant dense<0.000000e+00> : vector<16xf32>
    %87 = vector.multi_reduction <add>, %86, %cst_41 [1] : vector<16x16xf32> to vector<16xf32>
    %88 = vector.shape_cast %87 : vector<16xf32> to vector<16x1xf32>
    %89 = tpu.reciprocal %88 {approx = true} : vector<16x1xf32> -> vector<16x1xf32>
    %90 = vector.broadcast %89 : vector<16x1xf32> to vector<16x16xf32>
    %91 = arith.mulf %86, %90 : vector<16x16xf32>
    %cst_42 = arith.constant dense<0.000000e+00> : vector<16x8xf32>
    %92 = tpu.matmul %91, %78, %cst_42 {dimension_numbers = #tpu.dot_dimension_numbers<[1], [0], [0], [1], [0, 0, 1, 1], [], []>} : vector<16x16xf32>, vector<16x8xf32>, vector<16x8xf32> -> vector<16x8xf32>
    %93 = vector.extract_strided_slice %34 {offsets = [16, 0], sizes = [8, 32], strides = [1, 1]} : vector<32x32xf32> to vector<8x32xf32>
    %cst_43 = arith.constant dense<0.000000e+00> : vector<16x32xf32>
    %94 = tpu.matmul %92, %93, %cst_43 {dimension_numbers = #tpu.dot_dimension_numbers<[1], [0], [0], [1], [0, 0, 1, 1], [], []>} : vector<16x8xf32>, vector<8x32xf32>, vector<16x32xf32> -> vector<16x32xf32>
    %95 = arith.addf %75, %94 : vector<16x32xf32>
    %96 = vector.extract_strided_slice %32 {offsets = [0, 24], sizes = [16, 8], strides = [1, 1]} : vector<32x96xf32> to vector<16x8xf32>
    %97 = vector.extract_strided_slice %32 {offsets = [0, 56], sizes = [16, 8], strides = [1, 1]} : vector<32x96xf32> to vector<16x8xf32>
    %98 = vector.extract_strided_slice %32 {offsets = [0, 88], sizes = [16, 8], strides = [1, 1]} : vector<32x96xf32> to vector<16x8xf32>
    %cst_44 = arith.constant dense<0.000000e+00> : vector<16x16xf32>
    %99 = tpu.matmul %96, %97, %cst_44 {dimension_numbers = #tpu.dot_dimension_numbers<[1], [1], [0], [0], [0, 0, 1, 0], [], []>} : vector<16x8xf32>, vector<16x8xf32>, vector<16x16xf32> -> vector<16x16xf32>
    %cst_45 = arith.constant 0.353553385 : f32
    %100 = vector.broadcast %cst_45 : f32 to vector<16x16xf32>
    %101 = arith.mulf %99, %100 : vector<16x16xf32>
    %cst_46 = arith.constant dense<0xFF800000> : vector<16xf32>
    %102 = vector.multi_reduction <maximumf>, %101, %cst_46 [1] : vector<16x16xf32> to vector<16xf32>
    %103 = vector.shape_cast %102 : vector<16xf32> to vector<16x1xf32>
    %104 = vector.broadcast %103 : vector<16x1xf32> to vector<16x16xf32>
    %105 = arith.subf %101, %104 : vector<16x16xf32>
    %106 = math.exp %105 : vector<16x16xf32>
    %cst_47 = arith.constant dense<0.000000e+00> : vector<16xf32>
    %107 = vector.multi_reduction <add>, %106, %cst_47 [1] : vector<16x16xf32> to vector<16xf32>
    %108 = vector.shape_cast %107 : vector<16xf32> to vector<16x1xf32>
    %109 = tpu.reciprocal %108 {approx = true} : vector<16x1xf32> -> vector<16x1xf32>
    %110 = vector.broadcast %109 : vector<16x1xf32> to vector<16x16xf32>
    %111 = arith.mulf %106, %110 : vector<16x16xf32>
    %cst_48 = arith.constant dense<0.000000e+00> : vector<16x8xf32>
    %112 = tpu.matmul %111, %98, %cst_48 {dimension_numbers = #tpu.dot_dimension_numbers<[1], [0], [0], [1], [0, 0, 1, 1], [], []>} : vector<16x16xf32>, vector<16x8xf32>, vector<16x8xf32> -> vector<16x8xf32>
    %113 = vector.extract_strided_slice %34 {offsets = [24, 0], sizes = [8, 32], strides = [1, 1]} : vector<32x32xf32> to vector<8x32xf32>
    %cst_49 = arith.constant dense<0.000000e+00> : vector<16x32xf32>
    %114 = tpu.matmul %112, %113, %cst_49 {dimension_numbers = #tpu.dot_dimension_numbers<[1], [0], [0], [1], [0, 0, 1, 1], [], []>} : vector<16x8xf32>, vector<8x32xf32>, vector<16x32xf32> -> vector<16x32xf32>
    %115 = arith.addf %95, %114 : vector<16x32xf32>
    %cst_50 = arith.constant 0.000000e+00 : f32
    %116 = vector.broadcast %cst_50 : f32 to vector<16x32xf32>
    %117 = vector.extract_strided_slice %32 {offsets = [16, 0], sizes = [16, 8], strides = [1, 1]} : vector<32x96xf32> to vector<16x8xf32>
    %118 = vector.extract_strided_slice %32 {offsets = [16, 32], sizes = [16, 8], strides = [1, 1]} : vector<32x96xf32> to vector<16x8xf32>
    %119 = vector.extract_strided_slice %32 {offsets = [16, 64], sizes = [16, 8], strides = [1, 1]} : vector<32x96xf32> to vector<16x8xf32>
    %cst_51 = arith.constant dense<0.000000e+00> : vector<16x16xf32>
    %120 = tpu.matmul %117, %118, %cst_51 {dimension_numbers = #tpu.dot_dimension_numbers<[1], [1], [0], [0], [0, 0, 1, 0], [], []>} : vector<16x8xf32>, vector<16x8xf32>, vector<16x16xf32> -> vector<16x16xf32>
    %cst_52 = arith.constant 0.353553385 : f32
    %121 = vector.broadcast %cst_52 : f32 to vector<16x16xf32>
    %122 = arith.mulf %120, %121 : vector<16x16xf32>
    %cst_53 = arith.constant dense<0xFF800000> : vector<16xf32>
    %123 = vector.multi_reduction <maximumf>, %122, %cst_53 [1] : vector<16x16xf32> to vector<16xf32>
    %124 = vector.shape_cast %123 : vector<16xf32> to vector<16x1xf32>
    %125 = vector.broadcast %124 : vector<16x1xf32> to vector<16x16xf32>
    %126 = arith.subf %122, %125 : vector<16x16xf32>
    %127 = math.exp %126 : vector<16x16xf32>
    %cst_54 = arith.constant dense<0.000000e+00> : vector<16xf32>
    %128 = vector.multi_reduction <add>, %127, %cst_54 [1] : vector<16x16xf32> to vector<16xf32>
    %129 = vector.shape_cast %128 : vector<16xf32> to vector<16x1xf32>
    %130 = tpu.reciprocal %129 {approx = true} : vector<16x1xf32> -> vector<16x1xf32>
    %131 = vector.broadcast %130 : vector<16x1xf32> to vector<16x16xf32>
    %132 = arith.mulf %127, %131 : vector<16x16xf32>
    %cst_55 = arith.constant dense<0.000000e+00> : vector<16x8xf32>
    %133 = tpu.matmul %132, %119, %cst_55 {dimension_numbers = #tpu.dot_dimension_numbers<[1], [0], [0], [1], [0, 0, 1, 1], [], []>} : vector<16x16xf32>, vector<16x8xf32>, vector<16x8xf32> -> vector<16x8xf32>
    %134 = vector.extract_strided_slice %34 {offsets = [0, 0], sizes = [8, 32], strides = [1, 1]} : vector<32x32xf32> to vector<8x32xf32>
    %cst_56 = arith.constant dense<0.000000e+00> : vector<16x32xf32>
    %135 = tpu.matmul %133, %134, %cst_56 {dimension_numbers = #tpu.dot_dimension_numbers<[1], [0], [0], [1], [0, 0, 1, 1], [], []>} : vector<16x8xf32>, vector<8x32xf32>, vector<16x32xf32> -> vector<16x32xf32>
    %136 = arith.addf %116, %135 : vector<16x32xf32>
    %137 = vector.extract_strided_slice %32 {offsets = [16, 8], sizes = [16, 8], strides = [1, 1]} : vector<32x96xf32> to vector<16x8xf32>
    %138 = vector.extract_strided_slice %32 {offsets = [16, 40], sizes = [16, 8], strides = [1, 1]} : vector<32x96xf32> to vector<16x8xf32>
    %139 = vector.extract_strided_slice %32 {offsets = [16, 72], sizes = [16, 8], strides = [1, 1]} : vector<32x96xf32> to vector<16x8xf32>
    %cst_57 = arith.constant dense<0.000000e+00> : vector<16x16xf32>
    %140 = tpu.matmul %137, %138, %cst_57 {dimension_numbers = #tpu.dot_dimension_numbers<[1], [1], [0], [0], [0, 0, 1, 0], [], []>} : vector<16x8xf32>, vector<16x8xf32>, vector<16x16xf32> -> vector<16x16xf32>
    %cst_58 = arith.constant 0.353553385 : f32
    %141 = vector.broadcast %cst_58 : f32 to vector<16x16xf32>
    %142 = arith.mulf %140, %141 : vector<16x16xf32>
    %cst_59 = arith.constant dense<0xFF800000> : vector<16xf32>
    %143 = vector.multi_reduction <maximumf>, %142, %cst_59 [1] : vector<16x16xf32> to vector<16xf32>
    %144 = vector.shape_cast %143 : vector<16xf32> to vector<16x1xf32>
    %145 = vector.broadcast %144 : vector<16x1xf32> to vector<16x16xf32>
    %146 = arith.subf %142, %145 : vector<16x16xf32>
    %147 = math.exp %146 : vector<16x16xf32>
    %cst_60 = arith.constant dense<0.000000e+00> : vector<16xf32>
    %148 = vector.multi_reduction <add>, %147, %cst_60 [1] : vector<16x16xf32> to vector<16xf32>
    %149 = vector.shape_cast %148 : vector<16xf32> to vector<16x1xf32>
    %150 = tpu.reciprocal %149 {approx = true} : vector<16x1xf32> -> vector<16x1xf32>
    %151 = vector.broadcast %150 : vector<16x1xf32> to vector<16x16xf32>
    %152 = arith.mulf %147, %151 : vector<16x16xf32>
    %cst_61 = arith.constant dense<0.000000e+00> : vector<16x8xf32>
    %153 = tpu.matmul %152, %139, %cst_61 {dimension_numbers = #tpu.dot_dimension_numbers<[1], [0], [0], [1], [0, 0, 1, 1], [], []>} : vector<16x16xf32>, vector<16x8xf32>, vector<16x8xf32> -> vector<16x8xf32>
    %154 = vector.extract_strided_slice %34 {offsets = [8, 0], sizes = [8, 32], strides = [1, 1]} : vector<32x32xf32> to vector<8x32xf32>
    %cst_62 = arith.constant dense<0.000000e+00> : vector<16x32xf32>
    %155 = tpu.matmul %153, %154, %cst_62 {dimension_numbers = #tpu.dot_dimension_numbers<[1], [0], [0], [1], [0, 0, 1, 1], [], []>} : vector<16x8xf32>, vector<8x32xf32>, vector<16x32xf32> -> vector<16x32xf32>
    %156 = arith.addf %136, %155 : vector<16x32xf32>
    %157 = vector.extract_strided_slice %32 {offsets = [16, 16], sizes = [16, 8], strides = [1, 1]} : vector<32x96xf32> to vector<16x8xf32>
    %158 = vector.extract_strided_slice %32 {offsets = [16, 48], sizes = [16, 8], strides = [1, 1]} : vector<32x96xf32> to vector<16x8xf32>
    %159 = vector.extract_strided_slice %32 {offsets = [16, 80], sizes = [16, 8], strides = [1, 1]} : vector<32x96xf32> to vector<16x8xf32>
    %cst_63 = arith.constant dense<0.000000e+00> : vector<16x16xf32>
    %160 = tpu.matmul %157, %158, %cst_63 {dimension_numbers = #tpu.dot_dimension_numbers<[1], [1], [0], [0], [0, 0, 1, 0], [], []>} : vector<16x8xf32>, vector<16x8xf32>, vector<16x16xf32> -> vector<16x16xf32>
    %cst_64 = arith.constant 0.353553385 : f32
    %161 = vector.broadcast %cst_64 : f32 to vector<16x16xf32>
    %162 = arith.mulf %160, %161 : vector<16x16xf32>
    %cst_65 = arith.constant dense<0xFF800000> : vector<16xf32>
    %163 = vector.multi_reduction <maximumf>, %162, %cst_65 [1] : vector<16x16xf32> to vector<16xf32>
    %164 = vector.shape_cast %163 : vector<16xf32> to vector<16x1xf32>
    %165 = vector.broadcast %164 : vector<16x1xf32> to vector<16x16xf32>
    %166 = arith.subf %162, %165 : vector<16x16xf32>
    %167 = math.exp %166 : vector<16x16xf32>
    %cst_66 = arith.constant dense<0.000000e+00> : vector<16xf32>
    %168 = vector.multi_reduction <add>, %167, %cst_66 [1] : vector<16x16xf32> to vector<16xf32>
    %169 = vector.shape_cast %168 : vector<16xf32> to vector<16x1xf32>
    %170 = tpu.reciprocal %169 {approx = true} : vector<16x1xf32> -> vector<16x1xf32>
    %171 = vector.broadcast %170 : vector<16x1xf32> to vector<16x16xf32>
    %172 = arith.mulf %167, %171 : vector<16x16xf32>
    %cst_67 = arith.constant dense<0.000000e+00> : vector<16x8xf32>
    %173 = tpu.matmul %172, %159, %cst_67 {dimension_numbers = #tpu.dot_dimension_numbers<[1], [0], [0], [1], [0, 0, 1, 1], [], []>} : vector<16x16xf32>, vector<16x8xf32>, vector<16x8xf32> -> vector<16x8xf32>
    %174 = vector.extract_strided_slice %34 {offsets = [16, 0], sizes = [8, 32], strides = [1, 1]} : vector<32x32xf32> to vector<8x32xf32>
    %cst_68 = arith.constant dense<0.000000e+00> : vector<16x32xf32>
    %175 = tpu.matmul %173, %174, %cst_68 {dimension_numbers = #tpu.dot_dimension_numbers<[1], [0], [0], [1], [0, 0, 1, 1], [], []>} : vector<16x8xf32>, vector<8x32xf32>, vector<16x32xf32> -> vector<16x32xf32>
    %176 = arith.addf %156, %175 : vector<16x32xf32>
    %177 = vector.extract_strided_slice %32 {offsets = [16, 24], sizes = [16, 8], strides = [1, 1]} : vector<32x96xf32> to vector<16x8xf32>
    %178 = vector.extract_strided_slice %32 {offsets = [16, 56], sizes = [16, 8], strides = [1, 1]} : vector<32x96xf32> to vector<16x8xf32>
    %179 = vector.extract_strided_slice %32 {offsets = [16, 88], sizes = [16, 8], strides = [1, 1]} : vector<32x96xf32> to vector<16x8xf32>
    %cst_69 = arith.constant dense<0.000000e+00> : vector<16x16xf32>
    %180 = tpu.matmul %177, %178, %cst_69 {dimension_numbers = #tpu.dot_dimension_numbers<[1], [1], [0], [0], [0, 0, 1, 0], [], []>} : vector<16x8xf32>, vector<16x8xf32>, vector<16x16xf32> -> vector<16x16xf32>
    %cst_70 = arith.constant 0.353553385 : f32
    %181 = vector.broadcast %cst_70 : f32 to vector<16x16xf32>
    %182 = arith.mulf %180, %181 : vector<16x16xf32>
    %cst_71 = arith.constant dense<0xFF800000> : vector<16xf32>
    %183 = vector.multi_reduction <maximumf>, %182, %cst_71 [1] : vector<16x16xf32> to vector<16xf32>
    %184 = vector.shape_cast %183 : vector<16xf32> to vector<16x1xf32>
    %185 = vector.broadcast %184 : vector<16x1xf32> to vector<16x16xf32>
    %186 = arith.subf %182, %185 : vector<16x16xf32>
    %187 = math.exp %186 : vector<16x16xf32>
    %cst_72 = arith.constant dense<0.000000e+00> : vector<16xf32>
    %188 = vector.multi_reduction <add>, %187, %cst_72 [1] : vector<16x16xf32> to vector<16xf32>
    %189 = vector.shape_cast %188 : vector<16xf32> to vector<16x1xf32>
    %190 = tpu.reciprocal %189 {approx = true} : vector<16x1xf32> -> vector<16x1xf32>
    %191 = vector.broadcast %190 : vector<16x1xf32> to vector<16x16xf32>
    %192 = arith.mulf %187, %191 : vector<16x16xf32>
    %cst_73 = arith.constant dense<0.000000e+00> : vector<16x8xf32>
    %193 = tpu.matmul %192, %179, %cst_73 {dimension_numbers = #tpu.dot_dimension_numbers<[1], [0], [0], [1], [0, 0, 1, 1], [], []>} : vector<16x16xf32>, vector<16x8xf32>, vector<16x8xf32> -> vector<16x8xf32>
    %194 = vector.extract_strided_slice %34 {offsets = [24, 0], sizes = [8, 32], strides = [1, 1]} : vector<32x32xf32> to vector<8x32xf32>
    %cst_74 = arith.constant dense<0.000000e+00> : vector<16x32xf32>
    %195 = tpu.matmul %193, %194, %cst_74 {dimension_numbers = #tpu.dot_dimension_numbers<[1], [0], [0], [1], [0, 0, 1, 1], [], []>} : vector<16x8xf32>, vector<8x32xf32>, vector<16x32xf32> -> vector<16x32xf32>
    %196 = arith.addf %176, %195 : vector<16x32xf32>
    %197 = tpu.concatenate %115, %196 in 0 : vector<16x32xf32>, vector<16x32xf32> -> vector<32x32xf32>
    %c0_75 = arith.constant 0 : index
    %c0_76 = arith.constant 0 : index
    %c0_77 = arith.constant 0 : index
    %c0_78 = arith.constant 0 : index
    %198 = vector.load %arg7[%c0_75, %c0_76, %c0_77, %c0_78] : memref<1x2x1x32xf32, #tpu.memory_space<vmem>>, vector<1x1x1x32xf32>
    %199 = vector.shape_cast %198 : vector<1x1x1x32xf32> to vector<1x32xf32>
    %200 = vector.broadcast %199 : vector<1x32xf32> to vector<32x32xf32>
    %201 = arith.addf %197, %200 : vector<32x32xf32>
    %202 = arith.addf %201, %25 : vector<32x32xf32>
    %c0_79 = arith.constant 0 : index
    %c0_80 = arith.constant 0 : index
    %c0_81 = arith.constant 0 : index
    %c0_82 = arith.constant 0 : index
    %203 = vector.load %arg8[%c0_79, %c0_80, %c0_81, %c0_82] : memref<1x2x1x32xf32, #tpu.memory_space<vmem>>, vector<1x1x1x32xf32>
    %204 = vector.shape_cast %203 : vector<1x1x1x32xf32> to vector<1x32xf32>
    %c0_83 = arith.constant 0 : index
    %c0_84 = arith.constant 0 : index
    %c0_85 = arith.constant 0 : index
    %c0_86 = arith.constant 0 : index
    %205 = vector.load %arg9[%c0_83, %c0_84, %c0_85, %c0_86] : memref<1x2x1x32xf32, #tpu.memory_space<vmem>>, vector<1x1x1x32xf32>
    %206 = vector.shape_cast %205 : vector<1x1x1x32xf32> to vector<1x32xf32>
    %cst_87 = arith.constant dense<0.000000e+00> : vector<32xf32>
    %207 = vector.multi_reduction <add>, %202, %cst_87 [1] : vector<32x32xf32> to vector<32xf32>
    %208 = vector.shape_cast %207 : vector<32xf32> to vector<32x1xf32>
    %cst_88 = arith.constant 3.200000e+01 : f32
    %209 = vector.broadcast %cst_88 : f32 to vector<32x1xf32>
    %210 = arith.divf %208, %209 : vector<32x1xf32>
    %211 = vector.broadcast %210 : vector<32x1xf32> to vector<32x32xf32>
    %212 = arith.subf %202, %211 : vector<32x32xf32>
    %213 = arith.mulf %212, %212 : vector<32x32xf32>
    %cst_89 = arith.constant dense<0.000000e+00> : vector<32xf32>
    %214 = vector.multi_reduction <add>, %213, %cst_89 [1] : vector<32x32xf32> to vector<32xf32>
    %215 = vector.shape_cast %214 : vector<32xf32> to vector<32x1xf32>
    %cst_90 = arith.constant 3.200000e+01 : f32
    %216 = vector.broadcast %cst_90 : f32 to vector<32x1xf32>
    %217 = arith.divf %215, %216 : vector<32x1xf32>
    %cst_91 = arith.constant 9.99999996E-13 : f32
    %218 = vector.broadcast %cst_91 : f32 to vector<32x1xf32>
    %219 = arith.addf %217, %218 : vector<32x1xf32>
    %220 = math.rsqrt %219 : vector<32x1xf32>
    %221 = vector.broadcast %220 : vector<32x1xf32> to vector<32x32xf32>
    %222 = arith.mulf %212, %221 : vector<32x32xf32>
    %223 = vector.broadcast %204 : vector<1x32xf32> to vector<32x32xf32>
    %224 = arith.mulf %222, %223 : vector<32x32xf32>
    %225 = vector.broadcast %206 : vector<1x32xf32> to vector<32x32xf32>
    %226 = arith.addf %224, %225 : vector<32x32xf32>
    %c0_92 = arith.constant 0 : index
    %c0_93 = arith.constant 0 : index
    %c0_94 = arith.constant 0 : index
    %c0_95 = arith.constant 0 : index
    %227 = vector.load %arg10[%c0_92, %c0_93, %c0_94, %c0_95] : memref<1x2x32x128xf32, #tpu.memory_space<vmem>>, vector<1x1x32x128xf32>
    %228 = vector.shape_cast %227 : vector<1x1x32x128xf32> to vector<32x128xf32>
    %cst_96 = arith.constant dense<0.000000e+00> : vector<32x128xf32>
    %229 = tpu.matmul %226, %228, %cst_96 {dimension_numbers = #tpu.dot_dimension_numbers<[1], [0], [0], [1], [0, 0, 1, 1], [], []>} : vector<32x32xf32>, vector<32x128xf32>, vector<32x128xf32> -> vector<32x128xf32>
    %c0_97 = arith.constant 0 : index
    %c0_98 = arith.constant 0 : index
    %c0_99 = arith.constant 0 : index
    %c0_100 = arith.constant 0 : index
    %230 = vector.load %arg11[%c0_97, %c0_98, %c0_99, %c0_100] : memref<1x2x1x128xf32, #tpu.memory_space<vmem>>, vector<1x1x1x128xf32>
    %231 = vector.shape_cast %230 : vector<1x1x1x128xf32> to vector<1x128xf32>
    %232 = vector.broadcast %231 : vector<1x128xf32> to vector<32x128xf32>
    %233 = arith.addf %229, %232 : vector<32x128xf32>
    %234 = arith.mulf %233, %233 : vector<32x128xf32>
    %235 = arith.mulf %233, %234 : vector<32x128xf32>
    %cst_101 = arith.constant 4.471500e-02 : f32
    %236 = vector.broadcast %cst_101 : f32 to vector<32x128xf32>
    %237 = arith.mulf %236, %235 : vector<32x128xf32>
    %238 = arith.addf %233, %237 : vector<32x128xf32>
    %cst_102 = arith.constant 0.797884583 : f32
    %239 = vector.broadcast %cst_102 : f32 to vector<32x128xf32>
    %240 = arith.mulf %239, %238 : vector<32x128xf32>
    %241 = math.tanh %240 : vector<32x128xf32>
    %cst_103 = arith.constant 1.000000e+00 : f32
    %242 = vector.broadcast %cst_103 : f32 to vector<32x128xf32>
    %243 = arith.addf %242, %241 : vector<32x128xf32>
    %cst_104 = arith.constant 5.000000e-01 : f32
    %244 = vector.broadcast %cst_104 : f32 to vector<32x128xf32>
    %245 = arith.mulf %244, %243 : vector<32x128xf32>
    %246 = arith.mulf %233, %245 : vector<32x128xf32>
    %c0_105 = arith.constant 0 : index
    %c0_106 = arith.constant 0 : index
    %c0_107 = arith.constant 0 : index
    %c0_108 = arith.constant 0 : index
    %247 = vector.load %arg12[%c0_105, %c0_106, %c0_107, %c0_108] : memref<1x2x128x32xf32, #tpu.memory_space<vmem>>, vector<1x1x128x32xf32>
    %248 = vector.shape_cast %247 : vector<1x1x128x32xf32> to vector<128x32xf32>
    %cst_109 = arith.constant dense<0.000000e+00> : vector<32x32xf32>
    %249 = tpu.matmul %246, %248, %cst_109 {dimension_numbers = #tpu.dot_dimension_numbers<[1], [0], [0], [1], [0, 0, 1, 1], [], []>} : vector<32x128xf32>, vector<128x32xf32>, vector<32x32xf32> -> vector<32x32xf32>
    %c0_110 = arith.constant 0 : index
    %c0_111 = arith.constant 0 : index
    %c0_112 = arith.constant 0 : index
    %c0_113 = arith.constant 0 : index
    %250 = vector.load %arg13[%c0_110, %c0_111, %c0_112, %c0_113] : memref<1x2x1x32xf32, #tpu.memory_space<vmem>>, vector<1x1x1x32xf32>
    %251 = vector.shape_cast %250 : vector<1x1x1x32xf32> to vector<1x32xf32>
    %252 = vector.broadcast %251 : vector<1x32xf32> to vector<32x32xf32>
    %253 = arith.addf %249, %252 : vector<32x32xf32>
    %254 = arith.addf %253, %226 : vector<32x32xf32>
    %c0_114 = arith.constant 0 : index
    %c0_115 = arith.constant 0 : index
    %c0_116 = arith.constant 0 : index
    %c0_117 = arith.constant 0 : index
    %255 = vector.load %arg14[%c0_114, %c0_115, %c0_116, %c0_117] : memref<1x2x1x32xf32, #tpu.memory_space<vmem>>, vector<1x1x1x32xf32>
    %256 = vector.shape_cast %255 : vector<1x1x1x32xf32> to vector<1x32xf32>
    %c0_118 = arith.constant 0 : index
    %c0_119 = arith.constant 0 : index
    %c0_120 = arith.constant 0 : index
    %c0_121 = arith.constant 0 : index
    %257 = vector.load %arg15[%c0_118, %c0_119, %c0_120, %c0_121] : memref<1x2x1x32xf32, #tpu.memory_space<vmem>>, vector<1x1x1x32xf32>
    %258 = vector.shape_cast %257 : vector<1x1x1x32xf32> to vector<1x32xf32>
    %cst_122 = arith.constant dense<0.000000e+00> : vector<32xf32>
    %259 = vector.multi_reduction <add>, %254, %cst_122 [1] : vector<32x32xf32> to vector<32xf32>
    %260 = vector.shape_cast %259 : vector<32xf32> to vector<32x1xf32>
    %cst_123 = arith.constant 3.200000e+01 : f32
    %261 = vector.broadcast %cst_123 : f32 to vector<32x1xf32>
    %262 = arith.divf %260, %261 : vector<32x1xf32>
    %263 = vector.broadcast %262 : vector<32x1xf32> to vector<32x32xf32>
    %264 = arith.subf %254, %263 : vector<32x32xf32>
    %265 = arith.mulf %264, %264 : vector<32x32xf32>
    %cst_124 = arith.constant dense<0.000000e+00> : vector<32xf32>
    %266 = vector.multi_reduction <add>, %265, %cst_124 [1] : vector<32x32xf32> to vector<32xf32>
    %267 = vector.shape_cast %266 : vector<32xf32> to vector<32x1xf32>
    %cst_125 = arith.constant 3.200000e+01 : f32
    %268 = vector.broadcast %cst_125 : f32 to vector<32x1xf32>
    %269 = arith.divf %267, %268 : vector<32x1xf32>
    %cst_126 = arith.constant 9.99999996E-13 : f32
    %270 = vector.broadcast %cst_126 : f32 to vector<32x1xf32>
    %271 = arith.addf %269, %270 : vector<32x1xf32>
    %272 = math.rsqrt %271 : vector<32x1xf32>
    %273 = vector.broadcast %272 : vector<32x1xf32> to vector<32x32xf32>
    %274 = arith.mulf %264, %273 : vector<32x32xf32>
    %275 = vector.broadcast %256 : vector<1x32xf32> to vector<32x32xf32>
    %276 = arith.mulf %274, %275 : vector<32x32xf32>
    %277 = vector.broadcast %258 : vector<1x32xf32> to vector<32x32xf32>
    %278 = arith.addf %276, %277 : vector<32x32xf32>
    %c0_127 = arith.constant 0 : index
    %c1 = arith.constant 1 : index
    %c0_128 = arith.constant 0 : index
    %c0_129 = arith.constant 0 : index
    %279 = vector.load %arg4[%c0_127, %c1, %c0_128, %c0_129] : memref<1x2x32x96xf32, #tpu.memory_space<vmem>>, vector<1x1x32x96xf32>
    %280 = vector.shape_cast %279 : vector<1x1x32x96xf32> to vector<32x96xf32>
    %cst_130 = arith.constant dense<0.000000e+00> : vector<32x96xf32>
    %281 = tpu.matmul %278, %280, %cst_130 {dimension_numbers = #tpu.dot_dimension_numbers<[1], [0], [0], [1], [0, 0, 1, 1], [], []>} : vector<32x32xf32>, vector<32x96xf32>, vector<32x96xf32> -> vector<32x96xf32>
    %c0_131 = arith.constant 0 : index
    %c1_132 = arith.constant 1 : index
    %c0_133 = arith.constant 0 : index
    %c0_134 = arith.constant 0 : index
    %282 = vector.load %arg5[%c0_131, %c1_132, %c0_133, %c0_134] : memref<1x2x1x96xf32, #tpu.memory_space<vmem>>, vector<1x1x1x96xf32>
    %283 = vector.shape_cast %282 : vector<1x1x1x96xf32> to vector<1x96xf32>
    %284 = vector.broadcast %283 : vector<1x96xf32> to vector<32x96xf32>
    %285 = arith.addf %281, %284 : vector<32x96xf32>
    %c0_135 = arith.constant 0 : index
    %c1_136 = arith.constant 1 : index
    %c0_137 = arith.constant 0 : index
    %c0_138 = arith.constant 0 : index
    %286 = vector.load %arg6[%c0_135, %c1_136, %c0_137, %c0_138] : memref<1x2x32x32xf32, #tpu.memory_space<vmem>>, vector<1x1x32x32xf32>
    %287 = vector.shape_cast %286 : vector<1x1x32x32xf32> to vector<32x32xf32>
    %cst_139 = arith.constant 0.000000e+00 : f32
    %288 = vector.broadcast %cst_139 : f32 to vector<16x32xf32>
    %289 = vector.extract_strided_slice %285 {offsets = [0, 0], sizes = [16, 8], strides = [1, 1]} : vector<32x96xf32> to vector<16x8xf32>
    %290 = vector.extract_strided_slice %285 {offsets = [0, 32], sizes = [16, 8], strides = [1, 1]} : vector<32x96xf32> to vector<16x8xf32>
    %291 = vector.extract_strided_slice %285 {offsets = [0, 64], sizes = [16, 8], strides = [1, 1]} : vector<32x96xf32> to vector<16x8xf32>
    %cst_140 = arith.constant dense<0.000000e+00> : vector<16x16xf32>
    %292 = tpu.matmul %289, %290, %cst_140 {dimension_numbers = #tpu.dot_dimension_numbers<[1], [1], [0], [0], [0, 0, 1, 0], [], []>} : vector<16x8xf32>, vector<16x8xf32>, vector<16x16xf32> -> vector<16x16xf32>
    %cst_141 = arith.constant 0.353553385 : f32
    %293 = vector.broadcast %cst_141 : f32 to vector<16x16xf32>
    %294 = arith.mulf %292, %293 : vector<16x16xf32>
    %cst_142 = arith.constant dense<0xFF800000> : vector<16xf32>
    %295 = vector.multi_reduction <maximumf>, %294, %cst_142 [1] : vector<16x16xf32> to vector<16xf32>
    %296 = vector.shape_cast %295 : vector<16xf32> to vector<16x1xf32>
    %297 = vector.broadcast %296 : vector<16x1xf32> to vector<16x16xf32>
    %298 = arith.subf %294, %297 : vector<16x16xf32>
    %299 = math.exp %298 : vector<16x16xf32>
    %cst_143 = arith.constant dense<0.000000e+00> : vector<16xf32>
    %300 = vector.multi_reduction <add>, %299, %cst_143 [1] : vector<16x16xf32> to vector<16xf32>
    %301 = vector.shape_cast %300 : vector<16xf32> to vector<16x1xf32>
    %302 = tpu.reciprocal %301 {approx = true} : vector<16x1xf32> -> vector<16x1xf32>
    %303 = vector.broadcast %302 : vector<16x1xf32> to vector<16x16xf32>
    %304 = arith.mulf %299, %303 : vector<16x16xf32>
    %cst_144 = arith.constant dense<0.000000e+00> : vector<16x8xf32>
    %305 = tpu.matmul %304, %291, %cst_144 {dimension_numbers = #tpu.dot_dimension_numbers<[1], [0], [0], [1], [0, 0, 1, 1], [], []>} : vector<16x16xf32>, vector<16x8xf32>, vector<16x8xf32> -> vector<16x8xf32>
    %306 = vector.extract_strided_slice %287 {offsets = [0, 0], sizes = [8, 32], strides = [1, 1]} : vector<32x32xf32> to vector<8x32xf32>
    %cst_145 = arith.constant dense<0.000000e+00> : vector<16x32xf32>
    %307 = tpu.matmul %305, %306, %cst_145 {dimension_numbers = #tpu.dot_dimension_numbers<[1], [0], [0], [1], [0, 0, 1, 1], [], []>} : vector<16x8xf32>, vector<8x32xf32>, vector<16x32xf32> -> vector<16x32xf32>
    %308 = arith.addf %288, %307 : vector<16x32xf32>
    %309 = vector.extract_strided_slice %285 {offsets = [0, 8], sizes = [16, 8], strides = [1, 1]} : vector<32x96xf32> to vector<16x8xf32>
    %310 = vector.extract_strided_slice %285 {offsets = [0, 40], sizes = [16, 8], strides = [1, 1]} : vector<32x96xf32> to vector<16x8xf32>
    %311 = vector.extract_strided_slice %285 {offsets = [0, 72], sizes = [16, 8], strides = [1, 1]} : vector<32x96xf32> to vector<16x8xf32>
    %cst_146 = arith.constant dense<0.000000e+00> : vector<16x16xf32>
    %312 = tpu.matmul %309, %310, %cst_146 {dimension_numbers = #tpu.dot_dimension_numbers<[1], [1], [0], [0], [0, 0, 1, 0], [], []>} : vector<16x8xf32>, vector<16x8xf32>, vector<16x16xf32> -> vector<16x16xf32>
    %cst_147 = arith.constant 0.353553385 : f32
    %313 = vector.broadcast %cst_147 : f32 to vector<16x16xf32>
    %314 = arith.mulf %312, %313 : vector<16x16xf32>
    %cst_148 = arith.constant dense<0xFF800000> : vector<16xf32>
    %315 = vector.multi_reduction <maximumf>, %314, %cst_148 [1] : vector<16x16xf32> to vector<16xf32>
    %316 = vector.shape_cast %315 : vector<16xf32> to vector<16x1xf32>
    %317 = vector.broadcast %316 : vector<16x1xf32> to vector<16x16xf32>
    %318 = arith.subf %314, %317 : vector<16x16xf32>
    %319 = math.exp %318 : vector<16x16xf32>
    %cst_149 = arith.constant dense<0.000000e+00> : vector<16xf32>
    %320 = vector.multi_reduction <add>, %319, %cst_149 [1] : vector<16x16xf32> to vector<16xf32>
    %321 = vector.shape_cast %320 : vector<16xf32> to vector<16x1xf32>
    %322 = tpu.reciprocal %321 {approx = true} : vector<16x1xf32> -> vector<16x1xf32>
    %323 = vector.broadcast %322 : vector<16x1xf32> to vector<16x16xf32>
    %324 = arith.mulf %319, %323 : vector<16x16xf32>
    %cst_150 = arith.constant dense<0.000000e+00> : vector<16x8xf32>
    %325 = tpu.matmul %324, %311, %cst_150 {dimension_numbers = #tpu.dot_dimension_numbers<[1], [0], [0], [1], [0, 0, 1, 1], [], []>} : vector<16x16xf32>, vector<16x8xf32>, vector<16x8xf32> -> vector<16x8xf32>
    %326 = vector.extract_strided_slice %287 {offsets = [8, 0], sizes = [8, 32], strides = [1, 1]} : vector<32x32xf32> to vector<8x32xf32>
    %cst_151 = arith.constant dense<0.000000e+00> : vector<16x32xf32>
    %327 = tpu.matmul %325, %326, %cst_151 {dimension_numbers = #tpu.dot_dimension_numbers<[1], [0], [0], [1], [0, 0, 1, 1], [], []>} : vector<16x8xf32>, vector<8x32xf32>, vector<16x32xf32> -> vector<16x32xf32>
    %328 = arith.addf %308, %327 : vector<16x32xf32>
    %329 = vector.extract_strided_slice %285 {offsets = [0, 16], sizes = [16, 8], strides = [1, 1]} : vector<32x96xf32> to vector<16x8xf32>
    %330 = vector.extract_strided_slice %285 {offsets = [0, 48], sizes = [16, 8], strides = [1, 1]} : vector<32x96xf32> to vector<16x8xf32>
    %331 = vector.extract_strided_slice %285 {offsets = [0, 80], sizes = [16, 8], strides = [1, 1]} : vector<32x96xf32> to vector<16x8xf32>
    %cst_152 = arith.constant dense<0.000000e+00> : vector<16x16xf32>
    %332 = tpu.matmul %329, %330, %cst_152 {dimension_numbers = #tpu.dot_dimension_numbers<[1], [1], [0], [0], [0, 0, 1, 0], [], []>} : vector<16x8xf32>, vector<16x8xf32>, vector<16x16xf32> -> vector<16x16xf32>
    %cst_153 = arith.constant 0.353553385 : f32
    %333 = vector.broadcast %cst_153 : f32 to vector<16x16xf32>
    %334 = arith.mulf %332, %333 : vector<16x16xf32>
    %cst_154 = arith.constant dense<0xFF800000> : vector<16xf32>
    %335 = vector.multi_reduction <maximumf>, %334, %cst_154 [1] : vector<16x16xf32> to vector<16xf32>
    %336 = vector.shape_cast %335 : vector<16xf32> to vector<16x1xf32>
    %337 = vector.broadcast %336 : vector<16x1xf32> to vector<16x16xf32>
    %338 = arith.subf %334, %337 : vector<16x16xf32>
    %339 = math.exp %338 : vector<16x16xf32>
    %cst_155 = arith.constant dense<0.000000e+00> : vector<16xf32>
    %340 = vector.multi_reduction <add>, %339, %cst_155 [1] : vector<16x16xf32> to vector<16xf32>
    %341 = vector.shape_cast %340 : vector<16xf32> to vector<16x1xf32>
    %342 = tpu.reciprocal %341 {approx = true} : vector<16x1xf32> -> vector<16x1xf32>
    %343 = vector.broadcast %342 : vector<16x1xf32> to vector<16x16xf32>
    %344 = arith.mulf %339, %343 : vector<16x16xf32>
    %cst_156 = arith.constant dense<0.000000e+00> : vector<16x8xf32>
    %345 = tpu.matmul %344, %331, %cst_156 {dimension_numbers = #tpu.dot_dimension_numbers<[1], [0], [0], [1], [0, 0, 1, 1], [], []>} : vector<16x16xf32>, vector<16x8xf32>, vector<16x8xf32> -> vector<16x8xf32>
    %346 = vector.extract_strided_slice %287 {offsets = [16, 0], sizes = [8, 32], strides = [1, 1]} : vector<32x32xf32> to vector<8x32xf32>
    %cst_157 = arith.constant dense<0.000000e+00> : vector<16x32xf32>
    %347 = tpu.matmul %345, %346, %cst_157 {dimension_numbers = #tpu.dot_dimension_numbers<[1], [0], [0], [1], [0, 0, 1, 1], [], []>} : vector<16x8xf32>, vector<8x32xf32>, vector<16x32xf32> -> vector<16x32xf32>
    %348 = arith.addf %328, %347 : vector<16x32xf32>
    %349 = vector.extract_strided_slice %285 {offsets = [0, 24], sizes = [16, 8], strides = [1, 1]} : vector<32x96xf32> to vector<16x8xf32>
    %350 = vector.extract_strided_slice %285 {offsets = [0, 56], sizes = [16, 8], strides = [1, 1]} : vector<32x96xf32> to vector<16x8xf32>
    %351 = vector.extract_strided_slice %285 {offsets = [0, 88], sizes = [16, 8], strides = [1, 1]} : vector<32x96xf32> to vector<16x8xf32>
    %cst_158 = arith.constant dense<0.000000e+00> : vector<16x16xf32>
    %352 = tpu.matmul %349, %350, %cst_158 {dimension_numbers = #tpu.dot_dimension_numbers<[1], [1], [0], [0], [0, 0, 1, 0], [], []>} : vector<16x8xf32>, vector<16x8xf32>, vector<16x16xf32> -> vector<16x16xf32>
    %cst_159 = arith.constant 0.353553385 : f32
    %353 = vector.broadcast %cst_159 : f32 to vector<16x16xf32>
    %354 = arith.mulf %352, %353 : vector<16x16xf32>
    %cst_160 = arith.constant dense<0xFF800000> : vector<16xf32>
    %355 = vector.multi_reduction <maximumf>, %354, %cst_160 [1] : vector<16x16xf32> to vector<16xf32>
    %356 = vector.shape_cast %355 : vector<16xf32> to vector<16x1xf32>
    %357 = vector.broadcast %356 : vector<16x1xf32> to vector<16x16xf32>
    %358 = arith.subf %354, %357 : vector<16x16xf32>
    %359 = math.exp %358 : vector<16x16xf32>
    %cst_161 = arith.constant dense<0.000000e+00> : vector<16xf32>
    %360 = vector.multi_reduction <add>, %359, %cst_161 [1] : vector<16x16xf32> to vector<16xf32>
    %361 = vector.shape_cast %360 : vector<16xf32> to vector<16x1xf32>
    %362 = tpu.reciprocal %361 {approx = true} : vector<16x1xf32> -> vector<16x1xf32>
    %363 = vector.broadcast %362 : vector<16x1xf32> to vector<16x16xf32>
    %364 = arith.mulf %359, %363 : vector<16x16xf32>
    %cst_162 = arith.constant dense<0.000000e+00> : vector<16x8xf32>
    %365 = tpu.matmul %364, %351, %cst_162 {dimension_numbers = #tpu.dot_dimension_numbers<[1], [0], [0], [1], [0, 0, 1, 1], [], []>} : vector<16x16xf32>, vector<16x8xf32>, vector<16x8xf32> -> vector<16x8xf32>
    %366 = vector.extract_strided_slice %287 {offsets = [24, 0], sizes = [8, 32], strides = [1, 1]} : vector<32x32xf32> to vector<8x32xf32>
    %cst_163 = arith.constant dense<0.000000e+00> : vector<16x32xf32>
    %367 = tpu.matmul %365, %366, %cst_163 {dimension_numbers = #tpu.dot_dimension_numbers<[1], [0], [0], [1], [0, 0, 1, 1], [], []>} : vector<16x8xf32>, vector<8x32xf32>, vector<16x32xf32> -> vector<16x32xf32>
    %368 = arith.addf %348, %367 : vector<16x32xf32>
    %cst_164 = arith.constant 0.000000e+00 : f32
    %369 = vector.broadcast %cst_164 : f32 to vector<16x32xf32>
    %370 = vector.extract_strided_slice %285 {offsets = [16, 0], sizes = [16, 8], strides = [1, 1]} : vector<32x96xf32> to vector<16x8xf32>
    %371 = vector.extract_strided_slice %285 {offsets = [16, 32], sizes = [16, 8], strides = [1, 1]} : vector<32x96xf32> to vector<16x8xf32>
    %372 = vector.extract_strided_slice %285 {offsets = [16, 64], sizes = [16, 8], strides = [1, 1]} : vector<32x96xf32> to vector<16x8xf32>
    %cst_165 = arith.constant dense<0.000000e+00> : vector<16x16xf32>
    %373 = tpu.matmul %370, %371, %cst_165 {dimension_numbers = #tpu.dot_dimension_numbers<[1], [1], [0], [0], [0, 0, 1, 0], [], []>} : vector<16x8xf32>, vector<16x8xf32>, vector<16x16xf32> -> vector<16x16xf32>
    %cst_166 = arith.constant 0.353553385 : f32
    %374 = vector.broadcast %cst_166 : f32 to vector<16x16xf32>
    %375 = arith.mulf %373, %374 : vector<16x16xf32>
    %cst_167 = arith.constant dense<0xFF800000> : vector<16xf32>
    %376 = vector.multi_reduction <maximumf>, %375, %cst_167 [1] : vector<16x16xf32> to vector<16xf32>
    %377 = vector.shape_cast %376 : vector<16xf32> to vector<16x1xf32>
    %378 = vector.broadcast %377 : vector<16x1xf32> to vector<16x16xf32>
    %379 = arith.subf %375, %378 : vector<16x16xf32>
    %380 = math.exp %379 : vector<16x16xf32>
    %cst_168 = arith.constant dense<0.000000e+00> : vector<16xf32>
    %381 = vector.multi_reduction <add>, %380, %cst_168 [1] : vector<16x16xf32> to vector<16xf32>
    %382 = vector.shape_cast %381 : vector<16xf32> to vector<16x1xf32>
    %383 = tpu.reciprocal %382 {approx = true} : vector<16x1xf32> -> vector<16x1xf32>
    %384 = vector.broadcast %383 : vector<16x1xf32> to vector<16x16xf32>
    %385 = arith.mulf %380, %384 : vector<16x16xf32>
    %cst_169 = arith.constant dense<0.000000e+00> : vector<16x8xf32>
    %386 = tpu.matmul %385, %372, %cst_169 {dimension_numbers = #tpu.dot_dimension_numbers<[1], [0], [0], [1], [0, 0, 1, 1], [], []>} : vector<16x16xf32>, vector<16x8xf32>, vector<16x8xf32> -> vector<16x8xf32>
    %387 = vector.extract_strided_slice %287 {offsets = [0, 0], sizes = [8, 32], strides = [1, 1]} : vector<32x32xf32> to vector<8x32xf32>
    %cst_170 = arith.constant dense<0.000000e+00> : vector<16x32xf32>
    %388 = tpu.matmul %386, %387, %cst_170 {dimension_numbers = #tpu.dot_dimension_numbers<[1], [0], [0], [1], [0, 0, 1, 1], [], []>} : vector<16x8xf32>, vector<8x32xf32>, vector<16x32xf32> -> vector<16x32xf32>
    %389 = arith.addf %369, %388 : vector<16x32xf32>
    %390 = vector.extract_strided_slice %285 {offsets = [16, 8], sizes = [16, 8], strides = [1, 1]} : vector<32x96xf32> to vector<16x8xf32>
    %391 = vector.extract_strided_slice %285 {offsets = [16, 40], sizes = [16, 8], strides = [1, 1]} : vector<32x96xf32> to vector<16x8xf32>
    %392 = vector.extract_strided_slice %285 {offsets = [16, 72], sizes = [16, 8], strides = [1, 1]} : vector<32x96xf32> to vector<16x8xf32>
    %cst_171 = arith.constant dense<0.000000e+00> : vector<16x16xf32>
    %393 = tpu.matmul %390, %391, %cst_171 {dimension_numbers = #tpu.dot_dimension_numbers<[1], [1], [0], [0], [0, 0, 1, 0], [], []>} : vector<16x8xf32>, vector<16x8xf32>, vector<16x16xf32> -> vector<16x16xf32>
    %cst_172 = arith.constant 0.353553385 : f32
    %394 = vector.broadcast %cst_172 : f32 to vector<16x16xf32>
    %395 = arith.mulf %393, %394 : vector<16x16xf32>
    %cst_173 = arith.constant dense<0xFF800000> : vector<16xf32>
    %396 = vector.multi_reduction <maximumf>, %395, %cst_173 [1] : vector<16x16xf32> to vector<16xf32>
    %397 = vector.shape_cast %396 : vector<16xf32> to vector<16x1xf32>
    %398 = vector.broadcast %397 : vector<16x1xf32> to vector<16x16xf32>
    %399 = arith.subf %395, %398 : vector<16x16xf32>
    %400 = math.exp %399 : vector<16x16xf32>
    %cst_174 = arith.constant dense<0.000000e+00> : vector<16xf32>
    %401 = vector.multi_reduction <add>, %400, %cst_174 [1] : vector<16x16xf32> to vector<16xf32>
    %402 = vector.shape_cast %401 : vector<16xf32> to vector<16x1xf32>
    %403 = tpu.reciprocal %402 {approx = true} : vector<16x1xf32> -> vector<16x1xf32>
    %404 = vector.broadcast %403 : vector<16x1xf32> to vector<16x16xf32>
    %405 = arith.mulf %400, %404 : vector<16x16xf32>
    %cst_175 = arith.constant dense<0.000000e+00> : vector<16x8xf32>
    %406 = tpu.matmul %405, %392, %cst_175 {dimension_numbers = #tpu.dot_dimension_numbers<[1], [0], [0], [1], [0, 0, 1, 1], [], []>} : vector<16x16xf32>, vector<16x8xf32>, vector<16x8xf32> -> vector<16x8xf32>
    %407 = vector.extract_strided_slice %287 {offsets = [8, 0], sizes = [8, 32], strides = [1, 1]} : vector<32x32xf32> to vector<8x32xf32>
    %cst_176 = arith.constant dense<0.000000e+00> : vector<16x32xf32>
    %408 = tpu.matmul %406, %407, %cst_176 {dimension_numbers = #tpu.dot_dimension_numbers<[1], [0], [0], [1], [0, 0, 1, 1], [], []>} : vector<16x8xf32>, vector<8x32xf32>, vector<16x32xf32> -> vector<16x32xf32>
    %409 = arith.addf %389, %408 : vector<16x32xf32>
    %410 = vector.extract_strided_slice %285 {offsets = [16, 16], sizes = [16, 8], strides = [1, 1]} : vector<32x96xf32> to vector<16x8xf32>
    %411 = vector.extract_strided_slice %285 {offsets = [16, 48], sizes = [16, 8], strides = [1, 1]} : vector<32x96xf32> to vector<16x8xf32>
    %412 = vector.extract_strided_slice %285 {offsets = [16, 80], sizes = [16, 8], strides = [1, 1]} : vector<32x96xf32> to vector<16x8xf32>
    %cst_177 = arith.constant dense<0.000000e+00> : vector<16x16xf32>
    %413 = tpu.matmul %410, %411, %cst_177 {dimension_numbers = #tpu.dot_dimension_numbers<[1], [1], [0], [0], [0, 0, 1, 0], [], []>} : vector<16x8xf32>, vector<16x8xf32>, vector<16x16xf32> -> vector<16x16xf32>
    %cst_178 = arith.constant 0.353553385 : f32
    %414 = vector.broadcast %cst_178 : f32 to vector<16x16xf32>
    %415 = arith.mulf %413, %414 : vector<16x16xf32>
    %cst_179 = arith.constant dense<0xFF800000> : vector<16xf32>
    %416 = vector.multi_reduction <maximumf>, %415, %cst_179 [1] : vector<16x16xf32> to vector<16xf32>
    %417 = vector.shape_cast %416 : vector<16xf32> to vector<16x1xf32>
    %418 = vector.broadcast %417 : vector<16x1xf32> to vector<16x16xf32>
    %419 = arith.subf %415, %418 : vector<16x16xf32>
    %420 = math.exp %419 : vector<16x16xf32>
    %cst_180 = arith.constant dense<0.000000e+00> : vector<16xf32>
    %421 = vector.multi_reduction <add>, %420, %cst_180 [1] : vector<16x16xf32> to vector<16xf32>
    %422 = vector.shape_cast %421 : vector<16xf32> to vector<16x1xf32>
    %423 = tpu.reciprocal %422 {approx = true} : vector<16x1xf32> -> vector<16x1xf32>
    %424 = vector.broadcast %423 : vector<16x1xf32> to vector<16x16xf32>
    %425 = arith.mulf %420, %424 : vector<16x16xf32>
    %cst_181 = arith.constant dense<0.000000e+00> : vector<16x8xf32>
    %426 = tpu.matmul %425, %412, %cst_181 {dimension_numbers = #tpu.dot_dimension_numbers<[1], [0], [0], [1], [0, 0, 1, 1], [], []>} : vector<16x16xf32>, vector<16x8xf32>, vector<16x8xf32> -> vector<16x8xf32>
    %427 = vector.extract_strided_slice %287 {offsets = [16, 0], sizes = [8, 32], strides = [1, 1]} : vector<32x32xf32> to vector<8x32xf32>
    %cst_182 = arith.constant dense<0.000000e+00> : vector<16x32xf32>
    %428 = tpu.matmul %426, %427, %cst_182 {dimension_numbers = #tpu.dot_dimension_numbers<[1], [0], [0], [1], [0, 0, 1, 1], [], []>} : vector<16x8xf32>, vector<8x32xf32>, vector<16x32xf32> -> vector<16x32xf32>
    %429 = arith.addf %409, %428 : vector<16x32xf32>
    %430 = vector.extract_strided_slice %285 {offsets = [16, 24], sizes = [16, 8], strides = [1, 1]} : vector<32x96xf32> to vector<16x8xf32>
    %431 = vector.extract_strided_slice %285 {offsets = [16, 56], sizes = [16, 8], strides = [1, 1]} : vector<32x96xf32> to vector<16x8xf32>
    %432 = vector.extract_strided_slice %285 {offsets = [16, 88], sizes = [16, 8], strides = [1, 1]} : vector<32x96xf32> to vector<16x8xf32>
    %cst_183 = arith.constant dense<0.000000e+00> : vector<16x16xf32>
    %433 = tpu.matmul %430, %431, %cst_183 {dimension_numbers = #tpu.dot_dimension_numbers<[1], [1], [0], [0], [0, 0, 1, 0], [], []>} : vector<16x8xf32>, vector<16x8xf32>, vector<16x16xf32> -> vector<16x16xf32>
    %cst_184 = arith.constant 0.353553385 : f32
    %434 = vector.broadcast %cst_184 : f32 to vector<16x16xf32>
    %435 = arith.mulf %433, %434 : vector<16x16xf32>
    %cst_185 = arith.constant dense<0xFF800000> : vector<16xf32>
    %436 = vector.multi_reduction <maximumf>, %435, %cst_185 [1] : vector<16x16xf32> to vector<16xf32>
    %437 = vector.shape_cast %436 : vector<16xf32> to vector<16x1xf32>
    %438 = vector.broadcast %437 : vector<16x1xf32> to vector<16x16xf32>
    %439 = arith.subf %435, %438 : vector<16x16xf32>
    %440 = math.exp %439 : vector<16x16xf32>
    %cst_186 = arith.constant dense<0.000000e+00> : vector<16xf32>
    %441 = vector.multi_reduction <add>, %440, %cst_186 [1] : vector<16x16xf32> to vector<16xf32>
    %442 = vector.shape_cast %441 : vector<16xf32> to vector<16x1xf32>
    %443 = tpu.reciprocal %442 {approx = true} : vector<16x1xf32> -> vector<16x1xf32>
    %444 = vector.broadcast %443 : vector<16x1xf32> to vector<16x16xf32>
    %445 = arith.mulf %440, %444 : vector<16x16xf32>
    %cst_187 = arith.constant dense<0.000000e+00> : vector<16x8xf32>
    %446 = tpu.matmul %445, %432, %cst_187 {dimension_numbers = #tpu.dot_dimension_numbers<[1], [0], [0], [1], [0, 0, 1, 1], [], []>} : vector<16x16xf32>, vector<16x8xf32>, vector<16x8xf32> -> vector<16x8xf32>
    %447 = vector.extract_strided_slice %287 {offsets = [24, 0], sizes = [8, 32], strides = [1, 1]} : vector<32x32xf32> to vector<8x32xf32>
    %cst_188 = arith.constant dense<0.000000e+00> : vector<16x32xf32>
    %448 = tpu.matmul %446, %447, %cst_188 {dimension_numbers = #tpu.dot_dimension_numbers<[1], [0], [0], [1], [0, 0, 1, 1], [], []>} : vector<16x8xf32>, vector<8x32xf32>, vector<16x32xf32> -> vector<16x32xf32>
    %449 = arith.addf %429, %448 : vector<16x32xf32>
    %450 = tpu.concatenate %368, %449 in 0 : vector<16x32xf32>, vector<16x32xf32> -> vector<32x32xf32>
    %c0_189 = arith.constant 0 : index
    %c1_190 = arith.constant 1 : index
    %c0_191 = arith.constant 0 : index
    %c0_192 = arith.constant 0 : index
    %451 = vector.load %arg7[%c0_189, %c1_190, %c0_191, %c0_192] : memref<1x2x1x32xf32, #tpu.memory_space<vmem>>, vector<1x1x1x32xf32>
    %452 = vector.shape_cast %451 : vector<1x1x1x32xf32> to vector<1x32xf32>
    %453 = vector.broadcast %452 : vector<1x32xf32> to vector<32x32xf32>
    %454 = arith.addf %450, %453 : vector<32x32xf32>
    %455 = arith.addf %454, %278 : vector<32x32xf32>
    %c0_193 = arith.constant 0 : index
    %c1_194 = arith.constant 1 : index
    %c0_195 = arith.constant 0 : index
    %c0_196 = arith.constant 0 : index
    %456 = vector.load %arg8[%c0_193, %c1_194, %c0_195, %c0_196] : memref<1x2x1x32xf32, #tpu.memory_space<vmem>>, vector<1x1x1x32xf32>
    %457 = vector.shape_cast %456 : vector<1x1x1x32xf32> to vector<1x32xf32>
    %c0_197 = arith.constant 0 : index
    %c1_198 = arith.constant 1 : index
    %c0_199 = arith.constant 0 : index
    %c0_200 = arith.constant 0 : index
    %458 = vector.load %arg9[%c0_197, %c1_198, %c0_199, %c0_200] : memref<1x2x1x32xf32, #tpu.memory_space<vmem>>, vector<1x1x1x32xf32>
    %459 = vector.shape_cast %458 : vector<1x1x1x32xf32> to vector<1x32xf32>
    %cst_201 = arith.constant dense<0.000000e+00> : vector<32xf32>
    %460 = vector.multi_reduction <add>, %455, %cst_201 [1] : vector<32x32xf32> to vector<32xf32>
    %461 = vector.shape_cast %460 : vector<32xf32> to vector<32x1xf32>
    %cst_202 = arith.constant 3.200000e+01 : f32
    %462 = vector.broadcast %cst_202 : f32 to vector<32x1xf32>
    %463 = arith.divf %461, %462 : vector<32x1xf32>
    %464 = vector.broadcast %463 : vector<32x1xf32> to vector<32x32xf32>
    %465 = arith.subf %455, %464 : vector<32x32xf32>
    %466 = arith.mulf %465, %465 : vector<32x32xf32>
    %cst_203 = arith.constant dense<0.000000e+00> : vector<32xf32>
    %467 = vector.multi_reduction <add>, %466, %cst_203 [1] : vector<32x32xf32> to vector<32xf32>
    %468 = vector.shape_cast %467 : vector<32xf32> to vector<32x1xf32>
    %cst_204 = arith.constant 3.200000e+01 : f32
    %469 = vector.broadcast %cst_204 : f32 to vector<32x1xf32>
    %470 = arith.divf %468, %469 : vector<32x1xf32>
    %cst_205 = arith.constant 9.99999996E-13 : f32
    %471 = vector.broadcast %cst_205 : f32 to vector<32x1xf32>
    %472 = arith.addf %470, %471 : vector<32x1xf32>
    %473 = math.rsqrt %472 : vector<32x1xf32>
    %474 = vector.broadcast %473 : vector<32x1xf32> to vector<32x32xf32>
    %475 = arith.mulf %465, %474 : vector<32x32xf32>
    %476 = vector.broadcast %457 : vector<1x32xf32> to vector<32x32xf32>
    %477 = arith.mulf %475, %476 : vector<32x32xf32>
    %478 = vector.broadcast %459 : vector<1x32xf32> to vector<32x32xf32>
    %479 = arith.addf %477, %478 : vector<32x32xf32>
    %c0_206 = arith.constant 0 : index
    %c1_207 = arith.constant 1 : index
    %c0_208 = arith.constant 0 : index
    %c0_209 = arith.constant 0 : index
    %480 = vector.load %arg10[%c0_206, %c1_207, %c0_208, %c0_209] : memref<1x2x32x128xf32, #tpu.memory_space<vmem>>, vector<1x1x32x128xf32>
    %481 = vector.shape_cast %480 : vector<1x1x32x128xf32> to vector<32x128xf32>
    %cst_210 = arith.constant dense<0.000000e+00> : vector<32x128xf32>
    %482 = tpu.matmul %479, %481, %cst_210 {dimension_numbers = #tpu.dot_dimension_numbers<[1], [0], [0], [1], [0, 0, 1, 1], [], []>} : vector<32x32xf32>, vector<32x128xf32>, vector<32x128xf32> -> vector<32x128xf32>
    %c0_211 = arith.constant 0 : index
    %c1_212 = arith.constant 1 : index
    %c0_213 = arith.constant 0 : index
    %c0_214 = arith.constant 0 : index
    %483 = vector.load %arg11[%c0_211, %c1_212, %c0_213, %c0_214] : memref<1x2x1x128xf32, #tpu.memory_space<vmem>>, vector<1x1x1x128xf32>
    %484 = vector.shape_cast %483 : vector<1x1x1x128xf32> to vector<1x128xf32>
    %485 = vector.broadcast %484 : vector<1x128xf32> to vector<32x128xf32>
    %486 = arith.addf %482, %485 : vector<32x128xf32>
    %487 = arith.mulf %486, %486 : vector<32x128xf32>
    %488 = arith.mulf %486, %487 : vector<32x128xf32>
    %cst_215 = arith.constant 4.471500e-02 : f32
    %489 = vector.broadcast %cst_215 : f32 to vector<32x128xf32>
    %490 = arith.mulf %489, %488 : vector<32x128xf32>
    %491 = arith.addf %486, %490 : vector<32x128xf32>
    %cst_216 = arith.constant 0.797884583 : f32
    %492 = vector.broadcast %cst_216 : f32 to vector<32x128xf32>
    %493 = arith.mulf %492, %491 : vector<32x128xf32>
    %494 = math.tanh %493 : vector<32x128xf32>
    %cst_217 = arith.constant 1.000000e+00 : f32
    %495 = vector.broadcast %cst_217 : f32 to vector<32x128xf32>
    %496 = arith.addf %495, %494 : vector<32x128xf32>
    %cst_218 = arith.constant 5.000000e-01 : f32
    %497 = vector.broadcast %cst_218 : f32 to vector<32x128xf32>
    %498 = arith.mulf %497, %496 : vector<32x128xf32>
    %499 = arith.mulf %486, %498 : vector<32x128xf32>
    %c0_219 = arith.constant 0 : index
    %c1_220 = arith.constant 1 : index
    %c0_221 = arith.constant 0 : index
    %c0_222 = arith.constant 0 : index
    %500 = vector.load %arg12[%c0_219, %c1_220, %c0_221, %c0_222] : memref<1x2x128x32xf32, #tpu.memory_space<vmem>>, vector<1x1x128x32xf32>
    %501 = vector.shape_cast %500 : vector<1x1x128x32xf32> to vector<128x32xf32>
    %cst_223 = arith.constant dense<0.000000e+00> : vector<32x32xf32>
    %502 = tpu.matmul %499, %501, %cst_223 {dimension_numbers = #tpu.dot_dimension_numbers<[1], [0], [0], [1], [0, 0, 1, 1], [], []>} : vector<32x128xf32>, vector<128x32xf32>, vector<32x32xf32> -> vector<32x32xf32>
    %c0_224 = arith.constant 0 : index
    %c1_225 = arith.constant 1 : index
    %c0_226 = arith.constant 0 : index
    %c0_227 = arith.constant 0 : index
    %503 = vector.load %arg13[%c0_224, %c1_225, %c0_226, %c0_227] : memref<1x2x1x32xf32, #tpu.memory_space<vmem>>, vector<1x1x1x32xf32>
    %504 = vector.shape_cast %503 : vector<1x1x1x32xf32> to vector<1x32xf32>
    %505 = vector.broadcast %504 : vector<1x32xf32> to vector<32x32xf32>
    %506 = arith.addf %502, %505 : vector<32x32xf32>
    %507 = arith.addf %506, %479 : vector<32x32xf32>
    %c0_228 = arith.constant 0 : index
    %c1_229 = arith.constant 1 : index
    %c0_230 = arith.constant 0 : index
    %c0_231 = arith.constant 0 : index
    %508 = vector.load %arg14[%c0_228, %c1_229, %c0_230, %c0_231] : memref<1x2x1x32xf32, #tpu.memory_space<vmem>>, vector<1x1x1x32xf32>
    %509 = vector.shape_cast %508 : vector<1x1x1x32xf32> to vector<1x32xf32>
    %c0_232 = arith.constant 0 : index
    %c1_233 = arith.constant 1 : index
    %c0_234 = arith.constant 0 : index
    %c0_235 = arith.constant 0 : index
    %510 = vector.load %arg15[%c0_232, %c1_233, %c0_234, %c0_235] : memref<1x2x1x32xf32, #tpu.memory_space<vmem>>, vector<1x1x1x32xf32>
    %511 = vector.shape_cast %510 : vector<1x1x1x32xf32> to vector<1x32xf32>
    %cst_236 = arith.constant dense<0.000000e+00> : vector<32xf32>
    %512 = vector.multi_reduction <add>, %507, %cst_236 [1] : vector<32x32xf32> to vector<32xf32>
    %513 = vector.shape_cast %512 : vector<32xf32> to vector<32x1xf32>
    %cst_237 = arith.constant 3.200000e+01 : f32
    %514 = vector.broadcast %cst_237 : f32 to vector<32x1xf32>
    %515 = arith.divf %513, %514 : vector<32x1xf32>
    %516 = vector.broadcast %515 : vector<32x1xf32> to vector<32x32xf32>
    %517 = arith.subf %507, %516 : vector<32x32xf32>
    %518 = arith.mulf %517, %517 : vector<32x32xf32>
    %cst_238 = arith.constant dense<0.000000e+00> : vector<32xf32>
    %519 = vector.multi_reduction <add>, %518, %cst_238 [1] : vector<32x32xf32> to vector<32xf32>
    %520 = vector.shape_cast %519 : vector<32xf32> to vector<32x1xf32>
    %cst_239 = arith.constant 3.200000e+01 : f32
    %521 = vector.broadcast %cst_239 : f32 to vector<32x1xf32>
    %522 = arith.divf %520, %521 : vector<32x1xf32>
    %cst_240 = arith.constant 9.99999996E-13 : f32
    %523 = vector.broadcast %cst_240 : f32 to vector<32x1xf32>
    %524 = arith.addf %522, %523 : vector<32x1xf32>
    %525 = math.rsqrt %524 : vector<32x1xf32>
    %526 = vector.broadcast %525 : vector<32x1xf32> to vector<32x32xf32>
    %527 = arith.mulf %517, %526 : vector<32x32xf32>
    %528 = vector.broadcast %509 : vector<1x32xf32> to vector<32x32xf32>
    %529 = arith.mulf %527, %528 : vector<32x32xf32>
    %530 = vector.broadcast %511 : vector<1x32xf32> to vector<32x32xf32>
    %531 = arith.addf %529, %530 : vector<32x32xf32>
    %532 = vector.extract_strided_slice %531 {offsets = [0, 0], sizes = [1, 32], strides = [1, 1]} : vector<32x32xf32> to vector<1x32xf32>
    %533 = vector.extract_strided_slice %531 {offsets = [16, 0], sizes = [1, 32], strides = [1, 1]} : vector<32x32xf32> to vector<1x32xf32>
    %534 = tpu.concatenate %532, %533 in 0 : vector<1x32xf32>, vector<1x32xf32> -> vector<2x32xf32>
    %c0_241 = arith.constant 0 : index
    %c0_242 = arith.constant 0 : index
    %c0_243 = arith.constant 0 : index
    %535 = vector.load %arg16[%c0_241, %c0_242, %c0_243] : memref<1x32x32xf32, #tpu.memory_space<vmem>>, vector<1x32x32xf32>
    %536 = vector.shape_cast %535 : vector<1x32x32xf32> to vector<32x32xf32>
    %cst_244 = arith.constant dense<0.000000e+00> : vector<2x32xf32>
    %537 = tpu.matmul %534, %536, %cst_244 {dimension_numbers = #tpu.dot_dimension_numbers<[1], [0], [0], [1], [0, 0, 1, 1], [], []>} : vector<2x32xf32>, vector<32x32xf32>, vector<2x32xf32> -> vector<2x32xf32>
    %c0_245 = arith.constant 0 : index
    %c0_246 = arith.constant 0 : index
    %c0_247 = arith.constant 0 : index
    %538 = vector.load %arg17[%c0_245, %c0_246, %c0_247] : memref<1x1x32xf32, #tpu.memory_space<vmem>>, vector<1x1x32xf32>
    %539 = vector.shape_cast %538 : vector<1x1x32xf32> to vector<1x32xf32>
    %540 = vector.broadcast %539 : vector<1x32xf32> to vector<2x32xf32>
    %541 = arith.addf %537, %540 : vector<2x32xf32>
    %542 = math.tanh %541 : vector<2x32xf32>
    %c0_248 = arith.constant 0 : index
    %c0_249 = arith.constant 0 : index
    %c0_250 = arith.constant 0 : index
    %543 = vector.load %arg18[%c0_248, %c0_249, %c0_250] : memref<1x32x1xf32, #tpu.memory_space<vmem>>, vector<1x32x1xf32>
    %544 = vector.shape_cast %543 : vector<1x32x1xf32> to vector<32x1xf32>
    %cst_251 = arith.constant dense<0.000000e+00> : vector<2x1xf32>
    %545 = tpu.matmul %542, %544, %cst_251 {dimension_numbers = #tpu.dot_dimension_numbers<[1], [0], [0], [1], [0, 0, 1, 1], [], []>} : vector<2x32xf32>, vector<32x1xf32>, vector<2x1xf32> -> vector<2x1xf32>
    %c0_252 = arith.constant 0 : index
    %c0_253 = arith.constant 0 : index
    %c0_254 = arith.constant 0 : index
    %546 = vector.load %arg19[%c0_252, %c0_253, %c0_254] : memref<1x1x1xf32, #tpu.memory_space<vmem>>, vector<1x1x1xf32>
    %547 = vector.shape_cast %546 : vector<1x1x1xf32> to vector<1x1xf32>
    %548 = vector.broadcast %547 : vector<1x1xf32> to vector<2x1xf32>
    %549 = arith.addf %545, %548 : vector<2x1xf32>
    %c0_255 = arith.constant 0 : index
    %c0_256 = arith.constant 0 : index
    %c0_257 = arith.constant 0 : index
    %550 = vector.load %arg20[%c0_255, %c0_256, %c0_257] : memref<1x2x1xf32, #tpu.memory_space<vmem>>, vector<1x2x1xf32>
    %551 = vector.shape_cast %550 : vector<1x2x1xf32> to vector<2x1xf32>
    %552 = vector.shape_cast %549 : vector<2x1xf32> to vector<1x2x1xf32>
    tpu.vector_store %arg20[%c0_255, %c0_256, %c0_257], %552 {strides = array<i32>} : memref<1x2x1xf32, #tpu.memory_space<vmem>>, vector<1x2x1xf32>,
    return
  }
  func.func @transform_0(%arg0: i32) -> (i32, i32, i32) {
    %c0_i32 = arith.constant 0 : i32
    %c0_i32_0 = arith.constant 0 : i32
    %c0_i32_1 = arith.constant 0 : i32
    return %arg0, %c0_i32, %c0_i32_0 : i32, i32, i32
  }
  func.func @transform_1(%arg0: i32) -> (i32, i32, i32) {
    %c0_i32 = arith.constant 0 : i32
    %c0_i32_0 = arith.constant 0 : i32
    %c0_i32_1 = arith.constant 0 : i32
    return %arg0, %c0_i32, %c0_i32_0 : i32, i32, i32
  }
  func.func @transform_2(%arg0: i32) -> (i32, i32, i32) {
    %c0_i32 = arith.constant 0 : i32
    %c0_i32_0 = arith.constant 0 : i32
    %c0_i32_1 = arith.constant 0 : i32
    return %arg0, %c0_i32, %c0_i32_0 : i32, i32, i32
  }
  func.func @transform_3(%arg0: i32) -> (i32, i32, i32, i32) {
    %c0_i32 = arith.constant 0 : i32
    %c0_i32_0 = arith.constant 0 : i32
    %c0_i32_1 = arith.constant 0 : i32
    %c0_i32_2 = arith.constant 0 : i32
    return %arg0, %c0_i32, %c0_i32_0, %c0_i32_1 : i32, i32, i32, i32
  }
  func.func @transform_4(%arg0: i32) -> (i32, i32, i32, i32) {
    %c0_i32 = arith.constant 0 : i32
    %c0_i32_0 = arith.constant 0 : i32
    %c0_i32_1 = arith.constant 0 : i32
    %c0_i32_2 = arith.constant 0 : i32
    return %arg0, %c0_i32, %c0_i32_0, %c0_i32_1 : i32, i32, i32, i32
  }
  func.func @transform_5(%arg0: i32) -> (i32, i32, i32, i32) {
    %c0_i32 = arith.constant 0 : i32
    %c0_i32_0 = arith.constant 0 : i32
    %c0_i32_1 = arith.constant 0 : i32
    %c0_i32_2 = arith.constant 0 : i32
    return %arg0, %c0_i32, %c0_i32_0, %c0_i32_1 : i32, i32, i32, i32
  }
  func.func @transform_6(%arg0: i32) -> (i32, i32, i32, i32) {
    %c0_i32 = arith.constant 0 : i32
    %c0_i32_0 = arith.constant 0 : i32
    %c0_i32_1 = arith.constant 0 : i32
    %c0_i32_2 = arith.constant 0 : i32
    return %arg0, %c0_i32, %c0_i32_0, %c0_i32_1 : i32, i32, i32, i32
  }
  func.func @transform_7(%arg0: i32) -> (i32, i32, i32, i32) {
    %c0_i32 = arith.constant 0 : i32
    %c0_i32_0 = arith.constant 0 : i32
    %c0_i32_1 = arith.constant 0 : i32
    %c0_i32_2 = arith.constant 0 : i32
    return %arg0, %c0_i32, %c0_i32_0, %c0_i32_1 : i32, i32, i32, i32
  }
  func.func @transform_8(%arg0: i32) -> (i32, i32, i32, i32) {
    %c0_i32 = arith.constant 0 : i32
    %c0_i32_0 = arith.constant 0 : i32
    %c0_i32_1 = arith.constant 0 : i32
    %c0_i32_2 = arith.constant 0 : i32
    return %arg0, %c0_i32, %c0_i32_0, %c0_i32_1 : i32, i32, i32, i32
  }
  func.func @transform_9(%arg0: i32) -> (i32, i32, i32, i32) {
    %c0_i32 = arith.constant 0 : i32
    %c0_i32_0 = arith.constant 0 : i32
    %c0_i32_1 = arith.constant 0 : i32
    %c0_i32_2 = arith.constant 0 : i32
    return %arg0, %c0_i32, %c0_i32_0, %c0_i32_1 : i32, i32, i32, i32
  }
  func.func @transform_10(%arg0: i32) -> (i32, i32, i32, i32) {
    %c0_i32 = arith.constant 0 : i32
    %c0_i32_0 = arith.constant 0 : i32
    %c0_i32_1 = arith.constant 0 : i32
    %c0_i32_2 = arith.constant 0 : i32
    return %arg0, %c0_i32, %c0_i32_0, %c0_i32_1 : i32, i32, i32, i32
  }
  func.func @transform_11(%arg0: i32) -> (i32, i32, i32, i32) {
    %c0_i32 = arith.constant 0 : i32
    %c0_i32_0 = arith.constant 0 : i32
    %c0_i32_1 = arith.constant 0 : i32
    %c0_i32_2 = arith.constant 0 : i32
    return %arg0, %c0_i32, %c0_i32_0, %c0_i32_1 : i32, i32, i32, i32
  }
  func.func @transform_12(%arg0: i32) -> (i32, i32, i32, i32) {
    %c0_i32 = arith.constant 0 : i32
    %c0_i32_0 = arith.constant 0 : i32
    %c0_i32_1 = arith.constant 0 : i32
    %c0_i32_2 = arith.constant 0 : i32
    return %arg0, %c0_i32, %c0_i32_0, %c0_i32_1 : i32, i32, i32, i32
  }
  func.func @transform_13(%arg0: i32) -> (i32, i32, i32, i32) {
    %c0_i32 = arith.constant 0 : i32
    %c0_i32_0 = arith.constant 0 : i32
    %c0_i32_1 = arith.constant 0 : i32
    %c0_i32_2 = arith.constant 0 : i32
    return %arg0, %c0_i32, %c0_i32_0, %c0_i32_1 : i32, i32, i32, i32
  }
  func.func @transform_14(%arg0: i32) -> (i32, i32, i32, i32) {
    %c0_i32 = arith.constant 0 : i32
    %c0_i32_0 = arith.constant 0 : i32
    %c0_i32_1 = arith.constant 0 : i32
    %c0_i32_2 = arith.constant 0 : i32
    return %arg0, %c0_i32, %c0_i32_0, %c0_i32_1 : i32, i32, i32, i32
  }
  func.func @transform_15(%arg0: i32) -> (i32, i32, i32) {
    %c0_i32 = arith.constant 0 : i32
    %c0_i32_0 = arith.constant 0 : i32
    %c0_i32_1 = arith.constant 0 : i32
    return %arg0, %c0_i32, %c0_i32_0 : i32, i32, i32
  }
  func.func @transform_16(%arg0: i32) -> (i32, i32, i32) {
    %c0_i32 = arith.constant 0 : i32
    %c0_i32_0 = arith.constant 0 : i32
    %c0_i32_1 = arith.constant 0 : i32
    return %arg0, %c0_i32, %c0_i32_0 : i32, i32, i32
  }
  func.func @transform_17(%arg0: i32) -> (i32, i32, i32) {
    %c0_i32 = arith.constant 0 : i32
    %c0_i32_0 = arith.constant 0 : i32
    %c0_i32_1 = arith.constant 0 : i32
    return %arg0, %c0_i32, %c0_i32_0 : i32, i32, i32
  }
  func.func @transform_18(%arg0: i32) -> (i32, i32, i32) {
    %c0_i32 = arith.constant 0 : i32
    %c0_i32_0 = arith.constant 0 : i32
    %c0_i32_1 = arith.constant 0 : i32
    return %arg0, %c0_i32, %c0_i32_0 : i32, i32, i32
  }
  func.func @transform_19(%arg0: i32) -> (i32, i32, i32) {
    %c0_i32 = arith.constant 0 : i32
    %c0_i32_0 = arith.constant 0 : i32
    %c0_i32_1 = arith.constant 0 : i32
    return %arg0, %c0_i32, %c0_i32_0 : i32, i32, i32
  }
}

</mosaic_0001>

<bundles_post_ra>
// kernel: qnetwork_forward.1
= control target key start
LH: loop header
LB: loop body
LE: loop exit
PB: predicated region body
PF: predicated region fallthrough
CT: control target
= control target key end

     0   :  { %s9600_s0 = inlined_call_operand.vmem [shape: f32[2,32,32], index: 0, kind: input, shape index: {}]   ;;  %s9601_s1 = inlined_call_operand.vmem [shape: f32[2,1,32], index: 1, kind: input, shape index: {}]   ;;  %s9602_s2 = inlined_call_operand.vmem [shape: f32[2,1,32], index: 2, kind: input, shape index: {}]   ;;  %s9603_s3 = inlined_call_operand.vmem [shape: f32[2,2,32,96], index: 3, kind: input, shape index: {}]   ;;  %s9604_s4 = inlined_call_operand.vmem [shape: f32[2,2,1,96], index: 4, kind: input, shape index: {}]   ;;  %s9605_s5 = inlined_call_operand.vmem [shape: f32[2,2,32,32], index: 5, kind: input, shape index: {}]   ;;  %s9606_s6 = inlined_call_operand.vmem [shape: f32[2,2,1,32], index: 6, kind: input, shape index: {}]   ;;  %s9607_s7 = inlined_call_operand.vmem [shape: f32[2,2,1,32], index: 7, kind: input, shape index: {}]   ;;  %s9608_s8 = inlined_call_operand.vmem [shape: f32[2,2,1,32], index: 8, kind: input, shape index: {}]   ;;  %s9609_s9 = inlined_call_operand.vmem [shape: f32[2,2,32,128], index: 9, kind: input, shape index: {}]   ;;  %s9610_s10 = inlined_call_operand.vmem [shape: f32[2,2,1,128], index: 10, kind: input, shape index: {}]   ;;  %s9611_s11 = inlined_call_operand.vmem [shape: f32[2,2,128,32], index: 11, kind: input, shape index: {}]   ;;  %s9612_s12 = inlined_call_operand.vmem [shape: f32[2,2,1,32], index: 12, kind: input, shape index: {}]   ;;  %s9613_s13 = inlined_call_operand.vmem [shape: f32[2,2,1,32], index: 13, kind: input, shape index: {}]   ;;  %s9614_s14 = inlined_call_operand.vmem [shape: f32[2,2,1,32], index: 14, kind: input, shape index: {}]   ;;  %s9615_s15 = inlined_call_operand.vmem [shape: f32[2,32,32], index: 15, kind: input, shape index: {}]   ;;  %s9616_s16 = inlined_call_operand.vmem [shape: f32[2,1,32], index: 16, kind: input, shape index: {}]   ;;  %s9617_s17 = inlined_call_operand.vmem [shape: f32[2,32,1], index: 17, kind: input, shape index: {}]   ;;  %s9618_s18 = inlined_call_operand.vmem [shape: f32[2,1,1], index: 18, kind: input, shape index: {}]   ;;  %s9619_s19 = inlined_call_operand.vmem [shape: f32[2,2,1], index: 19, kind: output, shape index: {}]  }
   0x1   :  { %9643 = sst [smem:[#allocation3_spill]] %s9600_s0  ;;  %s8737_s0 = smov 0  }
   0x2   :  { %9644 = sst [smem:[#allocation4_spill]] %s9601_s1 }
   0x3   :  { %9645 = sst [smem:[#allocation5_spill]] %s9602_s2 }
   0x4   :  { %9646 = sst [smem:[#allocation6_spill]] %s9603_s3 }
   0x5   :  { %9647 = sst [smem:[#allocation7_spill]] %s9604_s4 }
   0x6   :  { %9648 = sst [smem:[#allocation8_spill]] %s9605_s5 }
   0x7   :  { %9649 = sst [smem:[#allocation9_spill]] %s9606_s6 }
   0x8   :  { %9650 = sst [smem:[#allocation10_spill]] %s9607_s7 }
   0x9   :  { %9651 = sst [smem:[#allocation11_spill]] %s9608_s8 }
   0xa   :  { %9652 = sst [smem:[#allocation12_spill]] %s9609_s9 }
   0xb   :  { %9653 = sst [smem:[#allocation13_spill]] %s9610_s10 }
   0xc   :  { %9654 = sst [smem:[#allocation14_spill]] %s9611_s11 }
   0xd   :  { %9655 = sst [smem:[#allocation15_spill]] %s9619_s19 }
   0xe LB: > { %9656 = sst [smem:[#allocation2_spill]] %s8621_s0  ;;  %s7004_s30 = sadd.s32 4294967295, %s8621_s0   ;;  %s8621_s0 = sphi %s8737_s0, %s29_s0  }
   0xf   : > { %p7008_p0 = scmp.ge.s32.totalorder %s8621_s0, 1  ;;  %p701_p1 = scmp.lt.s32.totalorder %s8621_s0, 3 }
  0x11   : > { %p702_p2 = pnand %p7008_p0, %p701_p1 }
  0x12   : > { %p830_p3 = scmp.lt.s32.totalorder (!%p702_p2), %s7004_s30, 1  ;;  %vm919_vm0 = vcmask (!%p702_p2), 261120   ;;  %s9657_s22 = sld [smem:[#allocation3_spill]] (!%p702_p2)  ;;  %vm1111_vm1 = vcmask (!%p702_p2), 64512   ;;  %vm1197_vm3 = vcmask (!%p702_p2), 130048   ;;  %vm8635_vm4 = vmmov (!%p702_p2), 0  }
  0x13   : > { %705 = sbr.rel (%p702_p2) target bundleno = 8852 (0x2294), region = 96  ;;  %s9658_s3 = sld [smem:[#allocation6_spill]] (!%p702_p2)  ;;  %vm8833_vm2 = vmpackc.low (!%p702_p2), %vm1111_vm1, %vm1111_vm1  ;;  %vm6574_vm5 = vcmask (!%p702_p2), 1040384   ;;  %vm6745_vm6 = vcmask (!%p702_p2), 1024  }
  0x14   : > { %s9659_s29 = sld [smem:[#allocation4_spill]] (!%p702_p2)  ;;  %s9661_s4 = sld [smem:[#allocation7_spill]] (!%p702_p2) }
  0x15   : > { %s9628_s1 = smov (!%p702_p2), 120   ;;  %s9622_s27 = smov (!%p702_p2), 104  }
  0x16   : > { %s9664_s5 = sld [smem:[#allocation8_spill]] (!%p702_p2)  ;;  %s9669_s6 = sld [smem:[#allocation9_spill]] (!%p702_p2) }
  0x17   : > { %s9671_s7 = sld [smem:[#allocation10_spill]] (!%p702_p2)  ;;  %s9672_s8 = sld [smem:[#allocation11_spill]] (!%p702_p2) }
  0x18   : > { %s9673_s9 = sld [smem:[#allocation12_spill]] (!%p702_p2)  ;;  %s9674_s11 = sld [smem:[#allocation14_spill]] (!%p702_p2) }
  0x19   : > { %s9675_s10 = sld [smem:[#allocation13_spill]] (!%p702_p2) }
  0x1a   : > { %s9685_s30 = smov (!%p830_p3, %s7004_s30), 1 }
  0x1b   : > { %s8748_s20 = sshll.u32 %s9685_s30, 5  ;;  %s8761_s23 = sshll.u32 %s9685_s30, 6 }
  0x1c   : > { %s834_s2 = scalar_lea.vmem %s9657_s22, %s8748_s20  ;;  %s8767_s26 = scalar_lea.vmem %s9658_s3, %s8761_s23 }
  0x1d   : > { %v913_v0 = vld [vmem:[%s834_s2] sm:$0xff]  ;;  %v914_v1 = vld [vmem:[%s834_s2 + $0x8] sm:$0xff]  ;;  %v915_v4 = vld [vmem:[%s834_s2 + $0x10] sm:$0xff]  ;;  %s837_s21 = scalar_lea.vmem %s9659_s29, %s9685_s30  ;;  %s8800_s25 = sshll.u32 %s9685_s30, 1 }
  0x1e   : > { %v920_v2 = vsel %vm919_vm0, %v913_v0, 0.0  ;;  %v923_v3 = vsel %vm919_vm0, %v914_v1, 0.0  ;;  %v926_v5 = vsel %vm919_vm0, %v915_v4, 0.0  ;;  %v916_v15 = vld [vmem:[%s834_s2 + $0x18] sm:$0xff]  ;;  %v993_v18 = vld [vmem:[%s8767_s26] sm:$0xff]  ;;  %v994_v19 = vld [vmem:[%s8767_s26 + $0x8] sm:$0xff]  ;;  %s8806_s28 = scalar_lea.vmem %s9661_s4, %s8800_s25  ;;  %s9038_s4 = scalar_lea.vmem %s9669_s6, %s8800_s25 }
  0x1f   : > { %921 = vadd.xlane.f32.xlu0 %v920_v2  ;;  %v929_v17 = vsel %vm919_vm0, %v916_v15, 0.0  ;;  %v995_v20 = vld [vmem:[%s8767_s26 + $0x10] sm:$0xff]  ;;  %v7959_v21 = vpack.c.bf16 %v994_v19, %v993_v18  ;;  %v996_v22 = vld [vmem:[%s8767_s26 + $0x18] sm:$0xff]  ;;  %s9660_s2 = sld [smem:[#allocation5_spill]]  ;;  %v7032_v40 = vld [vmem:[%s837_s21] ss:$0 sm:$0xff]  ;;  %s9074_s19 = scalar_lea.vmem %s9672_s8, %s8800_s25 }
  0x20   : > { %v7963_v23 = vpack.c.bf16 %v996_v22, %v995_v20  ;;  %s9630_s29 = smov 88   ;;  %s9632_s21 = smov 96  }
  0x21   : > { %7960 = vmatprep.subr.bf16.mxu1 %v7959_v21  ;;  %s9620_s22 = smov 56   ;;  %s9634_s3 = smov 112  }
  0x22   : > { %7962 = vmatpush3.bf16.msra.mxu1 %v7959_v21  ;;  %s9143_s6 = scalar_lea.vmem %s9675_s10, %s8800_s25  ;;  %s9203_s10 = scalar_lea.vmem %s9614_s14, %s8800_s25 }
  0x23   : > { %924 = vadd.xlane.f32.xlu0 %v923_v3  ;;  %7964 = vmatprep.subr.bf16.mxu1 %v7963_v23  ;;  %s9676_s8 = smov 80  }
  0x25   : > { %s840_s24 = scalar_lea.vmem %s9660_s2, %s9685_s30  ;;  %s9626_s2 = smov 64  }
  0x26   : > { %7966 = vmatpush3.bf16.msra.mxu1 %v7963_v23  ;;  %v7033_v43 = vld [vmem:[%s840_s24] ss:$0 sm:$0xff]  ;;  %s9636_s24 = smov 80  }
  0x27   : > { %927 = vadd.xlane.f32.xlu0 %v926_v5 }
  0xac   : > { %v922_v6 = vpop.xlane.xlu0 %921 }
  0xad   : > { %v933_v7 = vmul.f32 0.03125, %v922_v6 }
  0xaf   : > { %v937_v8 = vsub.f32 %v913_v0, %v933_v7  ;;  %v8809_v0 = vld [vmem:[%s8806_s28] ss:$0 sm:$0xff] }
  0xb0   : > { %v925_v9 = vpop.xlane.xlu0 %924 }
  0xb1   : > { %v934_v10 = vmul.f32 0.03125, %v925_v9  ;;  %v941_v11 = vmul.f32 %v937_v8, %v937_v8 }
  0xb3   : > { %v938_v12 = vsub.f32 %v914_v1, %v934_v10  ;;  %v945_v13 = vsel %vm919_vm0, %v941_v11, 0.0 }
  0xb4   : > { %946 = vadd.xlane.f32.xlu1 %v945_v13  ;;  %v928_v24 = vpop.xlane.xlu0 %927 }
  0xb5   : > { %v942_v14 = vmul.f32 %v938_v12, %v938_v12  ;;  %v935_v25 = vmul.f32 0.03125, %v928_v24 }
  0xb7   : > { %v948_v16 = vsel %vm919_vm0, %v942_v14, 0.0  ;;  %v939_v26 = vsub.f32 %v915_v4, %v935_v25 }
  0xb8   : > { %949 = vadd.xlane.f32.xlu1 %v948_v16 }
  0xb9   : > { %v943_v27 = vmul.f32 %v939_v26, %v939_v26 }
  0xbb   : > { %v951_v28 = vsel %vm919_vm0, %v943_v27, 0.0 }
  0xbc   : > { %930 = vadd.xlane.f32.xlu1 %v929_v17  ;;  %952 = vadd.xlane.f32.xlu0 %v951_v28 }
 0x141   : > { %v947_v29 = vpop.xlane.xlu1 %946 }
 0x142   : > { %v957_v30 = vmul.f32 0.03125, %v947_v29 }
 0x144   : > { %v961_v31 = vadd.f32 1e-12, %v957_v30 }
 0x145   : > { %v950_v32 = vpop.xlane.xlu1 %949 }
 0x146   : > { %8433 = vrsqrt.f32 %v961_v31  ;;  %v958_v33 = vmul.f32 0.03125, %v950_v32 }
 0x148   : > { %v962_v34 = vadd.f32 1e-12, %v958_v33 }
 0x149   : > { %v931_v35 = vpop.xlane.xlu1 %930  ;;  %v953_v50 = vpop.xlane.xlu0 %952 }
 0x14a   : > { %8435 = vrsqrt.f32 %v962_v34  ;;  %v936_v36 = vmul.f32 0.03125, %v931_v35  ;;  %v959_v51 = vmul.f32 0.03125, %v953_v50 }
 0x14c   : > { %v940_v37 = vsub.f32 %v916_v15, %v936_v36  ;;  %v963_v52 = vadd.f32 1e-12, %v959_v51 }
 0x14e   : > { %v944_v38 = vmul.f32 %v940_v37, %v940_v37  ;;  %8437 = vrsqrt.f32 %v963_v52 }
 0x150   : > { %v8434_v39 = vpop.eup %8433  ;;  %v954_v41 = vsel %vm919_vm0, %v944_v38, 0.0 }
 0x151   : > { %v969_v42 = vmul.f32 %v8434_v39, %v937_v8  ;;  %955 = vadd.xlane.f32.xlu1 %v954_v41 }
 0x153   : > { %v979_v44 = vmul.f32 %v7032_v40, %v969_v42 }
 0x154   : > { %v8436_v45 = vpop.eup %8435 }
 0x155   : > { %v8783_v46 = vadd.f32 %v7033_v43, %v979_v44  ;;  %v970_v47 = vmul.f32 %v8436_v45, %v938_v12 }
 0x157   : > { %7509 = vmatprep.mubr.msk.f32.mxu1 %vm919_vm0, %v8783_v46  ;;  %v980_v48 = vmul.f32 %v7032_v40, %v970_v47 }
 0x158   : > { %v8438_v53 = vpop.eup %8437 }
 0x159   : > { %v8787_v49 = vadd.f32 %v7033_v43, %v980_v48  ;;  %v971_v54 = vmul.f32 %v8438_v53, %v939_v26 }
 0x15b   : > { %7510 = vmatmul.mubr.msk.f32.vlgmr.msra.gmra.mrb[0].mxu1 %vm919_vm0, %v8787_v49  ;;  %v981_v55 = vmul.f32 %v7032_v40, %v971_v54 }
 0x15d   : > { %v8791_v56 = vadd.f32 %v7033_v43, %v981_v55 }
 0x15f   : > { %7512 = vmatprep.mubr.msk.f32.mxu1 %vm919_vm0, %v8791_v56 }
 0x1de   : > { %v956_v57 = vpop.xlane.xlu1 %955 }
 0x1df   : > { %v960_v58 = vmul.f32 0.03125, %v956_v57 }
 0x1e1   : > { %v964_v59 = vadd.f32 1e-12, %v960_v58 }
 0x1e3   : > { %8439 = vrsqrt.f32 %v964_v59 }
 0x1ed   : > { %v8440_v60 = vpop.eup %8439 }
 0x1ee   : > { %v972_v61 = vmul.f32 %v8440_v60, %v940_v37 }
 0x1f0   : > { %v982_v62 = vmul.f32 %v7032_v40, %v972_v61 }
 0x1f2   : > { %v8795_v63 = vadd.f32 %v7033_v43, %v982_v62 }
 0x1f4   : > { %7513 = vmatmul.mubr.msk.f32.gmra.mrb[2].mxu1 %vm919_vm0, %v8795_v63 }
 0x22e   : > { %v7511_v1 = vpop.f32.mrb[0].mxu1 }
 0x22f   : > { %v8812_v2 = vadd.f32 %v7511_v1, %v8809_v0  ;;  %v1082_v3 = vpop.f32.mrb[1].mxu1 }
 0x230   : > { %v8815_v4 = vadd.f32 %v8809_v0, %v1082_v3 }
 0x232   : > { %7519 = vmatprep.mubr.msk.f32.mxu1 %vm1111_vm1, %v8815_v4  ;;  %v8821_v5 = vpack.i.bf16 %v8812_v2, %v8815_v4 }
 0x234   : > { %8279 = vrot.lane.b32.xlu1 %v8821_v5, %s9630_s29  ;;  %8274 = vrot.lane.b32.xlu0 %v8821_v5, %s9632_s21 }
 0x238   : > { %1307 = vrot.lane.b32.xlu1 %v8815_v4, %s9628_s1 }
 0x23c   : > { %1309 = vrot.lane.b32.xlu1 %v8812_v2, %s9628_s1 }
 0x2a6   : > { %v8280_v6 = vpop.permute.xlu1 %8279  ;;  %v8275_v7 = vpop.permute.xlu0 %8274 }
 0x2a7   : > { %v8277_v8 = vunpack.i.h.bf16 %v8275_v7  ;;  %v8276_v9 = vunpack.i.l.bf16 %v8275_v7  ;;  %v8282_v10 = vunpack.i.h.bf16 %v8280_v6  ;;  %v8281_v11 = vunpack.i.l.bf16 %v8280_v6 }
 0x2a9   : > { %v7967_v13 = vpack.c.bf16 %v8277_v8, %v8276_v9  ;;  %v7977_v14 = vpack.c.bf16 %v8282_v10, %v8281_v11 }
 0x2aa   : > { %v1308_v15 = vpop.permute.xlu1 %1307 }
 0x2ab   : > { %7969 = vmatprep.subr.msk.bf16.mxu1 %vm8833_vm2, %v7967_v13  ;;  %7979 = vmatprep.subr.msk.bf16.mxu0 %vm8833_vm2, %v7977_v14 }
 0x2ac   : > { %7533 = vmatprep.mubr.msk.f32.mxu0 %vm1111_vm1, %v1308_v15  ;;  %7972 = vmatpush3.bf16.xpose.msk.msra.mxu1 %vm8833_vm2, %v7967_v13 }
 0x2ad   : > { %7982 = vmatpush3.bf16.xpose.msk.msra.mxu0 %vm8833_vm2, %v7977_v14 }
 0x2ae   : > { %v1310_v16 = vpop.permute.xlu1 %1309 }
 0x2b3   : > { %7520 = vmatmul.mubr.msk.f32.vlgmr.msra.gmra.mrb[4].mxu1 %vm1111_vm1, %v8812_v2 }
 0x2b4   : > { %7534 = vmatmul.mubr.msk.f32.vlgmr.msra.gmra.mrb[0].mxu0 %vm1111_vm1, %v1310_v16 }
 0x2c7   : > { %v8849_v17 = vpop.f32.mrb[2].mxu1 }
 0x2c8   : > { %v8851_v18 = vpop.f32.mrb[3].mxu1 }
 0x386   : > { %v7521_v19 = vpop.f32.mrb[4].mxu1 }
 0x387   : > { %v1196_v20 = vmul.f32 0.35355338, %v7521_v19  ;;  %v7535_v21 = vpop.f32.mrb[0].mxu0  ;;  %v1186_v22 = vpop.f32.mrb[5].mxu1 }
 0x388   : > { %v1195_v23 = vmul.f32 0.35355338, %v1186_v22  ;;  %v1389_v24 = vpop.f32.mrb[1].mxu0  ;;  %v1399_v28 = vmul.f32 0.35355338, %v7535_v21 }
 0x389   : > { %v1201_v25 = vsel %vm1197_vm3, %v1196_v20, -inf  ;;  %v1398_v26 = vmul.f32 0.35355338, %v1389_v24 }
 0x38a   : > { %1202 = vmax.xlane.f32.xlu1 %v1201_v25  ;;  %v1198_v27 = vsel %vm1197_vm3, %v1195_v23, -inf  ;;  %v1403_v30 = vsel %vm1197_vm3, %v1399_v28, -inf }
 0x38b   : > { %1199 = vmax.xlane.f32.xlu0 %v1198_v27  ;;  %v1400_v29 = vsel %vm1197_vm3, %v1398_v26, -inf  ;;  %v8894_v27 = vadd.f32 %v8809_v0, %v8851_v18 }
 0x38f   : > { %1401 = vmax.xlane.f32.xlu0 %v1400_v29 }
 0x393   : > { %1404 = vmax.xlane.f32.xlu0 %v1403_v30 }
 0x417   : > { %v1203_v31 = vpop.xlane.xlu1 %1202 }
 0x418   : > { %v1205_v32 = vsub.f32 %v1196_v20, %v1203_v31  ;;  %v1200_v33 = vpop.xlane.xlu0 %1199 }
 0x419   : > { %v1204_v34 = vsub.f32 %v1195_v23, %v1200_v33 }
 0x41a   : > { %v1208_v35 = vmul.f32 1.442695, %v1205_v32 }
 0x41b   : > { %v1206_v36 = vmul.f32 1.442695, %v1204_v34 }
 0x41c   : > { %8441 = vpow2.f32 %v1208_v35  ;;  %v1402_v37 = vpop.xlane.xlu0 %1401 }
 0x41d   : > { %8443 = vpow2.f32 %v1206_v36  ;;  %v1406_v38 = vsub.f32 %v1398_v26, %v1402_v37 }
 0x41f   : > { %v1408_v39 = vmul.f32 1.442695, %v1406_v38 }
 0x420   : > { %v1405_v40 = vpop.xlane.xlu0 %1404 }
 0x421   : > { %8445 = vpow2.f32 %v1408_v39  ;;  %v1407_v41 = vsub.f32 %v1399_v28, %v1405_v40 }
 0x423   : > { %v1410_v42 = vmul.f32 1.442695, %v1407_v41 }
 0x425   : > { %8447 = vpow2.f32 %v1410_v42  ;;  %v8923_v42 = vadd.f32 %v8849_v17, %v8809_v0 }
 0x426   : > { %v8442_v43 = vpop.eup %8441 }
 0x427   : > { %v8444_v44 = vpop.eup %8443  ;;  %v1213_v45 = vsel %vm1197_vm3, %v8442_v43, 0.0 }
 0x428   : > { %1214 = vadd.xlane.f32.xlu1 %v1213_v45  ;;  %v1210_v47 = vsel %vm1197_vm3, %v8444_v44, 0.0 }
 0x429   : > { %1211 = vadd.xlane.f32.xlu0 %v1210_v47 }
 0x42b   : > { %v8446_v48 = vpop.eup %8445 }
 0x42c   : > { %v1412_v50 = vsel %vm1197_vm3, %v8446_v48, 0.0 }
 0x42d   : > { %1413 = vadd.xlane.f32.xlu0 %v1412_v50 }
 0x42f   : > { %v8448_v51 = vpop.eup %8447 }
 0x430   : > { %v1415_v52 = vsel %vm1197_vm3, %v8448_v51, 0.0 }
 0x431   : > { %1416 = vadd.xlane.f32.xlu1 %v1415_v52 }
 0x442   : > { %8289 = vrot.lane.b32.xlu1 %v8821_v5, %s9620_s22  ;;  %s9624_s22 = smov 72  }
 0x443   : > { %8284 = vrot.lane.b32.xlu0 %v8821_v5, %s9626_s2  ;;  %s8903_s2 = scalar_lea.vmem %s9664_s5, %s8761_s23  ;;  %s9068_s5 = scalar_lea.vmem %s9671_s7, %s8800_s25 }
 0x444   : > { %v8906_v29 = vld [vmem:[%s8903_s2 + $0x8] sm:$0xff]  ;;  %v8911_v18 = vld [vmem:[%s8903_s2] sm:$0xff]  ;;  %s9162_s7 = scalar_lea.vmem %s9612_s12, %s8800_s25 }
 0x445   : > { %7543 = vmatprep.subr.mxu0 %v8906_v29 }
 0x446   : > { %8294 = vrot.lane.b32.xlu1 %v8821_v5, %s9636_s24  ;;  %7544 = vmatpush3.msra.mxu0 %v8906_v29 }
 0x447   : > { %1673 = vrot.lane.b32.xlu0 %v8812_v2, %s9634_s3  ;;  %7548 = vmatprep.subr.mxu0 %v8911_v18 }
 0x44a   : > { %1671 = vrot.lane.b32.xlu1 %v8815_v4, %s9634_s3 }
 0x44b   : > { %1956 = vrot.lane.b32.xlu0 %v8815_v4, %s9622_s27 }
 0x44e   : > { %8299 = vrot.lane.b32.xlu1 %v8821_v5, %s9624_s22  ;;  %s9638_s22 = smov 40  }
 0x452   : > { %1958 = vrot.lane.b32.xlu1 %v8812_v2, %s9622_s27  ;;  %s9640_s27 = smov 48  }
 0x4b5   : > { %v1215_v53 = vpop.xlane.xlu1 %1214 }
 0x4b6   : > { %v1212_v54 = vpop.xlane.xlu0 %1211 }
 0x4b7   : > { %8449 = vrcp.f32 %v1212_v54 }
 0x4b8   : > { %8451 = vrcp.f32 %v1215_v53 }
 0x4ba   : > { %v1414_v55 = vpop.xlane.xlu0 %1413 }
 0x4bb   : > { %8453 = vrcp.f32 %v1414_v55 }
 0x4be   : > { %v1417_v57 = vpop.xlane.xlu1 %1416  ;;  %v8285_v58 = vpop.permute.xlu0 %8284 }
 0x4bf   : > { %8455 = vrcp.f32 %v1417_v57  ;;  %v8287_v59 = vunpack.i.h.bf16 %v8285_v58  ;;  %v8286_v60 = vunpack.i.l.bf16 %v8285_v58 }
 0x4c1   : > { %v8450_v61 = vpop.eup %8449  ;;  %v7973_v62 = vpack.c.bf16 %v8287_v59, %v8286_v60 }
 0x4c2   : > { %v8452_v1 = vpop.eup %8451  ;;  %v8290_v3 = vpop.permute.xlu1 %8289  ;;  %v1218_v4 = vmul.f32 %v8450_v61, %v8444_v44 }
 0x4c3   : > { %v8292_v6 = vunpack.i.h.bf16 %v8290_v3  ;;  %v8291_v7 = vunpack.i.l.bf16 %v8290_v3  ;;  %7974 = vmatprep.subr.bf16.mxu1 %v7973_v62  ;;  %v1219_v8 = vmul.f32 %v8452_v1, %v8442_v43  ;;  %v1674_v25 = vpop.permute.xlu0 %1673  ;;  %v8927_v43 = vpack.i.bf16 %v8923_v42, %v8894_v27 }
 0x4c4   : > { %7976 = vmatpush3.bf16.msra.mxu1 %v7973_v62  ;;  %7526 = vmatprep.mubr.msk.f32.mxu1 %vm1197_vm3, %v1218_v4 }
 0x4c5   : > { %v8454_v2 = vpop.eup %8453  ;;  %v7983_v9 = vpack.c.bf16 %v8292_v6, %v8291_v7 }
 0x4c6   : > { %v8295_v10 = vpop.permute.xlu1 %8294  ;;  %v1420_v11 = vmul.f32 %v8454_v2, %v8446_v48 }
 0x4c7   : > { %v8297_v13 = vunpack.i.h.bf16 %v8295_v10  ;;  %v8296_v14 = vunpack.i.l.bf16 %v8295_v10  ;;  %7527 = vmatmul.mubr.msk.f32.vlgmr.msra.gmra.mrb[6].mxu1 %vm1197_vm3, %v1219_v8  ;;  %7984 = vmatprep.subr.bf16.mxu1 %v7983_v9  ;;  %v1957_v26 = vpop.permute.xlu0 %1956 }
 0x4c8   : > { %7986 = vmatpush3.bf16.msra.mxu1 %v7983_v9  ;;  %7540 = vmatprep.mubr.msk.f32.mxu1 %vm1197_vm3, %v1420_v11 }
 0x4c9   : > { %v8456_v15 = vpop.eup %8455  ;;  %v7987_v16 = vpack.c.bf16 %v8297_v13, %v8296_v14 }
 0x4ca   : > { %v1672_v19 = vpop.permute.xlu1 %1671  ;;  %v1421_v20 = vmul.f32 %v8456_v15, %v8448_v51 }
 0x4cb   : > { %7989 = vmatprep.subr.msk.bf16.mxu1 %vm8833_vm2, %v7987_v16 }
 0x4cc   : > { %7541 = vmatmul.mubr.msk.f32.vlgmr.msra.gmra.mrb[8].mxu1 %vm1197_vm3, %v1421_v20 }
 0x4cd   : > { %7557 = vmatprep.mubr.msk.f32.mxu1 %vm1111_vm1, %v1672_v19 }
 0x4ce   : > { %v8300_v21 = vpop.permute.xlu1 %8299 }
 0x4cf   : > { %v8302_v22 = vunpack.i.h.bf16 %v8300_v21  ;;  %v8301_v23 = vunpack.i.l.bf16 %v8300_v21 }
 0x4d1   : > { %v7997_v24 = vpack.c.bf16 %v8302_v22, %v8301_v23  ;;  %7992 = vmatpush3.bf16.xpose.msk.msra.mxu1 %vm8833_vm2, %v7987_v16  ;;  %v8965_v22 = vld [vmem:[%s8903_s2 + $0x10] sm:$0xff] }
 0x4d2   : > { %v1959_v28 = vpop.permute.xlu1 %1958 }
 0x4d3   : > { %7999 = vmatprep.subr.msk.bf16.mxu1 %vm8833_vm2, %v7997_v24 }
 0x4d8   : > { %7558 = vmatmul.mubr.msk.f32.vlgmr.msra.gmra.mrb[10].mxu1 %vm1111_vm1, %v1674_v25 }
 0x4d9   : > { %8002 = vmatpush3.bf16.xpose.msk.msra.mxu1 %vm8833_vm2, %v7997_v24  ;;  %7576 = vmatprep.mubr.msk.f32.mxu1 %vm1111_vm1, %v1957_v26 }
 0x4e0   : > { %7577 = vmatmul.mubr.msk.f32.vlgmr.msra.gmra.mrb[12].mxu1 %vm1111_vm1, %v1959_v28 }
 0x4e1   : > { %7595 = vmatprep.mubr.msk.f32.mxu1 %vm1111_vm1, %v8894_v27 }
 0x59a   : > { %v7528_v30 = vpop.f32.mrb[6].mxu1 }
 0x59b   : > { %v1298_v31 = vpop.f32.mrb[7].mxu1 }
 0x59f   : > { %v7542_v32 = vpop.f32.mrb[8].mxu1 }
 0x5a0   : > { %v1500_v33 = vpop.f32.mrb[9].mxu1 }
 0x5a1   : > { %7545 = vmatprep.mubr.msk.f32.mxu0 %vm1111_vm1, %v1500_v33 }
 0x5a2   : > { %7546 = vmatmul.mubr.msk.f32.vlgmr.msra.gmra.mrb[2].mxu0 %vm1111_vm1, %v7542_v32 }
 0x5a3   : > { %7550 = vmatprep.mubr.msk.f32.mxu0 %vm1111_vm1, %v1298_v31  ;;  %7549 = vmatpush3.msra.mxu0 %v8911_v18 }
 0x5aa   : > { %7551 = vmatmul.mubr.msk.f32.vlgmr.msra.gmra.mrb[2].mxu0 %vm1111_vm1, %v7528_v30 }
 0x5ab   : > { %v7559_v34 = vpop.f32.mrb[10].mxu1 }
 0x5ac   : > { %v1763_v35 = vmul.f32 0.35355338, %v7559_v34  ;;  %v1753_v36 = vpop.f32.mrb[11].mxu1 }
 0x5ad   : > { %v1762_v37 = vmul.f32 0.35355338, %v1753_v36 }
 0x5ae   : > { %v1767_v38 = vsel %vm1197_vm3, %v1763_v35, -inf }
 0x5af   : > { %1768 = vmax.xlane.f32.xlu1 %v1767_v38  ;;  %v1764_v39 = vsel %vm1197_vm3, %v1762_v37, -inf }
 0x5b0   : > { %1765 = vmax.xlane.f32.xlu0 %v1764_v39 }
 0x5b3   : > { %v7578_v40 = vpop.f32.mrb[12].mxu1 }
 0x5b4   : > { %v2038_v41 = vpop.f32.mrb[13].mxu1  ;;  %v2048_v8 = vmul.f32 0.35355338, %v7578_v40 }
 0x5b5   : > { %v2047_v44 = vmul.f32 0.35355338, %v2038_v41 }
 0x5b6   : > { %v2052_v9 = vsel %vm1197_vm3, %v2048_v8, -inf }
 0x5b7   : > { %v2049_v45 = vsel %vm1197_vm3, %v2047_v44, -inf }
 0x5c0   : > { %8309 = vrot.lane.b32.xlu1 %v8927_v43, %s9632_s21  ;;  %s9667_s21 = smov 104  }
 0x5c4   : > { %8314 = vrot.lane.b32.xlu1 %v8927_v43, %s9630_s29  ;;  %s9666_s29 = smov 72  }
 0x5c8   : > { %2441 = vrot.lane.b32.xlu1 %v8894_v27, %s9628_s1 }
 0x5ec   : > { %2050 = vmax.xlane.f32.xlu1 %v2049_v45 }
 0x5fd   : > { %8319 = vrot.lane.b32.xlu1 %v8821_v5, %s9638_s22  ;;  %s9197_s22 = scalar_lea.vmem %s9613_s13, %s8800_s25 }
 0x601   : > { %2805 = vrot.lane.b32.xlu1 %v8894_v27, %s9634_s3 }
 0x605   : > { %2807 = vrot.lane.b32.xlu1 %v8923_v42, %s9634_s3  ;;  %s9668_s3 = smov 56  }
 0x63c   : > { %v1769_v0 = vpop.xlane.xlu1 %1768 }
 0x63d   : > { %v1771_v17 = vsub.f32 %v1763_v35, %v1769_v0  ;;  %v1766_v47 = vpop.xlane.xlu0 %1765 }
 0x63e   : > { %v1770_v48 = vsub.f32 %v1762_v37, %v1766_v47 }
 0x63f   : > { %v1774_v50 = vmul.f32 1.442695, %v1771_v17 }
 0x640   : > { %v1772_v51 = vmul.f32 1.442695, %v1770_v48  ;;  %v8310_v52 = vpop.permute.xlu1 %8309 }
 0x641   : > { %8457 = vpow2.f32 %v1774_v50  ;;  %v8312_v53 = vunpack.i.h.bf16 %v8310_v52  ;;  %v8311_v54 = vunpack.i.l.bf16 %v8310_v52 }
 0x642   : > { %8459 = vpow2.f32 %v1772_v51 }
 0x643   : > { %v8007_v55 = vpack.c.bf16 %v8312_v53, %v8311_v54 }
 0x644   : > { %v8315_v57 = vpop.permute.xlu1 %8314 }
 0x645   : > { %v8317_v58 = vunpack.i.h.bf16 %v8315_v57  ;;  %v8316_v59 = vunpack.i.l.bf16 %v8315_v57  ;;  %8009 = vmatprep.subr.msk.bf16.mxu1 %vm8833_vm2, %v8007_v55 }
 0x646   : > { %8012 = vmatpush3.bf16.xpose.msk.msra.mxu1 %vm8833_vm2, %v8007_v55 }
 0x647   : > { %v8017_v60 = vpack.c.bf16 %v8317_v58, %v8316_v59 }
 0x648   : > { %v2442_v3 = vpop.permute.xlu1 %2441 }
 0x649   : > { %8019 = vmatprep.subr.msk.bf16.mxu1 %vm8833_vm2, %v8017_v60 }
 0x64b   : > { %v8458_v61 = vpop.eup %8457 }
 0x64c   : > { %v1779_v62 = vsel %vm1197_vm3, %v8458_v61, 0.0  ;;  %v8460_v1 = vpop.eup %8459 }
 0x64d   : > { %7596 = vmatmul.mubr.msk.f32.vlgmr.msra.gmra.mrb[14].mxu1 %vm1111_vm1, %v8923_v42  ;;  %1780 = vadd.xlane.f32.xlu0 %v1779_v62  ;;  %v1776_v4 = vsel %vm1197_vm3, %v8460_v1, 0.0 }
 0x64e   : > { %8022 = vmatpush3.bf16.xpose.msk.msra.mxu1 %vm8833_vm2, %v8017_v60  ;;  %7609 = vmatprep.mubr.msk.f32.mxu1 %vm1111_vm1, %v2442_v3 }
 0x651   : > { %1777 = vadd.xlane.f32.xlu0 %v1776_v4 }
 0x667   : > { %8304 = vrot.lane.b32.xlu0 %v8821_v5, %s9640_s27 }
 0x66b   : > { %2443 = vrot.lane.b32.xlu0 %v8923_v42, %s9628_s1  ;;  %s9665_s1 = smov 64  }
 0x679   : > { %v2051_v6 = vpop.xlane.xlu1 %2050 }
 0x67a   : > { %v2055_v7 = vsub.f32 %v2047_v44, %v2051_v6 }
 0x67c   : > { %v2057_v2 = vmul.f32 1.442695, %v2055_v7 }
 0x67d   : > { %v8320_v14 = vpop.permute.xlu1 %8319 }
 0x67e   : > { %8461 = vpow2.f32 %v2057_v2  ;;  %v8322_v26 = vunpack.i.h.bf16 %v8320_v14  ;;  %v8321_v28 = vunpack.i.l.bf16 %v8320_v14 }
 0x680   : > { %v8003_v32 = vpack.c.bf16 %v8322_v26, %v8321_v28 }
 0x681   : > { %v2806_v23 = vpop.permute.xlu1 %2805 }
 0x685   : > { %v2808_v0 = vpop.permute.xlu1 %2807 }
 0x688   : > { %v8960_v10 = vpop.eup %8461 }
 0x689   : > { %v2061_v11 = vsel %vm1197_vm3, %v8960_v10, 0.0 }
 0x68a   : > { %2053 = vmax.xlane.f32.xlu0 %v2052_v9 }
 0x68e   : > { %2062 = vadd.xlane.f32.xlu0 %v2061_v11 }
 0x6da   : > { %v1781_v13 = vpop.xlane.xlu0 %1780 }
 0x6db   : > { %8463 = vrcp.f32 %v1781_v13 }
 0x6de   : > { %v1778_v5 = vpop.xlane.xlu0 %1777 }
 0x6df   : > { %8465 = vrcp.f32 %v1778_v5 }
 0x6e2   : > { %v8305_v15 = vpop.permute.xlu0 %8304 }
 0x6e3   : > { %v8307_v16 = vunpack.i.h.bf16 %v8305_v15  ;;  %v8306_v19 = vunpack.i.l.bf16 %v8305_v15 }
 0x6e5   : > { %v7993_v20 = vpack.c.bf16 %v8307_v16, %v8306_v19  ;;  %v8464_v24 = vpop.eup %8463 }
 0x6e6   : > { %v2444_v21 = vpop.permute.xlu0 %2443  ;;  %v1785_v31 = vmul.f32 %v8464_v24, %v8458_v61 }
 0x6e7   : > { %7994 = vmatprep.subr.bf16.mxu0 %v7993_v20  ;;  %7610 = vmatmul.mubr.msk.f32.vlgmr.msra.gmra.mrb[16].mxu1 %vm1111_vm1, %v2444_v21 }
 0x6e8   : > { %7996 = vmatpush3.bf16.msra.mxu0 %v7993_v20  ;;  %7633 = vmatprep.mubr.msk.f32.mxu1 %vm1111_vm1, %v2806_v23 }
 0x6e9   : > { %v8466_v25 = vpop.eup %8465  ;;  %7567 = vmatprep.subr.mxu0 %v8965_v22 }
 0x6ea   : > { %v1784_v30 = vmul.f32 %v8466_v25, %v8460_v1 }
 0x6ec   : > { %7564 = vmatprep.mubr.msk.f32.mxu0 %vm1197_vm3, %v1784_v30 }
 0x6ed   : > { %7565 = vmatmul.mubr.msk.f32.vlgmr.msra.gmra.mrb[4].mxu0 %vm1197_vm3, %v1785_v31 }
 0x6ee   : > { %7568 = vmatpush3.msra.mxu0 %v8965_v22 }
 0x6ef   : > { %8004 = vmatprep.subr.bf16.mxu0 %v8003_v32 }
 0x717   : > { %v2054_v33 = vpop.xlane.xlu0 %2053 }
 0x718   : > { %v2056_v34 = vsub.f32 %v2048_v8, %v2054_v33 }
 0x71a   : > { %v2059_v35 = vmul.f32 1.442695, %v2056_v34 }
 0x71b   : > { %v2063_v17 = vpop.xlane.xlu0 %2062 }
 0x71c   : > { %8467 = vpow2.f32 %v2059_v35 }
 0x71d   : > { %8469 = vrcp.f32 %v2063_v17 }
 0x720   : > { %v7597_v36 = vpop.f32.mrb[14].mxu1 }
 0x721   : > { %v2321_v37 = vpop.f32.mrb[15].mxu1  ;;  %v2331_v44 = vmul.f32 0.35355338, %v7597_v36 }
 0x722   : > { %v2330_v38 = vmul.f32 0.35355338, %v2321_v37 }
 0x723   : > { %v2335_v45 = vsel %vm1197_vm3, %v2331_v44, -inf }
 0x724   : > { %v2332_v39 = vsel %vm1197_vm3, %v2330_v38, -inf }
 0x725   : > { %2333 = vmax.xlane.f32.xlu1 %v2332_v39 }
 0x726   : > { %v8468_v40 = vpop.eup %8467 }
 0x727   : > { %v2064_v41 = vsel %vm1197_vm3, %v8468_v40, 0.0  ;;  %v8470_v62 = vpop.eup %8469 }
 0x728   : > { %2065 = vadd.xlane.f32.xlu0 %v2064_v41  ;;  %v2069_v8 = vmul.f32 %v8470_v62, %v8960_v10  ;;  %v8996_v10 = vld [vmem:[%s8903_s2 + $0x18] sm:$0xff] }
 0x73e   : > { %8324 = vrot.lane.b32.xlu0 %v8927_v43, %s9636_s24  ;;  %s9670_s24 = smov 40  }
 0x75d   : > { %2336 = vmax.xlane.f32.xlu0 %v2335_v45 }
 0x7b2   : > { %v2334_v47 = vpop.xlane.xlu1 %2333 }
 0x7b3   : > { %v2338_v48 = vsub.f32 %v2330_v38, %v2334_v47 }
 0x7b5   : > { %v2340_v50 = vmul.f32 1.442695, %v2338_v48  ;;  %v2066_v51 = vpop.xlane.xlu0 %2065 }
 0x7b7   : > { %8471 = vpow2.f32 %v2340_v50 }
 0x7b8   : > { %8473 = vrcp.f32 %v2066_v51 }
 0x7b9   : > { %v8325_v52 = vpop.permute.xlu0 %8324 }
 0x7ba   : > { %v8327_v53 = vunpack.i.h.bf16 %v8325_v52  ;;  %v8326_v54 = vunpack.i.l.bf16 %v8325_v52  ;;  %v7611_v55 = vpop.f32.mrb[16].mxu1 }
 0x7bb   : > { %v2523_v57 = vpop.f32.mrb[17].mxu1  ;;  %v2533_v60 = vmul.f32 0.35355338, %v7611_v55 }
 0x7bc   : > { %v8027_v58 = vpack.c.bf16 %v8327_v53, %v8326_v54  ;;  %v2532_v59 = vmul.f32 0.35355338, %v2523_v57 }
 0x7bd   : > { %v2537_v7 = vsel %vm1197_vm3, %v2533_v60, -inf }
 0x7be   : > { %8029 = vmatprep.subr.msk.bf16.mxu1 %vm8833_vm2, %v8027_v58  ;;  %v2534_v61 = vsel %vm1197_vm3, %v2532_v59, -inf }
 0x7bf   : > { %2535 = vmax.xlane.f32.xlu0 %v2534_v61  ;;  %8032 = vmatpush3.bf16.xpose.msk.msra.mxu1 %vm8833_vm2, %v8027_v58 }
 0x7c0   : > { %v7566_v1 = vpop.f32.mrb[4].mxu0 }
 0x7c1   : > { %v8472_v3 = vpop.eup %8471  ;;  %v1864_v4 = vpop.f32.mrb[5].mxu0 }
 0x7c2   : > { %7569 = vmatprep.mubr.msk.f32.mxu0 %vm1111_vm1, %v1864_v4  ;;  %v2344_v6 = vsel %vm1197_vm3, %v8472_v3, 0.0  ;;  %v8474_v2 = vpop.eup %8473 }
 0x7c3   : > { %2345 = vadd.xlane.f32.xlu1 %v2344_v6  ;;  %2538 = vmax.xlane.f32.xlu0 %v2537_v7  ;;  %v2070_v9 = vmul.f32 %v8474_v2, %v8468_v40 }
 0x7c4   : > { %7570 = vmatmul.mubr.msk.f32.vlgmr.msra.gmra.mrb[2].mxu0 %vm1111_vm1, %v7566_v1 }
 0x7c5   : > { %8006 = vmatpush3.bf16.msra.mxu0 %v8003_v32  ;;  %7583 = vmatprep.mubr.msk.f32.mxu0 %vm1197_vm3, %v2069_v8 }
 0x7c6   : > { %7634 = vmatmul.mubr.msk.f32.vlgmr.msra.gmra.mrb[18].mxu1 %vm1111_vm1, %v2808_v0  ;;  %7586 = vmatprep.subr.mxu0 %v8996_v10 }
 0x7c8   : > { %7584 = vmatmul.mubr.msk.f32.vlgmr.msra.gmra.mrb[6].mxu0 %vm1197_vm3, %v2070_v9 }
 0x7c9   : > { %7587 = vmatpush3.msra.mxu0 %v8996_v10 }
 0x7ea   : > { %v2337_v11 = vpop.xlane.xlu0 %2336 }
 0x7eb   : > { %v2339_v13 = vsub.f32 %v2331_v44, %v2337_v11 }
 0x7ed   : > { %v2342_v5 = vmul.f32 1.442695, %v2339_v13 }
 0x7ef   : > { %8475 = vpow2.f32 %v2342_v5 }
 0x7f9   : > { %v8991_v14 = vpop.eup %8475 }
 0x7fa   : > { %v2347_v15 = vsel %vm1197_vm3, %v8991_v14, 0.0 }
 0x7fb   : > { %2348 = vadd.xlane.f32.xlu0 %v2347_v15  ;;  %v9041_v15 = vld [vmem:[%s9038_s4] ss:$0 sm:$0xff] }
 0x84c   : > { %v2536_v16 = vpop.xlane.xlu0 %2535 }
 0x84d   : > { %v2540_v19 = vsub.f32 %v2532_v59, %v2536_v16 }
 0x84f   : > { %v2542_v20 = vmul.f32 1.442695, %v2540_v19 }
 0x850   : > { %v2539_v21 = vpop.xlane.xlu0 %2538  ;;  %v2346_v31 = vpop.xlane.xlu1 %2345 }
 0x851   : > { %8477 = vpow2.f32 %v2542_v20  ;;  %v2541_v23 = vsub.f32 %v2533_v60, %v2539_v21 }
 0x853   : > { %v2544_v24 = vmul.f32 1.442695, %v2541_v23 }
 0x855   : > { %8479 = vpow2.f32 %v2544_v24 }
 0x856   : > { %8481 = vrcp.f32 %v2346_v31 }
 0x85b   : > { %v8478_v25 = vpop.eup %8477 }
 0x85c   : > { %v2546_v26 = vsel %vm1197_vm3, %v8478_v25, 0.0 }
 0x85d   : > { %2547 = vadd.xlane.f32.xlu1 %v2546_v26 }
 0x85f   : > { %v8480_v28 = vpop.eup %8479 }
 0x860   : > { %v2549_v30 = vsel %vm1197_vm3, %v8480_v28, 0.0  ;;  %v8482_v33 = vpop.eup %8481 }
 0x861   : > { %2550 = vadd.xlane.f32.xlu0 %v2549_v30  ;;  %v2352_v40 = vmul.f32 %v8482_v33, %v8472_v3 }
 0x86e   : > { %8329 = vrot.lane.b32.xlu1 %v8927_v43, %s9665_s1 }
 0x872   : > { %8339 = vrot.lane.b32.xlu1 %v8927_v43, %s9666_s29 }
 0x876   : > { %3090 = vrot.lane.b32.xlu1 %v8894_v27, %s9667_s21 }
 0x877   : > { %8334 = vrot.lane.b32.xlu0 %v8927_v43, %s9668_s3 }
 0x87a   : > { %3092 = vrot.lane.b32.xlu1 %v8923_v42, %s9667_s21 }
 0x888   : > { %v2349_v42 = vpop.xlane.xlu0 %2348 }
 0x889   : > { %8483 = vrcp.f32 %v2349_v42 }
 0x893   : > { %v8484_v48 = vpop.eup %8483 }
 0x894   : > { %v2353_v59 = vmul.f32 %v8484_v48, %v8991_v14 }
 0x899   : > { %v7635_v32 = vpop.f32.mrb[18].mxu1 }
 0x89a   : > { %v2897_v34 = vmul.f32 0.35355338, %v7635_v32  ;;  %v2887_v35 = vpop.f32.mrb[19].mxu1 }
 0x89b   : > { %v7585_v36 = vpop.f32.mrb[6].mxu0  ;;  %v2896_v37 = vmul.f32 0.35355338, %v2887_v35 }
 0x89c   : > { %v2149_v38 = vpop.f32.mrb[7].mxu0  ;;  %v2901_v39 = vsel %vm1197_vm3, %v2897_v34, -inf }
 0x89d   : > { %7588 = vmatprep.mubr.msk.f32.mxu0 %vm1111_vm1, %v2149_v38  ;;  %v2898_v27 = vsel %vm1197_vm3, %v2896_v37, -inf }
 0x89e   : > { %7589 = vmatmul.mubr.msk.f32.vlgmr.msra.gmra.mrb[2].mxu0 %vm1111_vm1, %v7585_v36  ;;  %2902 = vmax.xlane.f32.xlu1 %v2901_v39 }
 0x89f   : > { %2899 = vmax.xlane.f32.xlu0 %v2898_v27  ;;  %7602 = vmatprep.mubr.msk.f32.mxu0 %vm1197_vm3, %v2352_v40 }
 0x8ea   : > { %v2548_v41 = vpop.xlane.xlu1 %2547 }
 0x8eb   : > { %8485 = vrcp.f32 %v2548_v41 }
 0x8ee   : > { %v8330_v44 = vpop.permute.xlu1 %8329  ;;  %v2551_v45 = vpop.xlane.xlu0 %2550 }
 0x8ef   : > { %v8332_v0 = vunpack.i.h.bf16 %v8330_v44  ;;  %v8331_v17 = vunpack.i.l.bf16 %v8330_v44  ;;  %8487 = vrcp.f32 %v2551_v45 }
 0x8f1   : > { %v8013_v47 = vpack.c.bf16 %v8332_v0, %v8331_v17 }
 0x8f2   : > { %v8340_v50 = vpop.permute.xlu1 %8339  ;;  %v8335_v51 = vpop.permute.xlu0 %8334 }
 0x8f3   : > { %v8342_v52 = vunpack.i.h.bf16 %v8340_v50  ;;  %v8341_v53 = vunpack.i.l.bf16 %v8340_v50  ;;  %v8337_v54 = vunpack.i.h.bf16 %v8335_v51  ;;  %v8336_v55 = vunpack.i.l.bf16 %v8335_v51  ;;  %8014 = vmatprep.subr.bf16.mxu0 %v8013_v47 }
 0x8f4   : > { %8016 = vmatpush3.bf16.msra.mxu0 %v8013_v47 }
 0x8f5   : > { %v8486_v57 = vpop.eup %8485  ;;  %v8037_v58 = vpack.c.bf16 %v8342_v52, %v8341_v53  ;;  %v8023_v60 = vpack.c.bf16 %v8337_v54, %v8336_v55 }
 0x8f6   : > { %v3091_v61 = vpop.permute.xlu1 %3090  ;;  %v2554_v62 = vmul.f32 %v8486_v57, %v8478_v25 }
 0x8f7   : > { %7603 = vmatmul.mubr.msk.f32.vlgmr.msra.gmra.mrb[8].mxu0 %vm1197_vm3, %v2353_v59  ;;  %8024 = vmatprep.subr.bf16.mxu0 %v8023_v60 }
 0x8f8   : > { %8039 = vmatprep.subr.msk.bf16.mxu1 %vm8833_vm2, %v8037_v58  ;;  %7652 = vmatprep.mubr.msk.f32.mxu1 %vm1111_vm1, %v3091_v61 }
 0x8f9   : > { %v8488_v1 = vpop.eup %8487  ;;  %8026 = vmatpush3.bf16.msra.mxu0 %v8023_v60  ;;  %7616 = vmatprep.mubr.msk.f32.mxu0 %vm1197_vm3, %v2554_v62 }
 0x8fa   : > { %8042 = vmatpush3.bf16.xpose.msk.msra.mxu1 %vm8833_vm2, %v8037_v58  ;;  %v2555_v3 = vmul.f32 %v8488_v1, %v8480_v28  ;;  %7619 = vmatprep.subr.mxu0 %v8906_v29  ;;  %v3093_v4 = vpop.permute.xlu1 %3092  ;;  %v9077_v1 = vld [vmem:[%s9068_s5] ss:$0 sm:$0xff] }
 0x8fc   : > { %7617 = vmatmul.mubr.msk.f32.vlgmr.msra.gmra.mrb[10].mxu0 %vm1197_vm3, %v2555_v3 }
 0x8fd   : > { %7620 = vmatpush3.msra.mxu0 %v8906_v29 }
 0x8fe   : > { %7624 = vmatprep.subr.mxu0 %v8911_v18 }
 0x901   : > { %7653 = vmatmul.mubr.msk.f32.vlgmr.msra.gmra.mrb[20].mxu1 %vm1111_vm1, %v3093_v4  ;;  %v9082_v4 = vld [vmem:[%s9074_s19] ss:$0 sm:$0xff] }
 0x92b   : > { %v2903_v6 = vpop.xlane.xlu1 %2902 }
 0x92c   : > { %v2905_v7 = vsub.f32 %v2897_v34, %v2903_v6  ;;  %v2900_v2 = vpop.xlane.xlu0 %2899 }
 0x92d   : > { %v2904_v8 = vsub.f32 %v2896_v37, %v2900_v2 }
 0x92e   : > { %v2908_v9 = vmul.f32 1.442695, %v2905_v7 }
 0x92f   : > { %v2906_v11 = vmul.f32 1.442695, %v2904_v8 }
 0x930   : > { %8489 = vpow2.f32 %v2908_v9 }
 0x931   : > { %8491 = vpow2.f32 %v2906_v11 }
 0x93a   : > { %v8490_v13 = vpop.eup %8489 }
 0x93b   : > { %v2913_v5 = vsel %vm1197_vm3, %v8490_v13, 0.0  ;;  %v8492_v14 = vpop.eup %8491 }
 0x93c   : > { %2914 = vadd.xlane.f32.xlu0 %v2913_v5  ;;  %v2910_v29 = vsel %vm1197_vm3, %v8492_v14, 0.0 }
 0x940   : > { %2911 = vadd.xlane.f32.xlu0 %v2910_v29 }
 0x956   : > { %8344 = vrot.lane.b32.xlu0 %v8927_v43, %s9640_s27  ;;  %s9103_s27 = scalar_lea.vmem %s9673_s9, %s8761_s23  ;;  %s7240_s23 = sshll.u32 %s9685_s30, 8 }
 0x957   : > { %s9121_s0 = scalar_lea.vmem %s9674_s11, %s7240_s23  ;;  %s9677_s9 = smov 112  }
 0x958   : > { %s9680_s23 = smov 120   ;;  %s9681_s11 = smov 48  }
 0x971   : > { %v9043_v16 = vpop.f32.mrb[2].mxu0 }
 0x972   : > { %v2230_v19 = vpop.f32.mrb[3].mxu0  ;;  %v3383_v3 = vadd.f32 %v9043_v16, %v9041_v15 }
 0x973   : > { %v3382_v20 = vadd.f32 %v9041_v15, %v2230_v19 }
 0x974   : > { %v3387_v2 = vadd.f32 %v3383_v3, %v8787_v49  ;;  %v3622_v3 = vld [vmem:[%s9121_s0 + $0x70] sm:$0xff] }
 0x975   : > { %v3386_v21 = vadd.f32 %v3382_v20, %v8783_v46 }
 0x976   : > { %v3395_v11 = vsel %vm919_vm0, %v3387_v2, 0.0 }
 0x977   : > { %v3392_v23 = vsel %vm919_vm0, %v3386_v21, 0.0 }
 0x978   : > { %3393 = vadd.xlane.f32.xlu0 %v3392_v23 }
 0x9c9   : > { %v2915_v24 = vpop.xlane.xlu0 %2914 }
 0x9ca   : > { %v7604_v25 = vpop.f32.mrb[8].mxu0 }
 0x9cb   : > { %v2432_v26 = vpop.f32.mrb[9].mxu0 }
 0x9cd   : > { %v2912_v28 = vpop.xlane.xlu0 %2911 }
 0x9ce   : > { %8493 = vrcp.f32 %v2912_v28 }
 0x9cf   : > { %8495 = vrcp.f32 %v2915_v24  ;;  %v7618_v30 = vpop.f32.mrb[10].mxu0 }
 0x9d0   : > { %v2634_v31 = vpop.f32.mrb[11].mxu0 }
 0x9d1   : > { %v8345_v32 = vpop.permute.xlu0 %8344  ;;  %7621 = vmatprep.mubr.msk.f32.mxu0 %vm1111_vm1, %v2634_v31  ;;  %v3464_v31 = vld [vmem:[%s9103_s27] sm:$0xff] }
 0x9d2   : > { %v8347_v33 = vunpack.i.h.bf16 %v8345_v32  ;;  %v8346_v34 = vunpack.i.l.bf16 %v8345_v32  ;;  %7622 = vmatmul.mubr.msk.f32.vlgmr.msra.gmra.mrb[12].mxu0 %vm1111_vm1, %v7618_v30  ;;  %v3465_v32 = vld [vmem:[%s9103_s27 + $0x8] sm:$0xff] }
 0x9d3   : > { %7626 = vmatprep.mubr.msk.f32.mxu0 %vm1111_vm1, %v2432_v26  ;;  %7625 = vmatpush3.msra.mxu0 %v8911_v18 }
 0x9d4   : > { %v8033_v46 = vpack.c.bf16 %v8347_v33, %v8346_v34  ;;  %v7654_v35 = vpop.f32.mrb[20].mxu1  ;;  %v8047_v33 = vpack.c.bf16 %v3465_v32, %v3464_v31  ;;  %v3467_v34 = vld [vmem:[%s9103_s27 + $0x18] sm:$0xff] }
 0x9d5   : > { %v3172_v36 = vpop.f32.mrb[21].mxu1  ;;  %v3182_v39 = vmul.f32 0.35355338, %v7654_v35 }
 0x9d6   : > { %v3181_v37 = vmul.f32 0.35355338, %v3172_v36  ;;  %8034 = vmatprep.subr.bf16.mxu0 %v8033_v46  ;;  %8048 = vmatprep.subr.bf16.mxu1 %v8047_v33 }
 0x9d7   : > { %v3186_v18 = vsel %vm1197_vm3, %v3182_v39, -inf  ;;  %8050 = vmatpush3.bf16.msra.mxu1 %v8047_v33 }
 0x9d8   : > { %v8494_v38 = vpop.eup %8493  ;;  %v3183_v27 = vsel %vm1197_vm3, %v3181_v37, -inf }
 0x9d9   : > { %v8496_v40 = vpop.eup %8495  ;;  %3184 = vmax.xlane.f32.xlu1 %v3183_v27  ;;  %v2918_v42 = vmul.f32 %v8494_v38, %v8492_v14 }
 0x9da   : > { %7627 = vmatmul.mubr.msk.f32.vlgmr.msra.gmra.mrb[12].mxu0 %vm1111_vm1, %v7604_v25  ;;  %v2919_v41 = vmul.f32 %v8496_v40, %v8490_v13 }
 0x9db   : > { %8036 = vmatpush3.bf16.msra.mxu0 %v8033_v46  ;;  %7640 = vmatprep.mubr.msk.f32.mxu0 %vm1197_vm3, %v2918_v42 }
 0x9dc   : > { %7643 = vmatprep.subr.mxu0 %v8965_v22 }
 0x9dd   : > { %3187 = vmax.xlane.f32.xlu1 %v3186_v18  ;;  %v3608_v18 = vld [vmem:[%s9121_s0] sm:$0xff] }
 0x9de   : > { %7641 = vmatmul.mubr.msk.f32.vlgmr.msra.gmra.mrb[14].mxu0 %vm1197_vm3, %v2919_v41 }
 0x9df   : > { %7644 = vmatpush3.msra.mxu0 %v8965_v22 }
 0xa05   : > { %v3394_v44 = vpop.xlane.xlu0 %3393 }
 0xa06   : > { %v3404_v45 = vmul.f32 0.03125, %v3394_v44  ;;  %v3609_v44 = vld [vmem:[%s9121_s0 + $0x8] sm:$0xff] }
 0xa08   : > { %v3408_v0 = vsub.f32 %v3386_v21, %v3404_v45  ;;  %v8055_v45 = vpack.c.bf16 %v3609_v44, %v3608_v18 }
 0xa0a   : > { %v3412_v17 = vmul.f32 %v3408_v0, %v3408_v0 }
 0xa0c   : > { %v3416_v47 = vsel %vm919_vm0, %v3412_v17, 0.0  ;;  %v3611_v17 = vld [vmem:[%s9121_s0 + $0x18] sm:$0xff] }
 0xa0d   : > { %3417 = vadd.xlane.f32.xlu0 %v3416_v47 }
 0xa66   : > { %v3185_v48 = vpop.xlane.xlu1 %3184 }
 0xa67   : > { %v3189_v50 = vsub.f32 %v3181_v37, %v3185_v48  ;;  %v3612_v48 = vld [vmem:[%s9121_s0 + $0x20] sm:$0xff] }
 0xa69   : > { %v3191_v53 = vmul.f32 1.442695, %v3189_v50  ;;  %v3613_v50 = vld [vmem:[%s9121_s0 + $0x28] sm:$0xff] }
 0xa6a   : > { %v3188_v51 = vpop.xlane.xlu1 %3187 }
 0xa6b   : > { %v3190_v52 = vsub.f32 %v3182_v39, %v3188_v51  ;;  %v8063_v51 = vpack.c.bf16 %v3613_v50, %v3612_v48  ;;  %v9165_v48 = vld [vmem:[%s9162_s7] ss:$0 sm:$0xff] }
 0xa6d   : > { %v3193_v54 = vmul.f32 1.442695, %v3190_v52  ;;  %v3614_v52 = vld [vmem:[%s9121_s0 + $0x30] sm:$0xff] }
 0xa6f   : > { %8497 = vpow2.f32 %v3193_v54 }
 0xa70   : > { %8499 = vpow2.f32 %v3191_v53  ;;  %v3615_v53 = vld [vmem:[%s9121_s0 + $0x38] sm:$0xff] }
 0xa71   : > { %v8067_v54 = vpack.c.bf16 %v3615_v53, %v3614_v52 }
 0xa79   : > { %v8498_v55 = vpop.eup %8497 }
 0xa7a   : > { %v3198_v22 = vsel %vm1197_vm3, %v8498_v55, 0.0  ;;  %v8500_v57 = vpop.eup %8499 }
 0xa7b   : > { %3199 = vadd.xlane.f32.xlu1 %v3198_v22  ;;  %v3195_v58 = vsel %vm1197_vm3, %v8500_v57, 0.0  ;;  %v3617_v22 = vld [vmem:[%s9121_s0 + $0x48] sm:$0xff] }
 0xa7f   : > { %3196 = vadd.xlane.f32.xlu1 %v3195_v58  ;;  %v3618_v58 = vld [vmem:[%s9121_s0 + $0x50] sm:$0xff] }
 0xa90   : > { %8349 = vrot.lane.b32.xlu1 %v8927_v43, %s9670_s24 }
 0xa9a   : > { %v3418_v59 = vpop.xlane.xlu0 %3417 }
 0xa9b   : > { %v3428_v60 = vmul.f32 0.03125, %v3418_v59  ;;  %v3619_v59 = vld [vmem:[%s9121_s0 + $0x58] sm:$0xff] }
 0xa9d   : > { %v3432_v61 = vadd.f32 1e-12, %v3428_v60  ;;  %v3620_v60 = vld [vmem:[%s9121_s0 + $0x60] sm:$0xff] }
 0xa9f   : > { %8501 = vrsqrt.f32 %v3432_v61  ;;  %v8075_v61 = vpack.c.bf16 %v3619_v59, %v3618_v58 }
 0xaa9   : > { %v8502_v62 = vpop.eup %8501 }
 0xaaa   : > { %v3440_v43 = vmul.f32 %v8502_v62, %v3408_v0  ;;  %v3610_v0 = vld [vmem:[%s9121_s0 + $0x10] sm:$0xff]  ;;  %v3621_v62 = vld [vmem:[%s9121_s0 + $0x68] sm:$0xff] }
 0xaab   : > { %v8059_v47 = vpack.c.bf16 %v3611_v17, %v3610_v0 }
 0xaac   : > { %v3450_v6 = vmul.f32 %v9077_v1, %v3440_v43  ;;  %v8079_v43 = vpack.c.bf16 %v3621_v62, %v3620_v60 }
 0xaae   : > { %v9086_v7 = vadd.f32 %v9082_v4, %v3450_v6  ;;  %v3623_v6 = vld [vmem:[%s9121_s0 + $0x78] sm:$0xff] }
 0xab0   : > { %7675 = vmatprep.mubr.msk.f32.mxu1 %vm919_vm0, %v9086_v7 }
 0xab1   : > { %v7642_v8 = vpop.f32.mrb[14].mxu0 }
 0xab2   : > { %v2998_v9 = vpop.f32.mrb[15].mxu0 }
 0xab3   : > { %7645 = vmatprep.mubr.msk.f32.mxu0 %vm1111_vm1, %v2998_v9 }
 0xab4   : > { %3396 = vadd.xlane.f32.xlu1 %v3395_v11  ;;  %7646 = vmatmul.mubr.msk.f32.vlgmr.msra.gmra.mrb[12].mxu0 %vm1111_vm1, %v7642_v8  ;;  %v9146_v8 = vld [vmem:[%s9143_s6] ss:$0 sm:$0xff] }
 0xb08   : > { %v3200_v13 = vpop.xlane.xlu1 %3199 }
 0xb09   : > { %8503 = vrcp.f32 %v3200_v13 }
 0xb0c   : > { %v3197_v5 = vpop.xlane.xlu1 %3196 }
 0xb0d   : > { %8505 = vrcp.f32 %v3197_v5 }
 0xb10   : > { %v8350_v14 = vpop.permute.xlu1 %8349 }
 0xb11   : > { %v8352_v29 = vunpack.i.h.bf16 %v8350_v14  ;;  %v8351_v16 = vunpack.i.l.bf16 %v8350_v14 }
 0xb13   : > { %v8043_v49 = vpack.c.bf16 %v8352_v29, %v8351_v16  ;;  %v8504_v19 = vpop.eup %8503 }
 0xb14   : > { %v3204_v23 = vmul.f32 %v8504_v19, %v8498_v55  ;;  %v3616_v55 = vld [vmem:[%s9121_s0 + $0x40] sm:$0xff] }
 0xb15   : > { %8044 = vmatprep.subr.bf16.mxu0 %v8043_v49 }
 0xb16   : > { %8046 = vmatpush3.bf16.msra.mxu0 %v8043_v49 }
 0xb17   : > { %v8506_v20 = vpop.eup %8505  ;;  %7662 = vmatprep.subr.mxu0 %v8996_v10 }
 0xb18   : > { %v3203_v21 = vmul.f32 %v8506_v20, %v8500_v57  ;;  %v8071_v57 = vpack.c.bf16 %v3617_v22, %v3616_v55 }
 0xb1a   : > { %7659 = vmatprep.mubr.msk.f32.mxu0 %vm1197_vm3, %v3203_v21 }
 0xb1b   : > { %7660 = vmatmul.mubr.msk.f32.vlgmr.msra.gmra.mrb[16].mxu0 %vm1197_vm3, %v3204_v23 }
 0xb1c   : > { %7663 = vmatpush3.msra.mxu0 %v8996_v10  ;;  %v3466_v10 = vld [vmem:[%s9103_s27 + $0x10] sm:$0xff] }
 0xb1d   : > { %v8051_v46 = vpack.c.bf16 %v3467_v34, %v3466_v10  ;;  %8056 = vmatprep.subr.bf16.mxu0 %v8055_v45 }
 0xb1f   : > { %8052 = vmatprep.subr.bf16.mxu1 %v8051_v46 }
 0xb20   : > { %8054 = vmatpush3.bf16.msra.mxu1 %v8051_v46 }
 0xb41   : > { %v3397_v24 = vpop.xlane.xlu1 %3396 }
 0xb42   : > { %v3405_v25 = vmul.f32 0.03125, %v3397_v24 }
 0xb44   : > { %v3409_v26 = vsub.f32 %v3387_v2, %v3405_v25  ;;  %v8083_v2 = vpack.c.bf16 %v3623_v6, %v3622_v3 }
 0xb46   : > { %v3413_v28 = vmul.f32 %v3409_v26, %v3409_v26 }
 0xb48   : > { %v3419_v30 = vsel %vm919_vm0, %v3413_v28, 0.0 }
 0xb49   : > { %3420 = vadd.xlane.f32.xlu0 %v3419_v30 }
 0xbd6   : > { %v3421_v35 = vpop.xlane.xlu0 %3420 }
 0xbd7   : > { %v3429_v36 = vmul.f32 0.03125, %v3421_v35 }
 0xbd9   : > { %v3433_v37 = vadd.f32 1e-12, %v3429_v36 }
 0xbdb   : > { %8507 = vrsqrt.f32 %v3433_v37 }
 0xbe5   : > { %v8508_v38 = vpop.eup %8507 }
 0xbe6   : > { %v3441_v39 = vmul.f32 %v8508_v38, %v3409_v26 }
 0xbe8   : > { %v3451_v27 = vmul.f32 %v9077_v1, %v3441_v39 }
 0xbea   : > { %v9111_v40 = vadd.f32 %v9082_v4, %v3451_v27 }
 0xbec   : > { %7676 = vmatmul.mubr.msk.f32.vlgmr.msra.gmra.mrb[22].mxu1 %vm919_vm0, %v9111_v40 }
 0xbee   : > { %v7661_v42 = vpop.f32.mrb[16].mxu0 }
 0xbef   : > { %v3283_v41 = vpop.f32.mrb[17].mxu0 }
 0xbf0   : > { %7664 = vmatprep.mubr.msk.f32.mxu0 %vm1111_vm1, %v3283_v41 }
 0xbf1   : > { %7665 = vmatmul.mubr.msk.f32.vlgmr.msra.gmra.mrb[12].mxu0 %vm1111_vm1, %v7661_v42 }
 0xbf2   : > { %8058 = vmatpush3.bf16.msra.mxu0 %v8055_v45 }
 0xbf3   : > { %8060 = vmatprep.subr.bf16.mxu0 %v8059_v47 }
 0xbf6   : > { %8062 = vmatpush3.bf16.msra.mxu0 %v8059_v47 }
 0xbf7   : > { %8064 = vmatprep.subr.bf16.mxu0 %v8063_v51 }
 0xbfa   : > { %8066 = vmatpush3.bf16.msra.mxu0 %v8063_v51 }
 0xbfb   : > { %8068 = vmatprep.subr.bf16.mxu0 %v8067_v54 }
 0xbfe   : > { %8070 = vmatpush3.bf16.msra.mxu0 %v8067_v54 }
 0xbff   : > { %8072 = vmatprep.subr.bf16.mxu0 %v8071_v57 }
 0xc02   : > { %8074 = vmatpush3.bf16.msra.mxu0 %v8071_v57 }
 0xc03   : > { %8076 = vmatprep.subr.bf16.mxu0 %v8075_v61 }
 0xc06   : > { %8078 = vmatpush3.bf16.msra.mxu0 %v8075_v61 }
 0xc07   : > { %8080 = vmatprep.subr.bf16.mxu0 %v8079_v43 }
 0xc0a   : > { %8082 = vmatpush3.bf16.msra.mxu0 %v8079_v43 }
 0xc0b   : > { %8084 = vmatprep.subr.bf16.mxu0 %v8083_v2 }
 0xc0e   : > { %8086 = vmatpush3.bf16.msra.mxu0 %v8083_v2 }
 0xcbf   : > { %v7677_v9 = vpop.f32.mrb[22].mxu1 }
 0xcc0   : > { %v3559_v11 = vadd.f32 %v7677_v9, %v9146_v8  ;;  %v3553_v13 = vpop.f32.mrb[23].mxu1 }
 0xcc1   : > { %v3554_v5 = vadd.f32 %v9146_v8, %v3553_v13 }
 0xcc2   : > { %v3573_v14 = vmul.f32 %v3559_v11, %v3559_v11 }
 0xcc3   : > { %v3572_v29 = vmul.f32 %v3554_v5, %v3554_v5 }
 0xcc4   : > { %v3577_v16 = vmul.f32 %v3573_v14, %v3559_v11  ;;  %v7666_v49 = vpop.f32.mrb[12].mxu0 }
 0xcc5   : > { %v3576_v19 = vmul.f32 %v3572_v29, %v3554_v5  ;;  %v3364_v20 = vpop.f32.mrb[13].mxu0  ;;  %v3385_v23 = vadd.f32 %v7666_v49, %v9041_v15 }
 0xcc6   : > { %v3581_v21 = vmul.f32 0.044715, %v3577_v16  ;;  %v3384_v24 = vadd.f32 %v9041_v15, %v3364_v20 }
 0xcc7   : > { %v3580_v25 = vmul.f32 0.044715, %v3576_v19  ;;  %v3389_v33 = vadd.f32 %v3385_v23, %v8795_v63 }
 0xcc8   : > { %v3585_v26 = vadd.f32 %v3581_v21, %v3559_v11  ;;  %v3388_v28 = vadd.f32 %v3384_v24, %v8791_v56  ;;  %v7115_v24 = vld [vmem:[%s8767_s26 + $0x28] sm:$0xff] }
 0xcc9   : > { %v3584_v30 = vadd.f32 %v3580_v25, %v3554_v5  ;;  %v3401_v34 = vsel %vm919_vm0, %v3389_v33, 0.0 }
 0xcca   : > { %v3589_v31 = vmul.f32 0.7978846, %v3585_v26  ;;  %v3398_v32 = vsel %vm919_vm0, %v3388_v28, 0.0  ;;  %v7116_v26 = vld [vmem:[%s8767_s26 + $0x30] sm:$0xff] }
 0xccb   : > { %v3588_v10 = vmul.f32 0.7978846, %v3584_v30  ;;  %3399 = vadd.xlane.f32.xlu0 %v3398_v32 }
 0xccc   : > { %8509 = vtanh.f32 %v3589_v31 }
 0xccd   : > { %8511 = vtanh.f32 %v3588_v10 }
 0xccf   : > { %3402 = vadd.xlane.f32.xlu0 %v3401_v34 }
 0xcd6   : > { %v8510_v46 = vpop.eup %8509 }
 0xcd7   : > { %v8512_v35 = vpop.eup %8511  ;;  %v3597_v15 = vadd.f32 1.0, %v8510_v46 }
 0xcd8   : > { %v3596_v36 = vadd.f32 1.0, %v8512_v35 }
 0xcd9   : > { %v3601_v37 = vmul.f32 0.5, %v3597_v15 }
 0xcda   : > { %v3600_v38 = vmul.f32 0.5, %v3596_v36 }
 0xcdb   : > { %v3605_v39 = vmul.f32 %v3601_v37, %v3559_v11 }
 0xcdc   : > { %v3604_v56 = vmul.f32 %v3600_v38, %v3554_v5 }
 0xcde   : > { %7713 = vmatprep.mubr.f32.mxu0 %v3604_v56 }
 0xcdf   : > { %7714 = vmatmul.mubr.f32.vlgmr.msra.gmra.mrb[18].mxu0 %v3605_v39 }
 0xd58   : > { %v3400_v27 = vpop.xlane.xlu0 %3399 }
 0xd59   : > { %v3406_v63 = vmul.f32 0.03125, %v3400_v27 }
 0xd5b   : > { %v3410_v42 = vsub.f32 %v3388_v28, %v3406_v63  ;;  %v7117_v28 = vld [vmem:[%s8767_s26 + $0x38] sm:$0xff] }
 0xd5c   : > { %v3403_v41 = vpop.xlane.xlu0 %3402  ;;  %v8091_v30 = vpack.c.bf16 %v7117_v28, %v7116_v26 }
 0xd5d   : > { %v3407_v18 = vmul.f32 0.03125, %v3403_v41  ;;  %v3414_v44 = vmul.f32 %v3410_v42, %v3410_v42 }
 0xd5f   : > { %v3411_v45 = vsub.f32 %v3389_v33, %v3407_v18  ;;  %v3422_v0 = vsel %vm919_vm0, %v3414_v44, 0.0 }
 0xd60   : > { %3423 = vadd.xlane.f32.xlu0 %v3422_v0  ;;  %v9206_v0 = vld [vmem:[%s9197_s22] ss:$0 sm:$0xff] }
 0xd61   : > { %v3415_v17 = vmul.f32 %v3411_v45, %v3411_v45 }
 0xd63   : > { %v3425_v47 = vsel %vm919_vm0, %v3415_v17, 0.0 }
 0xd64   : > { %3426 = vadd.xlane.f32.xlu1 %v3425_v47 }
 0xdb2   : > { %v7715_v50 = vpop.f32.mrb[18].mxu0 }
 0xdb3   : > { %v3703_v51 = vadd.f32 %v7715_v50, %v9165_v48  ;;  %v3697_v52 = vpop.f32.mrb[19].mxu0 }
 0xdb4   : > { %v3698_v53 = vadd.f32 %v9165_v48, %v3697_v52 }
 0xdb5   : > { %v3717_v54 = vadd.f32 %v3703_v51, %v9111_v40  ;;  %v9209_v51 = vld [vmem:[%s9203_s10] ss:$0 sm:$0xff] }
 0xdb6   : > { %v3716_v55 = vadd.f32 %v3698_v53, %v9086_v7 }
 0xdb7   : > { %v3725_v22 = vsel %vm919_vm0, %v3717_v54, 0.0 }
 0xdb8   : > { %3726 = vadd.xlane.f32.xlu1 %v3725_v22  ;;  %v3722_v57 = vsel %vm919_vm0, %v3716_v55, 0.0 }
 0xdb9   : > { %3723 = vadd.xlane.f32.xlu0 %v3722_v57 }
 0xded   : > { %v3424_v58 = vpop.xlane.xlu0 %3423 }
 0xdee   : > { %v3430_v59 = vmul.f32 0.03125, %v3424_v58 }
 0xdf0   : > { %v3434_v60 = vadd.f32 1e-12, %v3430_v59 }
 0xdf1   : > { %v3427_v61 = vpop.xlane.xlu1 %3426 }
 0xdf2   : > { %8513 = vrsqrt.f32 %v3434_v60  ;;  %v3431_v62 = vmul.f32 0.03125, %v3427_v61 }
 0xdf4   : > { %v3435_v43 = vadd.f32 1e-12, %v3431_v62 }
 0xdf6   : > { %8515 = vrsqrt.f32 %v3435_v43 }
 0xdfc   : > { %v8514_v3 = vpop.eup %8513 }
 0xdfd   : > { %v3442_v6 = vmul.f32 %v8514_v3, %v3410_v42 }
 0xdff   : > { %v3452_v40 = vmul.f32 %v9077_v1, %v3442_v6 }
 0xe00   : > { %v8516_v2 = vpop.eup %8515 }
 0xe01   : > { %v9175_v7 = vadd.f32 %v9082_v4, %v3452_v40  ;;  %v3443_v9 = vmul.f32 %v8516_v2, %v3411_v45 }
 0xe03   : > { %7678 = vmatprep.mubr.msk.f32.mxu1 %vm919_vm0, %v9175_v7  ;;  %v3453_v11 = vmul.f32 %v9077_v1, %v3443_v9 }
 0xe05   : > { %v9181_v13 = vadd.f32 %v9082_v4, %v3453_v11  ;;  %v7114_v4 = vld [vmem:[%s8767_s26 + $0x20] sm:$0xff]  ;;  %s9678_s26 = smov 96  }
 0xe06   : > { %v8087_v25 = vpack.c.bf16 %v7115_v24, %v7114_v4 }
 0xe07   : > { %7679 = vmatmul.mubr.msk.f32.gmra.mrb[24].mxu1 %vm919_vm0, %v9181_v13 }
 0xe08   : > { %8088 = vmatprep.subr.bf16.mxu1 %v8087_v25 }
 0xe09   : > { %8090 = vmatpush3.bf16.msra.mxu1 %v8087_v25 }
 0xe0a   : > { %8092 = vmatprep.subr.bf16.mxu1 %v8091_v30 }
 0xe0d   : > { %8094 = vmatpush3.bf16.msra.mxu1 %v8091_v30 }
 0xe45   : > { %v3727_v5 = vpop.xlane.xlu1 %3726 }
 0xe46   : > { %v3735_v14 = vmul.f32 0.03125, %v3727_v5  ;;  %v3724_v29 = vpop.xlane.xlu0 %3723 }
 0xe47   : > { %v3734_v16 = vmul.f32 0.03125, %v3724_v29 }
 0xe48   : > { %v3739_v49 = vsub.f32 %v3717_v54, %v3735_v14 }
 0xe49   : > { %v3738_v19 = vsub.f32 %v3716_v55, %v3734_v16 }
 0xe4a   : > { %v3743_v20 = vmul.f32 %v3739_v49, %v3739_v49 }
 0xe4b   : > { %v3742_v21 = vmul.f32 %v3738_v19, %v3738_v19 }
 0xe4c   : > { %v3749_v23 = vsel %vm919_vm0, %v3743_v20, 0.0 }
 0xe4d   : > { %3750 = vadd.xlane.f32.xlu1 %v3749_v23  ;;  %v3746_v1 = vsel %vm919_vm0, %v3742_v21, 0.0 }
 0xe4e   : > { %3747 = vadd.xlane.f32.xlu0 %v3746_v1 }
 0xeda   : > { %v3751_v31 = vpop.xlane.xlu1 %3750  ;;  %v7680_v32 = vpop.f32.mrb[24].mxu1 }
 0xedb   : > { %v3759_v33 = vmul.f32 0.03125, %v3751_v31  ;;  %v3569_v10 = vadd.f32 %v7680_v32, %v9146_v8  ;;  %v3563_v34 = vpop.f32.mrb[25].mxu1  ;;  %v3748_v46 = vpop.xlane.xlu0 %3747 }
 0xedc   : > { %v3564_v35 = vadd.f32 %v9146_v8, %v3563_v34  ;;  %v3758_v15 = vmul.f32 0.03125, %v3748_v46 }
 0xedd   : > { %v3763_v36 = vadd.f32 1e-12, %v3759_v33  ;;  %v3575_v37 = vmul.f32 %v3569_v10, %v3569_v10 }
 0xede   : > { %v3574_v38 = vmul.f32 %v3564_v35, %v3564_v35  ;;  %v3762_v56 = vadd.f32 1e-12, %v3758_v15 }
 0xedf   : > { %8517 = vrsqrt.f32 %v3763_v36  ;;  %v3579_v39 = vmul.f32 %v3575_v37, %v3569_v10 }
 0xee0   : > { %v3578_v27 = vmul.f32 %v3574_v38, %v3564_v35  ;;  %8519 = vrsqrt.f32 %v3762_v56 }
 0xee1   : > { %v3583_v63 = vmul.f32 0.044715, %v3579_v39 }
 0xee2   : > { %v3582_v42 = vmul.f32 0.044715, %v3578_v27 }
 0xee3   : > { %v3587_v41 = vadd.f32 %v3583_v63, %v3569_v10 }
 0xee4   : > { %v3586_v18 = vadd.f32 %v3582_v42, %v3564_v35 }
 0xee5   : > { %v3591_v44 = vmul.f32 0.7978846, %v3587_v41 }
 0xee6   : > { %v3590_v45 = vmul.f32 0.7978846, %v3586_v18 }
 0xee7   : > { %8521 = vtanh.f32 %v3591_v44 }
 0xee8   : > { %8523 = vtanh.f32 %v3590_v45 }
 0xee9   : > { %v8518_v8 = vpop.eup %8517 }
 0xeea   : > { %v8520_v17 = vpop.eup %8519  ;;  %v3771_v47 = vmul.f32 %v8518_v8, %v3739_v49 }
 0xeeb   : > { %v3770_v50 = vmul.f32 %v8520_v17, %v3738_v19 }
 0xeec   : > { %v3781_v52 = vmul.f32 %v9206_v0, %v3771_v47 }
 0xeed   : > { %v3780_v53 = vmul.f32 %v9206_v0, %v3770_v50 }
 0xeee   : > { %v9217_v55 = vadd.f32 %v9209_v51, %v3781_v52 }
 0xeef   : > { %v9214_v54 = vadd.f32 %v9209_v51, %v3780_v53 }
 0xef1   : > { %v8522_v22 = vpop.eup %8521  ;;  %7727 = vmatprep.mubr.msk.f32.mxu1 %vm919_vm0, %v9214_v54 }
 0xef2   : > { %v8524_v57 = vpop.eup %8523  ;;  %7728 = vmatmul.mubr.msk.f32.vlgmr.msra.gmra.mrb[26].mxu1 %vm919_vm0, %v9217_v55  ;;  %v3599_v58 = vadd.f32 1.0, %v8522_v22 }
 0xef3   : > { %v3598_v59 = vadd.f32 1.0, %v8524_v57 }
 0xef4   : > { %v3603_v60 = vmul.f32 0.5, %v3599_v58 }
 0xef5   : > { %v3602_v61 = vmul.f32 0.5, %v3598_v59 }
 0xef6   : > { %v3607_v43 = vmul.f32 %v3603_v60, %v3569_v10 }
 0xef7   : > { %v3606_v62 = vmul.f32 %v3602_v61, %v3564_v35 }
 0xef9   : > { %7716 = vmatprep.mubr.f32.mxu0 %v3606_v62 }
 0xefa   : > { %7717 = vmatmul.mubr.f32.gmra.mrb[20].mxu0 %v3607_v43 }
 0xfc5   : > { %v7729_v3 = vpop.f32.mrb[26].mxu1 }
 0xfc6   : > { %v3885_v6 = vpop.f32.mrb[27].mxu1 }
 0xfcd   : > { %v7718_v40 = vpop.f32.mrb[20].mxu0 }
 0xfce   : > { %v3713_v2 = vadd.f32 %v7718_v40, %v9165_v48  ;;  %v3707_v9 = vpop.f32.mrb[21].mxu0 }
 0xfcf   : > { %v3708_v11 = vadd.f32 %v9165_v48, %v3707_v9 }
 0xfd0   : > { %v3719_v5 = vadd.f32 %v3713_v2, %v9181_v13  ;;  %v9232_v13 = vld [vmem:[%s8806_s28 + $0x1] ss:$0 sm:$0xff]  ;;  %s9679_s28 = smov 88  }
 0xfd1   : > { %v3718_v14 = vadd.f32 %v3708_v11, %v9175_v7  ;;  %v3891_v25 = vadd.f32 %v7729_v3, %v9232_v13  ;;  %v3886_v26 = vadd.f32 %v9232_v13, %v3885_v6 }
 0xfd2   : > { %v3731_v29 = vsel %vm919_vm0, %v3719_v5, 0.0 }
 0xfd3   : > { %3732 = vadd.xlane.f32.xlu1 %v3731_v29  ;;  %v3728_v16 = vsel %vm919_vm0, %v3718_v14, 0.0  ;;  %v9236_v28 = vpack.i.bf16 %v3891_v25, %v3886_v26 }
 0xfd4   : > { %3729 = vadd.xlane.f32.xlu0 %v3728_v16 }
0x1060   : > { %v3733_v49 = vpop.xlane.xlu1 %3732 }
0x1061   : > { %v3737_v19 = vmul.f32 0.03125, %v3733_v49  ;;  %v3730_v20 = vpop.xlane.xlu0 %3729 }
0x1062   : > { %v3736_v21 = vmul.f32 0.03125, %v3730_v20 }
0x1063   : > { %v3741_v23 = vsub.f32 %v3719_v5, %v3737_v19 }
0x1064   : > { %v3740_v1 = vsub.f32 %v3718_v14, %v3736_v21 }
0x1065   : > { %v3745_v4 = vmul.f32 %v3741_v23, %v3741_v23 }
0x1066   : > { %v3744_v24 = vmul.f32 %v3740_v1, %v3740_v1 }
0x1067   : > { %v3755_v48 = vsel %vm919_vm0, %v3745_v4, 0.0 }
0x1068   : > { %3756 = vadd.xlane.f32.xlu1 %v3755_v48  ;;  %v3752_v7 = vsel %vm919_vm0, %v3744_v24, 0.0 }
0x1069   : > { %3753 = vadd.xlane.f32.xlu0 %v3752_v7 }
0x1079   : > { %8359 = vrot.lane.b32.xlu1 %v9236_v28, %s9676_s8 }
0x107d   : > { %4473 = vrot.lane.b32.xlu1 %v3886_v26, %s9677_s9 }
0x107f   : > { %8354 = vrot.lane.b32.xlu0 %v9236_v28, %s9678_s26 }
0x1081   : > { %4475 = vrot.lane.b32.xlu1 %v3891_v25, %s9677_s9 }
0x10f5   : > { %v3757_v30 = vpop.xlane.xlu1 %3756 }
0x10f6   : > { %v3761_v31 = vmul.f32 0.03125, %v3757_v30  ;;  %v3754_v32 = vpop.xlane.xlu0 %3753 }
0x10f7   : > { %v3760_v33 = vmul.f32 0.03125, %v3754_v32 }
0x10f8   : > { %v3765_v10 = vadd.f32 1e-12, %v3761_v31 }
0x10f9   : > { %v3764_v34 = vadd.f32 1e-12, %v3760_v33  ;;  %v8360_v46 = vpop.permute.xlu1 %8359 }
0x10fa   : > { %8525 = vrsqrt.f32 %v3765_v10  ;;  %v8362_v35 = vunpack.i.h.bf16 %v8360_v46  ;;  %v8361_v15 = vunpack.i.l.bf16 %v8360_v46  ;;  %v8355_v36 = vpop.permute.xlu0 %8354 }
0x10fb   : > { %8527 = vrsqrt.f32 %v3764_v34  ;;  %v8357_v37 = vunpack.i.h.bf16 %v8355_v36  ;;  %v8356_v38 = vunpack.i.l.bf16 %v8355_v36 }
0x10fc   : > { %v8115_v56 = vpack.c.bf16 %v8362_v35, %v8361_v15 }
0x10fd   : > { %v8095_v39 = vpack.c.bf16 %v8357_v37, %v8356_v38  ;;  %v4474_v27 = vpop.permute.xlu1 %4473 }
0x10fe   : > { %8117 = vmatprep.subr.msk.bf16.mxu0 %vm8833_vm2, %v8115_v56  ;;  %7775 = vmatprep.mubr.msk.f32.mxu0 %vm1111_vm1, %v4474_v27 }
0x10ff   : > { %8097 = vmatprep.subr.msk.bf16.mxu1 %vm8833_vm2, %v8095_v39  ;;  %8120 = vmatpush3.bf16.xpose.msk.msra.mxu0 %vm8833_vm2, %v8115_v56 }
0x1100   : > { %8100 = vmatpush3.bf16.xpose.msk.msra.mxu1 %vm8833_vm2, %v8095_v39 }
0x1101   : > { %v4476_v41 = vpop.permute.xlu1 %4475 }
0x1104   : > { %v8526_v63 = vpop.eup %8525 }
0x1105   : > { %v8528_v42 = vpop.eup %8527  ;;  %v3773_v18 = vmul.f32 %v8526_v63, %v3741_v23 }
0x1106   : > { %7776 = vmatmul.mubr.msk.f32.vlgmr.msra.gmra.mrb[22].mxu0 %vm1111_vm1, %v4476_v41  ;;  %v3772_v44 = vmul.f32 %v8528_v42, %v3740_v1 }
0x1107   : > { %v3783_v45 = vmul.f32 %v9206_v0, %v3773_v18 }
0x1108   : > { %v3782_v8 = vmul.f32 %v9206_v0, %v3772_v44 }
0x1109   : > { %v9260_v47 = vadd.f32 %v9209_v51, %v3783_v45 }
0x110a   : > { %v9257_v17 = vadd.f32 %v9209_v51, %v3782_v8 }
0x110c   : > { %7730 = vmatprep.mubr.msk.f32.mxu1 %vm919_vm0, %v9257_v17 }
0x110d   : > { %7731 = vmatmul.mubr.msk.f32.gmra.mrb[28].mxu1 %vm919_vm0, %v9260_v47 }
0x110e   : > { %7737 = vmatprep.mubr.msk.f32.mxu1 %vm1111_vm1, %v3886_v26 }
0x1111   : > { %7738 = vmatmul.mubr.msk.f32.vlgmr.msra.gmra.mrb[30].mxu1 %vm1111_vm1, %v3891_v25 }
0x11d9   : > { %v7777_v50 = vpop.f32.mrb[22].mxu0 }
0x11da   : > { %v4555_v52 = vpop.f32.mrb[23].mxu0  ;;  %v4565_v61 = vmul.f32 0.35355338, %v7777_v50 }
0x11db   : > { %v4564_v16 = vmul.f32 0.35355338, %v4555_v52 }
0x11dc   : > { %v4569_v62 = vsel %vm1197_vm3, %v4565_v61, -inf }
0x11dd   : > { %v4566_v49 = vsel %vm1197_vm3, %v4564_v16, -inf }
0x11e0   : > { %v9268_v53 = vpop.f32.mrb[28].mxu1 }
0x11e1   : > { %v9270_v0 = vpop.f32.mrb[29].mxu1 }
0x11e4   : > { %v7739_v22 = vpop.f32.mrb[30].mxu1 }
0x11e5   : > { %v3999_v57 = vmul.f32 0.35355338, %v7739_v22  ;;  %v3989_v51 = vpop.f32.mrb[31].mxu1 }
0x11e6   : > { %v3998_v58 = vmul.f32 0.35355338, %v3989_v51 }
0x11e7   : > { %v4003_v59 = vsel %vm1197_vm3, %v3999_v57, -inf }
0x11e8   : > { %4004 = vmax.xlane.f32.xlu1 %v4003_v59  ;;  %v4000_v60 = vsel %vm1197_vm3, %v3998_v58, -inf }
0x11e9   : > { %4001 = vmax.xlane.f32.xlu0 %v4000_v60 }
0x11f9   : > { %8369 = vrot.lane.b32.xlu1 %v9236_v28, %s9679_s28 }
0x11fd   : > { %4109 = vrot.lane.b32.xlu1 %v3886_v26, %s9680_s23 }
0x1201   : > { %4111 = vrot.lane.b32.xlu1 %v3891_v25, %s9680_s23 }
0x1225   : > { %4570 = vmax.xlane.f32.xlu1 %v4569_v62 }
0x1236   : > { %8379 = vrot.lane.b32.xlu1 %v9236_v28, %s9666_s29 }
0x123a   : > { %4758 = vrot.lane.b32.xlu1 %v3886_v26, %s9667_s21 }
0x123e   : > { %4760 = vrot.lane.b32.xlu1 %v3891_v25, %s9667_s21 }
0x1275   : > { %v4005_v43 = vpop.xlane.xlu1 %4004 }
0x1276   : > { %v4007_v3 = vsub.f32 %v3999_v57, %v4005_v43  ;;  %v4002_v6 = vpop.xlane.xlu0 %4001 }
0x1277   : > { %v4006_v40 = vsub.f32 %v3998_v58, %v4002_v6 }
0x1278   : > { %v4010_v2 = vmul.f32 1.442695, %v4007_v3 }
0x1279   : > { %v4008_v9 = vmul.f32 1.442695, %v4006_v40  ;;  %v8370_v21 = vpop.permute.xlu1 %8369 }
0x127a   : > { %8529 = vpow2.f32 %v4010_v2  ;;  %v8372_v1 = vunpack.i.h.bf16 %v8370_v21  ;;  %v8371_v4 = vunpack.i.l.bf16 %v8370_v21  ;;  %v9313_v2 = vadd.f32 %v9232_v13, %v9270_v0 }
0x127b   : > { %8531 = vpow2.f32 %v4008_v9 }
0x127c   : > { %v8105_v25 = vpack.c.bf16 %v8372_v1, %v8371_v4 }
0x127d   : > { %v4110_v33 = vpop.permute.xlu1 %4109 }
0x1281   : > { %v4112_v10 = vpop.permute.xlu1 %4111 }
0x1284   : > { %v8530_v11 = vpop.eup %8529 }
0x1285   : > { %v4015_v5 = vsel %vm1197_vm3, %v8530_v11, 0.0  ;;  %v8532_v14 = vpop.eup %8531 }
0x1286   : > { %4016 = vadd.xlane.f32.xlu0 %v4015_v5  ;;  %v4012_v29 = vsel %vm1197_vm3, %v8532_v14, 0.0 }
0x128a   : > { %4013 = vadd.xlane.f32.xlu0 %v4012_v29 }
0x12a0   : > { %8364 = vrot.lane.b32.xlu0 %v9236_v28, %s9665_s1 }
0x12b2   : > { %v4571_v34 = vpop.xlane.xlu1 %4570 }
0x12b3   : > { %v4573_v46 = vsub.f32 %v4565_v61, %v4571_v34 }
0x12b5   : > { %v4576_v36 = vmul.f32 1.442695, %v4573_v46 }
0x12b6   : > { %v8380_v41 = vpop.permute.xlu1 %8379 }
0x12b7   : > { %v8382_v44 = vunpack.i.h.bf16 %v8380_v41  ;;  %v8381_v45 = vunpack.i.l.bf16 %v8380_v41 }
0x12b9   : > { %v8125_v51 = vpack.c.bf16 %v8382_v44, %v8381_v45 }
0x12ba   : > { %v4759_v62 = vpop.permute.xlu1 %4758 }
0x12be   : > { %v4761_v9 = vpop.permute.xlu1 %4760 }
0x12bf   : > { %4567 = vmax.xlane.f32.xlu0 %v4566_v49 }
0x1313   : > { %v4017_v19 = vpop.xlane.xlu0 %4016 }
0x1314   : > { %8533 = vrcp.f32 %v4017_v19 }
0x1317   : > { %v4014_v20 = vpop.xlane.xlu0 %4013 }
0x1318   : > { %8535 = vrcp.f32 %v4014_v20 }
0x131b   : > { %v8365_v23 = vpop.permute.xlu0 %8364 }
0x131c   : > { %v8367_v24 = vunpack.i.h.bf16 %v8365_v23  ;;  %v8366_v48 = vunpack.i.l.bf16 %v8365_v23 }
0x131e   : > { %v8101_v7 = vpack.c.bf16 %v8367_v24, %v8366_v48  ;;  %v8534_v26 = vpop.eup %8533 }
0x131f   : > { %v4021_v32 = vmul.f32 %v8534_v26, %v8530_v11 }
0x1320   : > { %8102 = vmatprep.subr.bf16.mxu1 %v8101_v7 }
0x1321   : > { %8104 = vmatpush3.bf16.msra.mxu1 %v8101_v7 }
0x1322   : > { %v8536_v30 = vpop.eup %8535  ;;  %8107 = vmatprep.subr.msk.bf16.mxu1 %vm8833_vm2, %v8105_v25 }
0x1323   : > { %v4020_v31 = vmul.f32 %v8536_v30, %v8532_v14  ;;  %v9322_v14 = vadd.f32 %v9268_v53, %v9232_v13 }
0x1325   : > { %7744 = vmatprep.mubr.msk.f32.mxu1 %vm1197_vm3, %v4020_v31  ;;  %v9326_v0 = vpack.i.bf16 %v9322_v14, %v9313_v2 }
0x1326   : > { %7745 = vmatmul.mubr.msk.f32.vlgmr.msra.gmra.mrb[32].mxu1 %vm1197_vm3, %v4021_v32 }
0x1327   : > { %7751 = vmatprep.mubr.msk.f32.mxu1 %vm1111_vm1, %v4110_v33 }
0x132a   : > { %8110 = vmatpush3.bf16.xpose.msk.msra.mxu1 %vm8833_vm2, %v8105_v25 }
0x1331   : > { %7752 = vmatmul.mubr.msk.f32.vlgmr.msra.gmra.mrb[34].mxu1 %vm1111_vm1, %v4112_v10 }
0x134c   : > { %v4568_v35 = vpop.xlane.xlu0 %4567 }
0x134d   : > { %v4572_v15 = vsub.f32 %v4564_v16, %v4568_v35 }
0x134f   : > { %v4574_v37 = vmul.f32 1.442695, %v4572_v15 }
0x1351   : > { %8537 = vpow2.f32 %v4574_v37 }
0x1352   : > { %8539 = vpow2.f32 %v4576_v36 }
0x135b   : > { %v8538_v38 = vpop.eup %8537 }
0x135c   : > { %v4578_v56 = vsel %vm1197_vm3, %v8538_v38, 0.0  ;;  %v8540_v39 = vpop.eup %8539 }
0x135d   : > { %4579 = vadd.xlane.f32.xlu0 %v4578_v56  ;;  %v4581_v27 = vsel %vm1197_vm3, %v8540_v39, 0.0 }
0x1361   : > { %4582 = vadd.xlane.f32.xlu0 %v4581_v27 }
0x1377   : > { %8374 = vrot.lane.b32.xlu0 %v9236_v28, %s9681_s11 }
0x13ea   : > { %v4580_v63 = vpop.xlane.xlu0 %4579 }
0x13eb   : > { %8541 = vrcp.f32 %v4580_v63 }
0x13ee   : > { %v4583_v42 = vpop.xlane.xlu0 %4582 }
0x13ef   : > { %8543 = vrcp.f32 %v4583_v42 }
0x13f2   : > { %v8375_v18 = vpop.permute.xlu0 %8374 }
0x13f3   : > { %v8377_v8 = vunpack.i.h.bf16 %v8375_v18  ;;  %v8376_v50 = vunpack.i.l.bf16 %v8375_v18 }
0x13f5   : > { %v8542_v52 = vpop.eup %8541  ;;  %v8121_v22 = vpack.c.bf16 %v8377_v8, %v8376_v50 }
0x13f6   : > { %v4586_v57 = vmul.f32 %v8542_v52, %v8538_v38 }
0x13f7   : > { %8122 = vmatprep.subr.bf16.mxu0 %v8121_v22 }
0x13f8   : > { %8124 = vmatpush3.bf16.msra.mxu0 %v8121_v22  ;;  %7782 = vmatprep.mubr.msk.f32.mxu0 %vm1197_vm3, %v4586_v57 }
0x13f9   : > { %v8544_v58 = vpop.eup %8543  ;;  %v9301_v59 = vpop.f32.mrb[32].mxu1  ;;  %8127 = vmatprep.subr.msk.bf16.mxu0 %vm8833_vm2, %v8125_v51 }
0x13fa   : > { %v4587_v60 = vmul.f32 %v8544_v58, %v8540_v39  ;;  %v9305_v61 = vpop.f32.mrb[33].mxu1 }
0x13fc   : > { %7783 = vmatmul.mubr.msk.f32.vlgmr.msra.gmra.mrb[24].mxu0 %vm1197_vm3, %v4587_v60 }
0x13fd   : > { %7794 = vmatprep.mubr.msk.f32.mxu0 %vm1111_vm1, %v4759_v62 }
0x1401   : > { %8130 = vmatpush3.bf16.xpose.msk.msra.mxu0 %vm8833_vm2, %v8125_v51 }
0x1404   : > { %v7753_v43 = vpop.f32.mrb[34].mxu1 }
0x1405   : > { %v4201_v3 = vmul.f32 0.35355338, %v7753_v43  ;;  %v4191_v6 = vpop.f32.mrb[35].mxu1 }
0x1406   : > { %v4200_v40 = vmul.f32 0.35355338, %v4191_v6  ;;  %v9355_v6 = vld [vmem:[%s8903_s2 + $0x28] sm:$0xff] }
0x1407   : > { %v4205_v11 = vsel %vm1197_vm3, %v4201_v3, -inf }
0x1408   : > { %7795 = vmatmul.mubr.msk.f32.vlgmr.msra.gmra.mrb[26].mxu0 %vm1111_vm1, %v4761_v9  ;;  %4206 = vmax.xlane.f32.xlu1 %v4205_v11  ;;  %v4202_v5 = vsel %vm1197_vm3, %v4200_v40, -inf }
0x1409   : > { %7813 = vmatprep.mubr.msk.f32.mxu0 %vm1111_vm1, %v9313_v2  ;;  %4203 = vmax.xlane.f32.xlu0 %v4202_v5 }
0x1419   : > { %8389 = vrot.lane.b32.xlu1 %v9326_v0, %s9678_s26 }
0x1495   : > { %v4207_v29 = vpop.xlane.xlu1 %4206 }
0x1496   : > { %v4209_v16 = vsub.f32 %v4201_v3, %v4207_v29  ;;  %v4204_v49 = vpop.xlane.xlu0 %4203 }
0x1497   : > { %v4208_v19 = vsub.f32 %v4200_v40, %v4204_v49  ;;  %v9364_v40 = vld [vmem:[%s8903_s2 + $0x20] sm:$0xff] }
0x1498   : > { %v4212_v20 = vmul.f32 1.442695, %v4209_v16 }
0x1499   : > { %v4210_v21 = vmul.f32 1.442695, %v4208_v19  ;;  %v8390_v23 = vpop.permute.xlu1 %8389 }
0x149a   : > { %8545 = vpow2.f32 %v4212_v20  ;;  %v8392_v1 = vunpack.i.h.bf16 %v8390_v23  ;;  %v8391_v4 = vunpack.i.l.bf16 %v8390_v23  ;;  %v9373_v23 = vld [vmem:[%s8903_s2 + $0x30] sm:$0xff] }
0x149b   : > { %8547 = vpow2.f32 %v4210_v21 }
0x149c   : > { %v8135_v13 = vpack.c.bf16 %v8392_v1, %v8391_v4 }
0x149e   : > { %8137 = vmatprep.subr.msk.bf16.mxu0 %vm8833_vm2, %v8135_v13 }
0x149f   : > { %8140 = vmatpush3.bf16.xpose.msk.msra.mxu0 %vm8833_vm2, %v8135_v13 }
0x14a4   : > { %v8546_v53 = vpop.eup %8545 }
0x14a5   : > { %v4217_v24 = vsel %vm1197_vm3, %v8546_v53, 0.0  ;;  %v8548_v48 = vpop.eup %8547 }
0x14a6   : > { %7814 = vmatmul.mubr.msk.f32.vlgmr.msra.gmra.mrb[28].mxu0 %vm1111_vm1, %v9322_v14  ;;  %4218 = vadd.xlane.f32.xlu0 %v4217_v24  ;;  %v4214_v7 = vsel %vm1197_vm3, %v8548_v48, 0.0 }
0x14aa   : > { %4215 = vadd.xlane.f32.xlu0 %v4214_v7 }
0x14c0   : > { %8384 = vrot.lane.b32.xlu0 %v9236_v28, %s9668_s3 }
0x14cf   : > { %v9340_v25 = vpop.f32.mrb[24].mxu0 }
0x14d0   : > { %v9342_v26 = vpop.f32.mrb[25].mxu0 }
0x14db   : > { %v7796_v30 = vpop.f32.mrb[26].mxu0 }
0x14dc   : > { %v4850_v31 = vmul.f32 0.35355338, %v7796_v30  ;;  %v4840_v32 = vpop.f32.mrb[27].mxu0 }
0x14dd   : > { %v4849_v33 = vmul.f32 0.35355338, %v4840_v32 }
0x14de   : > { %v4854_v10 = vsel %vm1197_vm3, %v4850_v31, -inf }
0x14df   : > { %4855 = vmax.xlane.f32.xlu0 %v4854_v10  ;;  %v4851_v34 = vsel %vm1197_vm3, %v4849_v33, -inf }
0x14e0   : > { %4852 = vmax.xlane.f32.xlu1 %v4851_v34 }
0x1533   : > { %v4219_v46 = vpop.xlane.xlu0 %4218 }
0x1534   : > { %8549 = vrcp.f32 %v4219_v46 }
0x1537   : > { %v4216_v35 = vpop.xlane.xlu0 %4215 }
0x1538   : > { %8551 = vrcp.f32 %v4216_v35 }
0x153b   : > { %v8385_v15 = vpop.permute.xlu0 %8384 }
0x153c   : > { %v8387_v36 = vunpack.i.h.bf16 %v8385_v15  ;;  %v8386_v37 = vunpack.i.l.bf16 %v8385_v15 }
0x153e   : > { %v8111_v38 = vpack.c.bf16 %v8387_v36, %v8386_v37  ;;  %v8550_v56 = vpop.eup %8549 }
0x153f   : > { %v4223_v63 = vmul.f32 %v8550_v56, %v8546_v53 }
0x1540   : > { %8112 = vmatprep.subr.bf16.mxu1 %v8111_v38 }
0x1541   : > { %8114 = vmatpush3.bf16.msra.mxu1 %v8111_v38 }
0x1542   : > { %v8552_v39 = vpop.eup %8551  ;;  %7761 = vmatprep.subr.mxu1 %v9355_v6 }
0x1543   : > { %v4222_v27 = vmul.f32 %v8552_v39, %v8548_v48 }
0x1545   : > { %7758 = vmatprep.mubr.msk.f32.mxu1 %vm1197_vm3, %v4222_v27 }
0x1546   : > { %7759 = vmatmul.mubr.msk.f32.vlgmr.msra.gmra.mrb[36].mxu1 %vm1197_vm3, %v4223_v63 }
0x1547   : > { %7762 = vmatpush3.msra.mxu1 %v9355_v6 }
0x1548   : > { %7766 = vmatprep.subr.mxu1 %v9364_v40 }
0x156c   : > { %v4856_v42 = vpop.xlane.xlu0 %4855 }
0x156d   : > { %v4858_v41 = vsub.f32 %v4850_v31, %v4856_v42  ;;  %v4853_v18 = vpop.xlane.xlu1 %4852 }
0x156e   : > { %v4857_v44 = vsub.f32 %v4849_v33, %v4853_v18 }
0x156f   : > { %v4861_v45 = vmul.f32 1.442695, %v4858_v41 }
0x1570   : > { %v4859_v8 = vmul.f32 1.442695, %v4857_v44 }
0x1571   : > { %8553 = vpow2.f32 %v4861_v45 }
0x1572   : > { %8555 = vpow2.f32 %v4859_v8 }
0x1579   : > { %v7815_v50 = vpop.f32.mrb[28].mxu0 }
0x157a   : > { %v5123_v52 = vpop.f32.mrb[29].mxu0  ;;  %v5133_v62 = vmul.f32 0.35355338, %v7815_v50 }
0x157b   : > { %v8554_v22 = vpop.eup %8553  ;;  %v5132_v51 = vmul.f32 0.35355338, %v5123_v52 }
0x157c   : > { %v8556_v57 = vpop.eup %8555  ;;  %v4866_v58 = vsel %vm1197_vm3, %v8554_v22, 0.0  ;;  %v5137_v3 = vsel %vm1197_vm3, %v5133_v62, -inf }
0x157d   : > { %4867 = vadd.xlane.f32.xlu1 %v4866_v58  ;;  %v4863_v60 = vsel %vm1197_vm3, %v8556_v57, 0.0  ;;  %v5134_v43 = vsel %vm1197_vm3, %v5132_v51, -inf }
0x157e   : > { %4864 = vadd.xlane.f32.xlu0 %v4863_v60 }
0x1581   : > { %5135 = vmax.xlane.f32.xlu1 %v5134_v43 }
0x1585   : > { %5138 = vmax.xlane.f32.xlu1 %v5137_v3 }
0x1594   : > { %8394 = vrot.lane.b32.xlu0 %v9236_v28, %s9670_s24 }
0x1598   : > { %8404 = vrot.lane.b32.xlu0 %v9326_v0, %s9679_s28 }
0x159c   : > { %5243 = vrot.lane.b32.xlu0 %v9313_v2, %s9680_s23 }
0x15a0   : > { %5245 = vrot.lane.b32.xlu0 %v9322_v14, %s9680_s23 }
0x15a4   : > { %5607 = vrot.lane.b32.xlu0 %v9313_v2, %s9677_s9 }
0x160a   : > { %v4868_v28 = vpop.xlane.xlu1 %4867 }
0x160b   : > { %v4865_v19 = vpop.xlane.xlu0 %4864 }
0x160e   : > { %v5136_v9 = vpop.xlane.xlu1 %5135 }
0x160f   : > { %v5140_v11 = vsub.f32 %v5132_v51, %v5136_v9  ;;  %v8395_v4 = vpop.permute.xlu0 %8394 }
0x1610   : > { %v8397_v53 = vunpack.i.h.bf16 %v8395_v4  ;;  %v8396_v24 = vunpack.i.l.bf16 %v8395_v4 }
0x1611   : > { %v5142_v5 = vmul.f32 1.442695, %v5140_v11 }
0x1612   : > { %v5139_v29 = vpop.xlane.xlu1 %5138  ;;  %v8131_v30 = vpack.c.bf16 %v8397_v53, %v8396_v24 }
0x1613   : > { %8557 = vpow2.f32 %v5142_v5  ;;  %v5141_v16 = vsub.f32 %v5133_v62, %v5139_v29  ;;  %v8405_v15 = vpop.permute.xlu0 %8404 }
0x1614   : > { %v8407_v37 = vunpack.i.h.bf16 %v8405_v15  ;;  %v8406_v38 = vunpack.i.l.bf16 %v8405_v15 }
0x1615   : > { %v5144_v49 = vmul.f32 1.442695, %v5141_v16 }
0x1616   : > { %v8145_v42 = vpack.c.bf16 %v8407_v37, %v8406_v38 }
0x1617   : > { %8559 = vpow2.f32 %v5144_v49  ;;  %v5244_v44 = vpop.permute.xlu0 %5243 }
0x1618   : > { %8561 = vrcp.f32 %v4865_v19 }
0x1619   : > { %v7760_v20 = vpop.f32.mrb[36].mxu1  ;;  %8563 = vrcp.f32 %v4868_v28 }
0x161a   : > { %v4302_v21 = vpop.f32.mrb[37].mxu1 }
0x161b   : > { %7763 = vmatprep.mubr.msk.f32.mxu1 %vm1111_vm1, %v4302_v21  ;;  %v5246_v52 = vpop.permute.xlu0 %5245 }
0x161c   : > { %7764 = vmatmul.mubr.msk.f32.vlgmr.msra.gmra.mrb[38].mxu1 %vm1111_vm1, %v7760_v20 }
0x161d   : > { %v8558_v1 = vpop.eup %8557  ;;  %7767 = vmatpush3.msra.mxu1 %v9364_v40  ;;  %7768 = vmatprep.mubr.msk.f32.mxu1 %vm1111_vm1, %v9305_v61 }
0x161e   : > { %v5146_v13 = vsel %vm1197_vm3, %v8558_v1, 0.0  ;;  %7785 = vmatprep.subr.mxu1 %v9373_v23 }
0x161f   : > { %5147 = vadd.xlane.f32.xlu1 %v5146_v13 }
0x1621   : > { %v8560_v48 = vpop.eup %8559 }
0x1622   : > { %v5149_v7 = vsel %vm1197_vm3, %v8560_v48, 0.0  ;;  %v8562_v61 = vpop.eup %8561 }
0x1623   : > { %5150 = vadd.xlane.f32.xlu1 %v5149_v7  ;;  %v8564_v31 = vpop.eup %8563  ;;  %v4871_v32 = vmul.f32 %v8562_v61, %v8556_v57 }
0x1624   : > { %7769 = vmatmul.mubr.msk.f32.vlgmr.msra.gmra.mrb[38].mxu1 %vm1111_vm1, %v9301_v59  ;;  %v4872_v33 = vmul.f32 %v8564_v31, %v8554_v22  ;;  %v9394_v59 = vld [vmem:[%s8903_s2 + $0x38] sm:$0xff]  ;;  %v5608_v22 = vpop.permute.xlu0 %5607 }
0x1625   : > { %7786 = vmatpush3.msra.mxu1 %v9373_v23  ;;  %7787 = vmatprep.mubr.msk.f32.mxu1 %vm1111_vm1, %v9342_v26 }
0x1626   : > { %8132 = vmatprep.subr.bf16.mxu1 %v8131_v30 }
0x162c   : > { %7788 = vmatmul.mubr.msk.f32.vlgmr.msra.gmra.mrb[38].mxu1 %vm1111_vm1, %v9340_v25 }
0x162d   : > { %8134 = vmatpush3.bf16.msra.mxu1 %v8131_v30  ;;  %7801 = vmatprep.mubr.msk.f32.mxu1 %vm1197_vm3, %v4871_v32 }
0x162e   : > { %7804 = vmatprep.subr.mxu1 %v9394_v59 }
0x1630   : > { %7802 = vmatmul.mubr.msk.f32.vlgmr.msra.gmra.mrb[40].mxu1 %vm1197_vm3, %v4872_v33 }
0x1631   : > { %7805 = vmatpush3.msra.mxu1 %v9394_v59 }
0x1634   : > { %8399 = vrot.lane.b32.xlu1 %v9326_v0, %s9665_s1  ;;  %s900_s1 = scalar_lea.vmem %s9616_s16, %s9685_s30 }
0x1638   : > { %8409 = vrot.lane.b32.xlu1 %v9326_v0, %s9676_s8 }
0x163c   : > { %5609 = vrot.lane.b32.xlu1 %v9322_v14, %s9677_s9 }
0x16ac   : > { %v5148_v25 = vpop.xlane.xlu1 %5147 }
0x16ad   : > { %8565 = vrcp.f32 %v5148_v25 }
0x16b0   : > { %v5151_v26 = vpop.xlane.xlu1 %5150 }
0x16b1   : > { %8567 = vrcp.f32 %v5151_v26 }
0x16b4   : > { %v8400_v10 = vpop.permute.xlu1 %8399 }
0x16b5   : > { %v8402_v34 = vunpack.i.h.bf16 %v8400_v10  ;;  %v8401_v46 = vunpack.i.l.bf16 %v8400_v10 }
0x16b7   : > { %v8141_v35 = vpack.c.bf16 %v8402_v34, %v8401_v46  ;;  %v8566_v36 = vpop.eup %8565 }
0x16b8   : > { %v5154_v63 = vmul.f32 %v8566_v36, %v8558_v1  ;;  %v8410_v18 = vpop.permute.xlu1 %8409 }
0x16b9   : > { %8142 = vmatprep.subr.bf16.mxu1 %v8141_v35  ;;  %v8412_v45 = vunpack.i.h.bf16 %v8410_v18  ;;  %v8411_v8 = vunpack.i.l.bf16 %v8410_v18 }
0x16bb   : > { %v8568_v27 = vpop.eup %8567  ;;  %v8155_v50 = vpack.c.bf16 %v8412_v45, %v8411_v8 }
0x16bc   : > { %v5155_v41 = vmul.f32 %v8568_v27, %v8560_v48  ;;  %v5610_v57 = vpop.permute.xlu1 %5609 }
0x1703   : > { %v7803_v56 = vpop.f32.mrb[40].mxu1 }
0x1704   : > { %v4951_v39 = vpop.f32.mrb[41].mxu1 }
0x1705   : > { %7806 = vmatprep.mubr.msk.f32.mxu1 %vm1111_vm1, %v4951_v39 }
0x1706   : > { %7807 = vmatmul.mubr.msk.f32.vlgmr.msra.gmra.mrb[38].mxu1 %vm1111_vm1, %v7803_v56 }
0x1707   : > { %8144 = vmatpush3.bf16.msra.mxu1 %v8141_v35  ;;  %7820 = vmatprep.mubr.msk.f32.mxu1 %vm1197_vm3, %v5154_v63 }
0x1708   : > { %8147 = vmatprep.subr.msk.bf16.mxu1 %vm8833_vm2, %v8145_v42 }
0x170a   : > { %7821 = vmatmul.mubr.msk.f32.vlgmr.msra.gmra.mrb[42].mxu1 %vm1197_vm3, %v5155_v41 }
0x170b   : > { %7827 = vmatprep.mubr.msk.f32.mxu1 %vm1111_vm1, %v5244_v44 }
0x1710   : > { %8150 = vmatpush3.bf16.xpose.msk.msra.mxu1 %vm8833_vm2, %v8145_v42 }
0x1711   : > { %8157 = vmatprep.subr.msk.bf16.mxu1 %vm8833_vm2, %v8155_v50 }
0x1717   : > { %7828 = vmatmul.mubr.msk.f32.vlgmr.msra.gmra.mrb[44].mxu1 %vm1111_vm1, %v5246_v52 }
0x1718   : > { %8160 = vmatpush3.bf16.xpose.msk.msra.mxu1 %vm8833_vm2, %v8155_v50  ;;  %7851 = vmatprep.mubr.msk.f32.mxu1 %vm1111_vm1, %v5608_v22 }
0x171f   : > { %7852 = vmatmul.mubr.msk.f32.vlgmr.msra.gmra.mrb[46].mxu1 %vm1111_vm1, %v5610_v57 }
0x17d9   : > { %v9418_v51 = vpop.f32.mrb[38].mxu1 }
0x17da   : > { %v9420_v58 = vpop.f32.mrb[39].mxu1 }
0x17dd   : > { %v9422_v60 = vpop.f32.mrb[42].mxu1 }
0x17de   : > { %v9424_v62 = vpop.f32.mrb[43].mxu1 }
0x17ea   : > { %v7829_v43 = vpop.f32.mrb[44].mxu1 }
0x17eb   : > { %v5335_v3 = vmul.f32 0.35355338, %v7829_v43  ;;  %v5325_v28 = vpop.f32.mrb[45].mxu1 }
0x17ec   : > { %v5334_v9 = vmul.f32 0.35355338, %v5325_v28  ;;  %v9461_v28 = vld [vmem:[%s9038_s4 + $0x1] ss:$0 sm:$0xff] }
0x17ed   : > { %v5339_v11 = vsel %vm1197_vm3, %v5335_v3, -inf }
0x17ee   : > { %5340 = vmax.xlane.f32.xlu1 %v5339_v11  ;;  %v5336_v5 = vsel %vm1197_vm3, %v5334_v9, -inf }
0x17ef   : > { %5337 = vmax.xlane.f32.xlu0 %v5336_v5 }
0x17f2   : > { %v7853_v29 = vpop.f32.mrb[46].mxu1 }
0x17f3   : > { %v5689_v16 = vpop.f32.mrb[47].mxu1  ;;  %v5699_v49 = vmul.f32 0.35355338, %v7853_v29 }
0x17f4   : > { %v5698_v12 = vmul.f32 0.35355338, %v5689_v16 }
0x17f5   : > { %v5703_v19 = vsel %vm1197_vm3, %v5699_v49, -inf }
0x17f6   : > { %v5700_v34 = vsel %vm1197_vm3, %v5698_v12, -inf }
0x17ff   : > { %8419 = vrot.lane.b32.xlu1 %v9326_v0, %s9666_s29  ;;  %s905_s29 = scalar_lea.vmem %s9617_s17, %s8748_s20 }
0x1803   : > { %5892 = vrot.lane.b32.xlu1 %v9313_v2, %s9667_s21 }
0x1807   : > { %5894 = vrot.lane.b32.xlu1 %v9322_v14, %s9667_s21 }
0x182b   : > { %5704 = vmax.xlane.f32.xlu1 %v5703_v19 }
0x187b   : > { %v5341_v20 = vpop.xlane.xlu1 %5340 }
0x187c   : > { %v5343_v21 = vsub.f32 %v5335_v3, %v5341_v20  ;;  %v5338_v1 = vpop.xlane.xlu0 %5337 }
0x187d   : > { %v5342_v4 = vsub.f32 %v5334_v9, %v5338_v1  ;;  %v6185_v9 = vadd.f32 %v9461_v28, %v9420_v58 }
0x187e   : > { %v5346_v13 = vmul.f32 1.442695, %v5343_v21 }
0x187f   : > { %v5344_v53 = vmul.f32 1.442695, %v5342_v4  ;;  %v8420_v24 = vpop.permute.xlu1 %8419  ;;  %v9466_v11 = vadd.f32 %v6185_v9, %v9214_v54  ;;  %v7201_v9 = vld [vmem:[%s9103_s27 + $0x38] sm:$0xff] }
0x1880   : > { %8569 = vpow2.f32 %v5346_v13  ;;  %v8422_v48 = vunpack.i.h.bf16 %v8420_v24  ;;  %v8421_v7 = vunpack.i.l.bf16 %v8420_v24 }
0x1881   : > { %8571 = vpow2.f32 %v5344_v53  ;;  %v6197_v5 = vsel %vm919_vm0, %v9466_v11, 0.0 }
0x1882   : > { %v8165_v30 = vpack.c.bf16 %v8422_v48, %v8421_v7 }
0x1883   : > { %v5893_v2 = vpop.permute.xlu1 %5892 }
0x1884   : > { %8167 = vmatprep.subr.msk.bf16.mxu1 %vm8833_vm2, %v8165_v30  ;;  %7870 = vmatprep.mubr.msk.f32.mxu1 %vm1111_vm1, %v5893_v2 }
0x1885   : > { %8170 = vmatpush3.bf16.xpose.msk.msra.mxu1 %vm8833_vm2, %v8165_v30 }
0x1887   : > { %v5895_v61 = vpop.permute.xlu1 %5894 }
0x188a   : > { %v8570_v14 = vpop.eup %8569 }
0x188b   : > { %v5351_v31 = vsel %vm1197_vm3, %v8570_v14, 0.0  ;;  %v8572_v32 = vpop.eup %8571 }
0x188c   : > { %7871 = vmatmul.mubr.msk.f32.vlgmr.msra.gmra.mrb[48].mxu1 %vm1111_vm1, %v5895_v61  ;;  %5352 = vadd.xlane.f32.xlu0 %v5351_v31  ;;  %v5348_v33 = vsel %vm1197_vm3, %v8572_v32, 0.0 }
0x1890   : > { %5349 = vadd.xlane.f32.xlu0 %v5348_v33 }
0x18a6   : > { %8414 = vrot.lane.b32.xlu0 %v9326_v0, %s9668_s3  ;;  %s908_s3 = scalar_lea.vmem %s9618_s18, %s9685_s30 }
0x18b8   : > { %v5705_v25 = vpop.xlane.xlu1 %5704 }
0x18b9   : > { %v5707_v26 = vsub.f32 %v5699_v49, %v5705_v25 }
0x18bb   : > { %v5710_v10 = vmul.f32 1.442695, %v5707_v26 }
0x18bd   : > { %8573 = vpow2.f32 %v5710_v10 }
0x18c5   : > { %5701 = vmax.xlane.f32.xlu0 %v5700_v34 }
0x18c7   : > { %v9446_v46 = vpop.eup %8573 }
0x18c8   : > { %v5715_v35 = vsel %vm1197_vm3, %v9446_v46, 0.0 }
0x18c9   : > { %5716 = vadd.xlane.f32.xlu0 %v5715_v35 }
0x1919   : > { %v5353_v15 = vpop.xlane.xlu0 %5352 }
0x191a   : > { %8575 = vrcp.f32 %v5353_v15 }
0x191d   : > { %v5350_v36 = vpop.xlane.xlu0 %5349 }
0x191e   : > { %8577 = vrcp.f32 %v5350_v36 }
0x1921   : > { %v8415_v37 = vpop.permute.xlu0 %8414 }
0x1922   : > { %v8417_v38 = vunpack.i.h.bf16 %v8415_v37  ;;  %v8416_v56 = vunpack.i.l.bf16 %v8415_v37 }
0x1924   : > { %v8151_v39 = vpack.c.bf16 %v8417_v38, %v8416_v56  ;;  %v8576_v27 = vpop.eup %8575 }
0x1925   : > { %v5357_v41 = vmul.f32 %v8576_v27, %v8570_v14 }
0x1926   : > { %8152 = vmatprep.subr.bf16.mxu0 %v8151_v39 }
0x1927   : > { %8154 = vmatpush3.bf16.msra.mxu0 %v8151_v39 }
0x1928   : > { %v8578_v63 = vpop.eup %8577  ;;  %7837 = vmatprep.subr.mxu0 %v9355_v6 }
0x1929   : > { %v5356_v42 = vmul.f32 %v8578_v63, %v8572_v32 }
0x192b   : > { %7834 = vmatprep.mubr.msk.f32.mxu0 %vm1197_vm3, %v5356_v42 }
0x192c   : > { %7835 = vmatmul.mubr.msk.f32.vlgmr.msra.gmra.mrb[30].mxu0 %vm1197_vm3, %v5357_v41 }
0x192d   : > { %7838 = vmatpush3.msra.mxu0 %v9355_v6 }
0x192e   : > { %7842 = vmatprep.subr.mxu0 %v9364_v40 }
0x1952   : > { %v5702_v18 = vpop.xlane.xlu0 %5701 }
0x1953   : > { %v5706_v44 = vsub.f32 %v5698_v12, %v5702_v18 }
0x1955   : > { %v5708_v45 = vmul.f32 1.442695, %v5706_v44 }
0x1956   : > { %v5717_v29 = vpop.xlane.xlu0 %5716 }
0x1957   : > { %8579 = vpow2.f32 %v5708_v45 }
0x195f   : > { %v7872_v8 = vpop.f32.mrb[48].mxu1 }
0x1960   : > { %v5974_v50 = vpop.f32.mrb[49].mxu1  ;;  %v5984_v43 = vmul.f32 0.35355338, %v7872_v8 }
0x1961   : > { %v8580_v52 = vpop.eup %8579  ;;  %v5983_v22 = vmul.f32 0.35355338, %v5974_v50 }
0x1962   : > { %v5712_v57 = vsel %vm1197_vm3, %v8580_v52, 0.0  ;;  %v5988_v6 = vsel %vm1197_vm3, %v5984_v43, -inf }
0x1963   : > { %5713 = vadd.xlane.f32.xlu0 %v5712_v57  ;;  %v5985_v3 = vsel %vm1197_vm3, %v5983_v22, -inf }
0x1964   : > { %5986 = vmax.xlane.f32.xlu1 %v5985_v3  ;;  %v7198_v3 = vld [vmem:[%s9103_s27 + $0x20] sm:$0xff] }
0x1968   : > { %5989 = vmax.xlane.f32.xlu1 %v5988_v6  ;;  %v7199_v6 = vld [vmem:[%s9103_s27 + $0x28] sm:$0xff] }
0x1979   : > { %8424 = vrot.lane.b32.xlu0 %v9326_v0, %s9681_s11 }
0x1998   : > { %6198 = vadd.xlane.f32.xlu0 %v6197_v5 }
0x19f0   : > { %v5714_v19 = vpop.xlane.xlu0 %5713 }
0x19f1   : > { %v5987_v16 = vpop.xlane.xlu1 %5986 }
0x19f2   : > { %v5991_v49 = vsub.f32 %v5983_v22, %v5987_v16 }
0x19f4   : > { %v5993_v1 = vmul.f32 1.442695, %v5991_v49  ;;  %v8425_v13 = vpop.permute.xlu0 %8424 }
0x19f5   : > { %v5990_v20 = vpop.xlane.xlu1 %5989  ;;  %v8427_v58 = vunpack.i.h.bf16 %v8425_v13  ;;  %v8426_v53 = vunpack.i.l.bf16 %v8425_v13 }
0x19f6   : > { %v5992_v21 = vsub.f32 %v5984_v43, %v5990_v20 }
0x19f7   : > { %v8161_v48 = vpack.c.bf16 %v8427_v58, %v8426_v53 }
0x19f8   : > { %v5995_v4 = vmul.f32 1.442695, %v5992_v21 }
0x19fa   : > { %8581 = vpow2.f32 %v5995_v4 }
0x19fb   : > { %8583 = vrcp.f32 %v5714_v19 }
0x19fc   : > { %8585 = vpow2.f32 %v5993_v1 }
0x19fd   : > { %8587 = vrcp.f32 %v5717_v29 }
0x19ff   : > { %v7836_v54 = vpop.f32.mrb[30].mxu0 }
0x1a00   : > { %v5436_v24 = vpop.f32.mrb[31].mxu0 }
0x1a01   : > { %7839 = vmatprep.mubr.msk.f32.mxu0 %vm1111_vm1, %v5436_v24 }
0x1a02   : > { %7840 = vmatmul.mubr.msk.f32.vlgmr.msra.gmra.mrb[32].mxu0 %vm1111_vm1, %v7836_v54 }
0x1a03   : > { %7843 = vmatpush3.msra.mxu0 %v9364_v40  ;;  %7844 = vmatprep.mubr.msk.f32.mxu0 %vm1111_vm1, %v9424_v62  ;;  %v6186_v62 = vadd.f32 %v9418_v51, %v9461_v28 }
0x1a04   : > { %v8582_v7 = vpop.eup %8581  ;;  %8162 = vmatprep.subr.bf16.mxu0 %v8161_v48 }
0x1a05   : > { %v8584_v30 = vpop.eup %8583  ;;  %v6000_v2 = vsel %vm1197_vm3, %v8582_v7, 0.0  ;;  %v6190_v33 = vadd.f32 %v6186_v62, %v9217_v55 }
0x1a06   : > { %v8586_v14 = vpop.eup %8585  ;;  %6001 = vadd.xlane.f32.xlu1 %v6000_v2  ;;  %v5720_v32 = vmul.f32 %v8584_v30, %v8580_v52  ;;  %v9522_v2 = vld [vmem:[%s9068_s5 + $0x1] ss:$0 sm:$0xff] }
0x1a07   : > { %v8588_v61 = vpop.eup %8587  ;;  %v5997_v31 = vsel %vm1197_vm3, %v8586_v14, 0.0 }
0x1a08   : > { %v5721_v40 = vmul.f32 %v8588_v61, %v9446_v46  ;;  %v9525_v61 = vld [vmem:[%s9074_s19 + $0x1] ss:$0 sm:$0xff] }
0x1a0a   : > { %5998 = vadd.xlane.f32.xlu1 %v5997_v31  ;;  %7845 = vmatmul.mubr.msk.f32.vlgmr.msra.gmra.mrb[32].mxu0 %vm1111_vm1, %v9422_v60  ;;  %v6200_v60 = vsel %vm919_vm0, %v6190_v33, 0.0 }
0x1a0b   : > { %8164 = vmatpush3.bf16.msra.mxu0 %v8161_v48  ;;  %7858 = vmatprep.mubr.msk.f32.mxu0 %vm1197_vm3, %v5720_v32 }
0x1a0c   : > { %7861 = vmatprep.subr.mxu0 %v9373_v23 }
0x1a0e   : > { %7859 = vmatmul.mubr.msk.f32.vlgmr.msra.gmra.mrb[34].mxu0 %vm1197_vm3, %v5721_v40 }
0x1a0f   : > { %7862 = vmatpush3.msra.mxu0 %v9373_v23 }
0x1a1b   : > { %8429 = vrot.lane.b32.xlu1 %v9326_v0, %s9670_s24 }
0x1a25   : > { %v6199_v38 = vpop.xlane.xlu0 %6198 }
0x1a26   : > { %v6209_v27 = vmul.f32 0.03125, %v6199_v38  ;;  %v7218_v38 = vld [vmem:[%s9121_s0 + $0xd0] sm:$0xff] }
0x1a3f   : > { %6201 = vadd.xlane.f32.xlu1 %v6200_v60 }
0x1a93   : > { %v6002_v25 = vpop.xlane.xlu1 %6001 }
0x1a97   : > { %v5999_v26 = vpop.xlane.xlu1 %5998 }
0x1a98   : > { %8589 = vrcp.f32 %v5999_v26  ;;  %v7209_v26 = vld [vmem:[%s9121_s0 + $0x88] sm:$0xff] }
0x1a99   : > { %8591 = vrcp.f32 %v6002_v25  ;;  %v7208_v25 = vld [vmem:[%s9121_s0 + $0x80] sm:$0xff] }
0x1a9b   : > { %v8430_v10 = vpop.permute.xlu1 %8429 }
0x1a9c   : > { %v8432_v12 = vunpack.i.h.bf16 %v8430_v10  ;;  %v8431_v34 = vunpack.i.l.bf16 %v8430_v10  ;;  %v8183_v10 = vpack.c.bf16 %v7209_v26, %v7208_v25 }
0x1a9e   : > { %v8171_v46 = vpack.c.bf16 %v8432_v12, %v8431_v34  ;;  %v7210_v12 = vld [vmem:[%s9121_s0 + $0x90] sm:$0xff]  ;;  %v7211_v34 = vld [vmem:[%s9121_s0 + $0x98] sm:$0xff] }
0x1aa0   : > { %8172 = vmatprep.subr.bf16.mxu0 %v8171_v46 }
0x1aa2   : > { %v8590_v23 = vpop.eup %8589 }
0x1aa3   : > { %v8592_v15 = vpop.eup %8591  ;;  %v6005_v51 = vmul.f32 %v8590_v23, %v8586_v14  ;;  %v7212_v23 = vld [vmem:[%s9121_s0 + $0xa0] sm:$0xff] }
0x1aa4   : > { %v6006_v55 = vmul.f32 %v8592_v15, %v8582_v7  ;;  %v7214_v15 = vld [vmem:[%s9121_s0 + $0xb0] sm:$0xff] }
0x1acc   : > { %v6202_v41 = vpop.xlane.xlu1 %6201 }
0x1acd   : > { %v6210_v44 = vmul.f32 0.03125, %v6202_v41 }
0x1acf   : > { %v6214_v50 = vsub.f32 %v6190_v33, %v6210_v44 }
0x1ad1   : > { %v6218_v43 = vmul.f32 %v6214_v50, %v6214_v50 }
0x1ae1   : > { %v7860_v35 = vpop.f32.mrb[34].mxu0 }
0x1ae2   : > { %v5800_v0 = vpop.f32.mrb[35].mxu0 }
0x1ae3   : > { %7863 = vmatprep.mubr.msk.f32.mxu0 %vm1111_vm1, %v5800_v0 }
0x1ae4   : > { %7864 = vmatmul.mubr.msk.f32.vlgmr.msra.gmra.mrb[32].mxu0 %vm1111_vm1, %v7860_v35  ;;  %v7213_v35 = vld [vmem:[%s9121_s0 + $0xa8] sm:$0xff] }
0x1ae5   : > { %8174 = vmatpush3.bf16.msra.mxu0 %v8171_v46  ;;  %7877 = vmatprep.mubr.msk.f32.mxu0 %vm1197_vm3, %v6005_v51  ;;  %v8187_v46 = vpack.c.bf16 %v7211_v34, %v7210_v12  ;;  %v8191_v0 = vpack.c.bf16 %v7213_v35, %v7212_v23  ;;  %v7215_v51 = vld [vmem:[%s9121_s0 + $0xb8] sm:$0xff] }
0x1ae6   : > { %7880 = vmatprep.subr.mxu0 %v9394_v59 }
0x1ae8   : > { %7878 = vmatmul.mubr.msk.f32.vlgmr.msra.gmra.mrb[36].mxu0 %vm1197_vm3, %v6006_v55  ;;  %v8195_v55 = vpack.c.bf16 %v7215_v51, %v7214_v15 }
0x1ae9   : > { %7881 = vmatpush3.msra.mxu0 %v9394_v59  ;;  %v6213_v59 = vsub.f32 %v9466_v11, %v6209_v27 }
0x1aea   : > { %8184 = vmatprep.subr.bf16.mxu0 %v8183_v10 }
0x1aeb   : > { %v6217_v22 = vmul.f32 %v6213_v59, %v6213_v59 }
0x1aed   : > { %v6221_v57 = vsel %vm919_vm0, %v6217_v22, 0.0 }
0x1bbb   : > { %v7879_v36 = vpop.f32.mrb[36].mxu0 }
0x1bbc   : > { %v6085_v37 = vpop.f32.mrb[37].mxu0 }
0x1bbd   : > { %7882 = vmatprep.mubr.msk.f32.mxu0 %vm1111_vm1, %v6085_v37  ;;  %v7217_v37 = vld [vmem:[%s9121_s0 + $0xc8] sm:$0xff] }
0x1bbe   : > { %7883 = vmatmul.mubr.msk.f32.vlgmr.msra.gmra.mrb[32].mxu0 %vm1111_vm1, %v7879_v36  ;;  %v7216_v36 = vld [vmem:[%s9121_s0 + $0xc0] sm:$0xff] }
0x1bbf   : > { %8186 = vmatpush3.bf16.msra.mxu0 %v8183_v10 }
0x1bc0   : > { %8188 = vmatprep.subr.bf16.mxu0 %v8187_v46 }
0x1bc3   : > { %8190 = vmatpush3.bf16.msra.mxu0 %v8187_v46 }
0x1bc4   : > { %8192 = vmatprep.subr.bf16.mxu0 %v8191_v0 }
0x1bc7   : > { %8194 = vmatpush3.bf16.msra.mxu0 %v8191_v0 }
0x1bc8   : > { %8196 = vmatprep.subr.bf16.mxu0 %v8195_v55 }
0x1bcb   : > { %8198 = vmatpush3.bf16.msra.mxu0 %v8195_v55 }
0x1c91   : > { %v7884_v56 = vpop.f32.mrb[32].mxu0 }
0x1c92   : > { %v6166_v39 = vpop.f32.mrb[33].mxu0  ;;  %v6188_v63 = vadd.f32 %v7884_v56, %v9461_v28  ;;  %v8199_v56 = vpack.c.bf16 %v7217_v37, %v7216_v36 }
0x1c93   : > { %v6187_v42 = vadd.f32 %v9461_v28, %v6166_v39  ;;  %v7200_v28 = vld [vmem:[%s9103_s27 + $0x30] sm:$0xff]  ;;  %v7219_v39 = vld [vmem:[%s9121_s0 + $0xd8] sm:$0xff] }
0x1c94   : > { %v6192_v45 = vadd.f32 %v6188_v63, %v9260_v47  ;;  %v8175_v47 = vpack.c.bf16 %v7199_v6, %v7198_v3  ;;  %v8179_v11 = vpack.c.bf16 %v7201_v9, %v7200_v28  ;;  %v8203_v27 = vpack.c.bf16 %v7219_v39, %v7218_v38  ;;  %8200 = vmatprep.subr.bf16.mxu0 %v8199_v56  ;;  %v7220_v63 = vld [vmem:[%s9121_s0 + $0xe0] sm:$0xff] }
0x1c95   : > { %v6191_v18 = vadd.f32 %v6187_v42, %v9257_v17  ;;  %v6224_v17 = vsel %vm919_vm0, %v6218_v43, 0.0  ;;  %v7221_v42 = vld [vmem:[%s9121_s0 + $0xe8] sm:$0xff]  ;;  %8202 = vmatpush3.bf16.msra.mxu0 %v8199_v56 }
0x1c96   : > { %v6206_v52 = vsel %vm919_vm0, %v6192_v45, 0.0  ;;  %8176 = vmatprep.subr.bf16.mxu1 %v8175_v47  ;;  %8204 = vmatprep.subr.bf16.mxu0 %v8203_v27  ;;  %v8207_v41 = vpack.c.bf16 %v7221_v42, %v7220_v63 }
0x1c97   : > { %v6203_v8 = vsel %vm919_vm0, %v6191_v18, 0.0  ;;  %8178 = vmatpush3.bf16.msra.mxu1 %v8175_v47 }
0x1c98   : > { %6204 = vadd.xlane.f32.xlu0 %v6203_v8  ;;  %8180 = vmatprep.subr.bf16.mxu1 %v8179_v11 }
0x1c99   : > { %8206 = vmatpush3.bf16.msra.mxu0 %v8203_v27 }
0x1c9a   : > { %8208 = vmatprep.subr.bf16.mxu0 %v8207_v41 }
0x1c9b   : > { %8182 = vmatpush3.bf16.msra.mxu1 %v8179_v11 }
0x1c9c   : > { %6207 = vadd.xlane.f32.xlu0 %v6206_v52 }
0x1c9d   : > { %8210 = vmatpush3.bf16.msra.mxu0 %v8207_v41  ;;  %v7225_v41 = vld [vmem:[%s9162_s7 + $0x1] ss:$0 sm:$0xff]  ;;  %s897_s7 = scalar_lea.vmem %s9615_s15, %s8748_s20 }
0x1ca0   : > { %6222 = vadd.xlane.f32.xlu0 %v6221_v57 }
0x1ca4   : > { %6225 = vadd.xlane.f32.xlu0 %v6224_v17 }
0x1d25   : > { %v6205_v5 = vpop.xlane.xlu0 %6204 }
0x1d26   : > { %v6211_v29 = vmul.f32 0.03125, %v6205_v5  ;;  %v7203_v5 = vld [vmem:[%s9143_s6 + $0x1] ss:$0 sm:$0xff] }
0x1d28   : > { %v9511_v16 = vsub.f32 %v6191_v18, %v6211_v29  ;;  %v7222_v18 = vld [vmem:[%s9121_s0 + $0xf0] sm:$0xff] }
0x1d29   : > { %v6208_v49 = vpop.xlane.xlu0 %6207 }
0x1d2a   : > { %v6212_v19 = vmul.f32 0.03125, %v6208_v49  ;;  %v6219_v20 = vmul.f32 %v9511_v16, %v9511_v16 }
0x1d2c   : > { %v9515_v21 = vsub.f32 %v6192_v45, %v6212_v19  ;;  %v6227_v1 = vsel %vm919_vm0, %v6219_v20, 0.0 }
0x1d2d   : > { %6228 = vadd.xlane.f32.xlu0 %v6227_v1  ;;  %v6223_v4 = vpop.xlane.xlu0 %6222 }
0x1d2e   : > { %v6233_v13 = vmul.f32 0.03125, %v6223_v4  ;;  %v6220_v58 = vmul.f32 %v9515_v21, %v9515_v21 }
0x1d30   : > { %v6237_v53 = vadd.f32 1e-12, %v6233_v13  ;;  %v6230_v54 = vsel %vm919_vm0, %v6220_v58, 0.0 }
0x1d31   : > { %6231 = vadd.xlane.f32.xlu1 %v6230_v54  ;;  %v6226_v24 = vpop.xlane.xlu0 %6225 }
0x1d32   : > { %8593 = vrsqrt.f32 %v6237_v53  ;;  %v6234_v48 = vmul.f32 0.03125, %v6226_v24 }
0x1d34   : > { %v6238_v7 = vadd.f32 1e-12, %v6234_v48 }
0x1d36   : > { %8595 = vrsqrt.f32 %v6238_v7 }
0x1d3c   : > { %v8594_v30 = vpop.eup %8593 }
0x1d3d   : > { %v6245_v14 = vmul.f32 %v8594_v30, %v6213_v59  ;;  %v7223_v59 = vld [vmem:[%s9121_s0 + $0xf8] sm:$0xff]  ;;  %s9682_s0 = sld [smem:[#allocation15_spill]] }
0x1d3e   : > { %v8211_v44 = vpack.c.bf16 %v7223_v59, %v7222_v18 }
0x1d3f   : > { %v6255_v31 = vmul.f32 %v9522_v2, %v6245_v14 }
0x1d40   : > { %v8596_v32 = vpop.eup %8595  ;;  %8212 = vmatprep.subr.bf16.mxu0 %v8211_v44 }
0x1d41   : > { %v6246_v40 = vmul.f32 %v8596_v32, %v6214_v50  ;;  %v9529_v62 = vadd.f32 %v9525_v61, %v6255_v31  ;;  %8214 = vmatpush3.bf16.msra.mxu0 %v8211_v44 }
0x1d43   : > { %7893 = vmatprep.mubr.msk.f32.mxu1 %vm919_vm0, %v9529_v62  ;;  %v6256_v33 = vmul.f32 %v9522_v2, %v6246_v40  ;;  %s912_s6 = scalar_lea.vmem %s9682_s0, %s8800_s25 }
0x1d45   : > { %v6266_v60 = vadd.f32 %v9525_v61, %v6256_v33 }
0x1d47   : > { %7894 = vmatmul.mubr.msk.f32.vlgmr.msra.gmra.mrb[50].mxu1 %vm919_vm0, %v6266_v60 }
0x1dba   : > { %v6229_v45 = vpop.xlane.xlu0 %6228 }
0x1dbb   : > { %v6235_v8 = vmul.f32 0.03125, %v6229_v45 }
0x1dbd   : > { %v6239_v50 = vadd.f32 1e-12, %v6235_v8 }
0x1dbe   : > { %v6232_v52 = vpop.xlane.xlu1 %6231 }
0x1dbf   : > { %8597 = vrsqrt.f32 %v6239_v50  ;;  %v6236_v22 = vmul.f32 0.03125, %v6232_v52 }
0x1dc1   : > { %v6240_v57 = vadd.f32 1e-12, %v6236_v22 }
0x1dc3   : > { %8599 = vrsqrt.f32 %v6240_v57 }
0x1dc9   : > { %v8598_v43 = vpop.eup %8597 }
0x1dca   : > { %v6247_v17 = vmul.f32 %v8598_v43, %v9511_v16 }
0x1dcc   : > { %v6257_v3 = vmul.f32 %v9522_v2, %v6247_v17 }
0x1dcd   : > { %v8600_v6 = vpop.eup %8599 }
0x1dce   : > { %v9555_v47 = vadd.f32 %v9525_v61, %v6257_v3  ;;  %v6248_v28 = vmul.f32 %v8600_v6, %v9515_v21 }
0x1dd0   : > { %7896 = vmatprep.mubr.msk.f32.mxu1 %vm919_vm0, %v9555_v47  ;;  %v6258_v9 = vmul.f32 %v9522_v2, %v6248_v28 }
0x1dd2   : > { %v6268_v11 = vadd.f32 %v9525_v61, %v6258_v9 }
0x1dd4   : > { %7897 = vmatmul.mubr.msk.f32.gmra.mrb[52].mxu1 %vm919_vm0, %v6268_v11 }
0x1e1a   : > { %v7895_v29 = vpop.f32.mrb[50].mxu1 }
0x1e1b   : > { %v6366_v16 = vadd.f32 %v7895_v29, %v7203_v5  ;;  %v6360_v49 = vpop.f32.mrb[51].mxu1 }
0x1e1c   : > { %v6361_v19 = vadd.f32 %v7203_v5, %v6360_v49  ;;  %v6577_v49 = vld [vmem:[%s897_s7 + $0x8] sm:$0xff] }
0x1e1d   : > { %v6380_v20 = vmul.f32 %v6366_v16, %v6366_v16 }
0x1e1e   : > { %v6379_v1 = vmul.f32 %v6361_v19, %v6361_v19 }
0x1e1f   : > { %v6384_v4 = vmul.f32 %v6380_v20, %v6366_v16  ;;  %v8634_v20 = vmov 0.0|0.0  }
0x1e20   : > { %v6383_v13 = vmul.f32 %v6379_v1, %v6361_v19  ;;  %8215 = vmatprep.subr.bf16.mxu1 %v8634_v20  ;;  %v6578_v1 = vld [vmem:[%s897_s7 + $0x10] sm:$0xff] }
0x1e21   : > { %v6388_v58 = vmul.f32 0.044715, %v6384_v4  ;;  %v6579_v4 = vld [vmem:[%s897_s7 + $0x18] sm:$0xff] }
0x1e22   : > { %v6387_v21 = vmul.f32 0.044715, %v6383_v13  ;;  %v8219_v13 = vpack.c.bf16 %v6579_v4, %v6578_v1 }
0x1e23   : > { %v6392_v53 = vadd.f32 %v6388_v58, %v6366_v16  ;;  %v8636_v58 = vmov 0.0  }
0x1e24   : > { %v6391_v54 = vadd.f32 %v6387_v21, %v6361_v19  ;;  %7945 = vmatprep.mubr.msk.f32.mxu1 %vm8635_vm4, %v8636_v58 }
0x1e25   : > { %v6396_v24 = vmul.f32 0.7978846, %v6392_v53 }
0x1e26   : > { %v6395_v48 = vmul.f32 0.7978846, %v6391_v54 }
0x1e27   : > { %8601 = vtanh.f32 %v6396_v24 }
0x1e28   : > { %8603 = vtanh.f32 %v6395_v48 }
0x1e31   : > { %v8602_v7 = vpop.eup %8601 }
0x1e32   : > { %v8604_v30 = vpop.eup %8603  ;;  %v6404_v2 = vadd.f32 1.0, %v8602_v7 }
0x1e33   : > { %v6403_v14 = vadd.f32 1.0, %v8604_v30 }
0x1e34   : > { %v6408_v61 = vmul.f32 0.5, %v6404_v2 }
0x1e35   : > { %v6407_v31 = vmul.f32 0.5, %v6403_v14 }
0x1e36   : > { %v6412_v40 = vmul.f32 %v6408_v61, %v6366_v16  ;;  %v7228_v61 = vld [vmem:[%s9197_s22 + $0x1] ss:$0 sm:$0xff] }
0x1e37   : > { %v6411_v32 = vmul.f32 %v6407_v31, %v6361_v19 }
0x1e39   : > { %7931 = vmatprep.mubr.f32.mxu0 %v6411_v32 }
0x1e3a   : > { %7932 = vmatmul.mubr.f32.vlgmr.msra.gmra.mrb[38].mxu0 %v6412_v40 }
0x1ea7   : > { %v7898_v33 = vpop.f32.mrb[52].mxu1 }
0x1ea8   : > { %v6376_v60 = vadd.f32 %v7898_v33, %v7203_v5  ;;  %v6370_v25 = vpop.f32.mrb[53].mxu1  ;;  %v7229_v33 = vld [vmem:[%s9203_s10 + $0x1] ss:$0 sm:$0xff] }
0x1ea9   : > { %v6371_v26 = vadd.f32 %v7203_v5, %v6370_v25 }
0x1eaa   : > { %v6382_v10 = vmul.f32 %v6376_v60, %v6376_v60 }
0x1eab   : > { %v6381_v12 = vmul.f32 %v6371_v26, %v6371_v26 }
0x1eac   : > { %v6386_v34 = vmul.f32 %v6382_v10, %v6376_v60 }
0x1ead   : > { %v6385_v46 = vmul.f32 %v6381_v12, %v6371_v26  ;;  %v6661_v12 = vld [vmem:[%s905_s29] sm:$0xff] }
0x1eae   : > { %v6390_v23 = vmul.f32 0.044715, %v6386_v34  ;;  %v6662_v34 = vld [vmem:[%s905_s29 + $0x8] sm:$0xff] }
0x1eaf   : > { %v6389_v35 = vmul.f32 0.044715, %v6385_v46  ;;  %v6663_v46 = vld [vmem:[%s905_s29 + $0x10] sm:$0xff] }
0x1eb0   : > { %v6394_v0 = vadd.f32 %v6390_v23, %v6376_v60  ;;  %v8222_v23 = vpack.c.bf16 %v6662_v34, %v6661_v12 }
0x1eb1   : > { %v6393_v15 = vadd.f32 %v6389_v35, %v6371_v26  ;;  %v6664_v35 = vld [vmem:[%s905_s29 + $0x18] sm:$0xff] }
0x1eb2   : > { %v6398_v51 = vmul.f32 0.7978846, %v6394_v0  ;;  %v8225_v0 = vpack.c.bf16 %v6664_v35, %v6663_v46 }
0x1eb3   : > { %v6397_v55 = vmul.f32 0.7978846, %v6393_v15  ;;  %v7230_v15 = vld [vmem:[%s900_s1] ss:$0 sm:$0xff] }
0x1eb4   : > { %8605 = vtanh.f32 %v6398_v51 }
0x1eb5   : > { %8607 = vtanh.f32 %v6397_v55 }
0x1ebe   : > { %v8606_v36 = vpop.eup %8605 }
0x1ebf   : > { %v8608_v37 = vpop.eup %8607  ;;  %v6406_v38 = vadd.f32 1.0, %v8606_v36 }
0x1ec0   : > { %v6405_v56 = vadd.f32 1.0, %v8608_v37 }
0x1ec1   : > { %v6410_v39 = vmul.f32 0.5, %v6406_v38  ;;  %v7232_v38 = vld [vmem:[%s908_s3] ss:$0 sm:$0xff] }
0x1ec2   : > { %v6409_v27 = vmul.f32 0.5, %v6405_v56 }
0x1ec3   : > { %v6414_v42 = vmul.f32 %v6410_v39, %v6376_v60 }
0x1ec4   : > { %v6413_v63 = vmul.f32 %v6409_v27, %v6371_v26 }
0x1ec6   : > { %7934 = vmatprep.mubr.f32.mxu0 %v6413_v63 }
0x1ec7   : > { %7935 = vmatmul.mubr.f32.gmra.mrb[40].mxu0 %v6414_v42 }
0x1f0d   : > { %v7933_v18 = vpop.f32.mrb[38].mxu0 }
0x1f0e   : > { %v6506_v59 = vpop.f32.mrb[39].mxu0 }
0x1f0f   : > { %v6507_v44 = vadd.f32 %v7225_v41, %v6506_v59 }
0x1f11   : > { %v6523_v45 = vadd.f32 %v6507_v44, %v9529_v62 }
0x1f13   : > { %v6529_v8 = vsel %vm919_vm0, %v6523_v45, 0.0 }
0x1f14   : > { %6530 = vadd.xlane.f32.xlu1 %v6529_v8 }
0x1f9a   : > { %v7936_v50 = vpop.f32.mrb[40].mxu0 }
0x1f9b   : > { %v6515_v52 = vpop.f32.mrb[41].mxu0 }
0x1f9c   : > { %v6516_v22 = vadd.f32 %v7225_v41, %v6515_v52 }
0x1f9e   : > { %v6524_v57 = vadd.f32 %v6516_v22, %v9555_v47  ;;  %v6576_v47 = vld [vmem:[%s897_s7] sm:$0xff] }
0x1f9f   : > { %v8216_v19 = vpack.c.bf16 %v6577_v49, %v6576_v47 }
0x1fa0   : > { %v6532_v43 = vsel %vm919_vm0, %v6524_v57, 0.0 }
0x1fa1   : > { %v6531_v17 = vpop.xlane.xlu1 %6530  ;;  %6533 = vadd.xlane.f32.xlu0 %v6532_v43  ;;  %8217 = vmatpush3.bf16.msra.mxu1 %v8216_v19 }
0x1fa2   : > { %v6535_v3 = vmul.f32 0.03125, %v6531_v17  ;;  %8218 = vmatprep.subr.bf16.mxu1 %v8634_v20 }
0x1fa4   : > { %v6537_v6 = vsub.f32 %v6523_v45, %v6535_v3 }
0x1fa5   : > { %8220 = vmatpush3.bf16.msra.mxu1 %v8219_v13 }
0x1fa6   : > { %v6539_v28 = vmul.f32 %v6537_v6, %v6537_v6  ;;  %8221 = vmatprep.subr.bf16.mxu1 %v8634_v20 }
0x1fa8   : > { %v6541_v9 = vsel %vm919_vm0, %v6539_v28, 0.0 }
0x1fa9   : > { %6542 = vadd.xlane.f32.xlu1 %v6541_v9 }
0x202e   : > { %v6534_v62 = vpop.xlane.xlu0 %6533 }
0x202f   : > { %v6536_v11 = vmul.f32 0.03125, %v6534_v62 }
0x2031   : > { %v6538_v5 = vsub.f32 %v6524_v57, %v6536_v11 }
0x2033   : > { %v6540_v29 = vmul.f32 %v6538_v5, %v6538_v5 }
0x2035   : > { %v6544_v16 = vsel %vm919_vm0, %v6540_v29, 0.0 }
0x2036   : > { %6545 = vadd.xlane.f32.xlu0 %v6544_v16  ;;  %v6543_v21 = vpop.xlane.xlu1 %6542 }
0x2037   : > { %v6547_v53 = vmul.f32 0.03125, %v6543_v21 }
0x2039   : > { %v6549_v54 = vadd.f32 1e-12, %v6547_v53 }
0x203b   : > { %8609 = vrsqrt.f32 %v6549_v54 }
0x2045   : > { %v8610_v30 = vpop.eup %8609 }
0x2046   : > { %v6553_v2 = vmul.f32 %v8610_v30, %v6537_v6 }
0x2048   : > { %v6561_v32 = vmul.f32 %v7228_v61, %v6553_v2 }
0x204a   : > { %v6569_v25 = vadd.f32 %v7229_v33, %v6561_v32 }
0x20c3   : > { %v6546_v24 = vpop.xlane.xlu0 %6545 }
0x20c4   : > { %v6548_v48 = vmul.f32 0.03125, %v6546_v24 }
0x20c6   : > { %v6550_v7 = vadd.f32 1e-12, %v6548_v48 }
0x20c8   : > { %8611 = vrsqrt.f32 %v6550_v7 }
0x20d2   : > { %v8612_v14 = vpop.eup %8611 }
0x20d3   : > { %v6554_v31 = vmul.f32 %v8612_v14, %v6538_v5 }
0x20d5   : > { %v6562_v40 = vmul.f32 %v7228_v61, %v6554_v31 }
0x20d7   : > { %v6570_v60 = vadd.f32 %v7229_v33, %v6562_v40 }
0x20d9   : > { %v6572_v26 = vrot.slane %v6570_v60, 7 }
0x20db   : > { %v6575_v10 = vsel %vm6574_vm5, %v6569_v25, %v6572_v26 }
0x20dc   : > { %7946 = vmatmul.mubr.msk.f32.vlgmr.msra.gmra.mrb[54].mxu1 %vm919_vm0, %v6575_v10 }
0x20dd   : > { %7956 = vmatprep.mubr.msk.f32.mxu1 %vm8635_vm4, %v8636_v58  ;;  %8223 = vmatpush3.bf16.msra.mxu1 %v8222_v23 }
0x20de   : > { %8224 = vmatprep.subr.bf16.mxu1 %v8634_v20 }
0x20e1   : > { %8226 = vmatpush3.bf16.msra.mxu1 %v8225_v0 }
0x21af   : > { %v6656_v51 = vpop.f32.mrb[54].mxu1 }
0x21b0   : > { %v6657_v55 = vadd.f32 %v7230_v15, %v6656_v51  ;;  %v7947_v36 = vpop.f32.mrb[55].mxu1 }
0x21b2   : > { %8613 = vtanh.f32 %v6657_v55 }
0x21bc   : > { %v8614_v37 = vpop.eup %8613 }
0x21bd   : > { %7957 = vmatmul.mubr.msk.f32.vlgmr.msra.gmra.mrb[56].mxu1 %vm919_vm0, %v8614_v37 }
0x2290   : > { %v6741_v56 = vpop.f32.mrb[56].mxu1 }
0x2291   : > { %v6742_v39 = vadd.f32 %v7232_v38, %v6741_v56  ;;  %v7958_v27 = vpop.f32.mrb[57].mxu1 }
0x2293   : > { %6746 = vst.msk [vmem:[%s912_s6] sm:$0x3] %vm6745_vm6, %v6742_v39 }
0x2294 PF: > { %s9683_s22 = sld [smem:[#allocation2_spill]] }
0x229a   : > { %s29_s0 = sadd.s32 1, %s9683_s22  }
0x229b   : > { %p26_p4 = scmp.ge.s32.totalorder %s29_s0, 4  }
0x229d   :  { %28 = sbr.rel (!%p26_p4) target bundleno = 14 (0xe), region = 192 }

</bundles_post_ra>
